<compile_context>
chip_gen: v5e
topology: v5e:2x2
jax: 0.10.0
libtpu: 0.0.40
codegen_flags: <defaults>
</compile_context>

<pallas_src>
import functools
import math

import jax
import jax.numpy as jnp
from jax.experimental import pallas as pl
from jax.experimental.pallas import tpu as pltpu


def _trm_enc_kernel(x_ref, wqkv_ref, wo_ref, w1_ref, w2_ref, const_ref, zr_ref,
                    out_ref, *, num_heads: int, eps: float):
    B, L, D = x_ref.shape
    dh = D // num_heads
    BL = B * L
    f32, bf16 = jnp.float32, jnp.bfloat16

    # (b_tile, L, D) block -> one (b_tile*L, D) activation slab (free merge: L % 8 == 0).
    x = x_ref[...].astype(f32).reshape(BL, D)           # f32 residual / LayerNorm path
    x_mx = x.astype(bf16)                                # bf16 copy feeding the MXU

    consts = const_ref[...]                              # packed f32 constants (8, >=3D)
    bqkv  = consts[0:1, :3 * D]
    bo    = consts[1:2, :D]
    gamma = consts[2:3, :D]
    beta  = consts[3:4, :D]
    b1    = consts[4:5, :2 * D]
    b2    = consts[5:6, :D]

    # ---- fused QKV projection: one (BL, D) x (D, 3D) matmul, bf16 in / f32 accumulate ----
    qkv = jnp.dot(x_mx, wqkv_ref[...], preferred_element_type=f32) + bqkv
    q3 = qkv[:, 0 * D:1 * D].reshape(B, L, D)
    k3 = qkv[:, 1 * D:2 * D].reshape(B, L, D)
    v3 = qkv[:, 2 * D:3 * D].reshape(B, L, D)

    # ---- multi-head attention: batched dot_generals over a single (num_heads*B) axis ----
    def split_heads(t):                                  # (B, L, D) -> (num_heads*B, L, dh)
        return jnp.concatenate(
            [t[:, :, h * dh:(h + 1) * dh] for h in range(num_heads)], axis=0
        ).astype(bf16)

    qh, kh, vh = split_heads(q3), split_heads(k3), split_heads(v3)
    scale = 1.0 / math.sqrt(dh)
    s = jnp.einsum('bqd,bkd->bqk', qh, kh, preferred_element_type=f32) * scale
    s = s - jnp.max(s, axis=-1, keepdims=True)
    p = jnp.exp(s)
    inv = pl.reciprocal(jnp.sum(p, axis=-1, keepdims=True), approx=True)   # EUP, not VALU
    p = p * inv
    ctx = jnp.einsum('bqk,bkd->bqd', p.astype(bf16), vh,
                     preferred_element_type=f32)         # (num_heads*B, L, dh)

    # Reassemble heads on the lane axis, then ONE full-width output projection.
    ctx = jnp.concatenate([ctx[h * B:(h + 1) * B] for h in range(num_heads)],
                          axis=-1)                        # (B, L, D)
    target = jnp.dot(ctx.reshape(BL, D).astype(bf16), wo_ref[...],
                     preferred_element_type=f32) + bo

    # ---- gated residuals + LayerNorm (shared weights, applied twice) + FFN ----
    z = zr_ref[0]
    r = zr_ref[1]
    one_m_z = 1.0 - z
    one_m_r = 1.0 - r
    gamma_b = jnp.broadcast_to(gamma, (BL, D))            # hoisted: LN is applied twice
    beta_b  = jnp.broadcast_to(beta, (BL, D))

    def layernorm(y):
        mu = jnp.mean(y, axis=-1, keepdims=True)
        c = y - mu
        var = jnp.mean(c * c, axis=-1, keepdims=True)     # two-pass variance (no cancellation)
        return c * jax.lax.rsqrt(var + eps) * gamma_b + beta_b

    x1 = layernorm(z * x + one_m_z * target)

    # ---- FFN: Linear(D, 2D) -> ReLU -> Linear(2D, D) ----
    h1 = jnp.dot(x1.astype(bf16), w1_ref[...], preferred_element_type=f32) + b1
    h1 = jnp.maximum(h1, 0.0)
    ffn = jnp.dot(h1.astype(bf16), w2_ref[...], preferred_element_type=f32) + b2

    x2 = layernorm(r * x1 + one_m_r * ffn)
    out_ref[...] = x2.reshape(B, L, D).astype(out_ref.dtype)


def _vmem_capacity_bytes() -> int:
    # Only the hardware query itself is guarded; fall back to the smallest per-TC VMEM
    # across supported generations (v7x: 64 MiB).
    try:
        return int(pltpu.get_tpu_info().vmem_capacity_bytes)
    except Exception:
        return 64 * 1024 * 1024


def _pick_b_tile(n, per_b_bytes, budget_bytes, min_grid_steps=1):
    """Largest divisor of n whose intermediates fit the VMEM budget, preferring at least
    `min_grid_steps` grid steps (use 2 on v7x, which has 2 TensorCores per chip)."""
    divisors = [b for b in range(1, n + 1) if n % b == 0]
    fitting = [b for b in divisors if b * per_b_bytes <= budget_bytes] or [1]
    preferred = [b for b in fitting if n // b >= min_grid_steps]
    return max(preferred) if preferred else max(fitting)


def trm_enc_layer(x, params, *, num_heads=4, eps=1e-12, b_tile=None, min_grid_steps=1):
    """x: (N, L, D) float32; params: dict of f32 arrays (see __main__)."""
    N, L, D = x.shape
    H2 = params["w1"].shape[1]                       # ffn hidden = 2*D
    assert D % num_heads == 0 and H2 == 2 * D
    bf16 = jnp.bfloat16

    # bf16 MXU weights; QKV fused host-side into one (D, 3D) weight and (3D,) bias.
    wqkv = jnp.concatenate([params["wq"], params["wk"], params["wv"]], axis=1).astype(bf16)
    wo = params["wo"].astype(bf16)
    w1 = params["w1"].astype(bf16)
    w2 = params["w2"].astype(bf16)

    # All small f32 constants packed into one lane-dense (8, CW) operand.
    CW = max(128, pl.cdiv(3 * D, 128) * 128)
    consts = jnp.zeros((8, CW), jnp.float32)
    consts = consts.at[0, :3 * D].set(
        jnp.concatenate([params["bq"], params["bk"], params["bv"]], axis=-1).reshape(-1))
    consts = consts.at[1, :D].set(params["bo"].reshape(-1))
    consts = consts.at[2, :D].set(params["ln_g"].reshape(-1))
    consts = consts.at[3, :D].set(params["ln_b"].reshape(-1))
    consts = consts.at[4, :2 * D].set(params["b1"].reshape(-1))
    consts = consts.at[5, :D].set(params["b2"].reshape(-1))

    zr = jnp.concatenate([params["z"].reshape(-1),
                          params["rand"].reshape(-1)]).astype(jnp.float32)   # (2,) -> SMEM

    # ---- generation-aware tile & VMEM sizing (v7x: 64 MiB/TC, v5e/v6e: 128 MiB) ----
    vmem_cap = _vmem_capacity_bytes()
    # rough per-batch-element bytes of in-kernel intermediates (f32 + bf16 copies)
    per_b = 64 * L * D + 12 * num_heads * L * L
    if b_tile is None:
        b_tile = _pick_b_tile(N, per_b, vmem_cap // 4, min_grid_steps)
    assert N % b_tile == 0, "batch must be divisible by the batch tile"
    grid = (N // b_tile,)

    weight_bytes = 2 * (wqkv.size + wo.size + w1.size + w2.size) + 4 * consts.size
    io_bytes = 2 * 2 * b_tile * L * D * x.dtype.itemsize   # double-buffered in + out tiles
    step_bytes = weight_bytes + io_bytes + b_tile * per_b
    vmem_limit = int(min(max(2 * step_bytes, 16 << 20), (vmem_cap * 3) // 4))

    def const_spec(shape):
        idx = lambda n: (0,) * len(shape)
        try:        # single resident buffer for constant-index operands
            return pl.BlockSpec(shape, idx, pipeline_mode=pl.Buffered(1))
        except (TypeError, AttributeError):     # pipeline_mode / Buffered unavailable
            return pl.BlockSpec(shape, idx)

    kernel = functools.partial(_trm_enc_kernel, num_heads=num_heads, eps=eps)
    smem_spec = pl.BlockSpec(memory_space=pltpu.MemorySpace.SMEM)

    return pl.pallas_call(
        kernel,
        out_shape=jax.ShapeDtypeStruct((N, L, D), x.dtype),
        grid_spec=pltpu.PrefetchScalarGridSpec(
            num_scalar_prefetch=0,
            grid=grid,
            in_specs=[
                pl.BlockSpec((b_tile, L, D), lambda n: (n, 0, 0)),   # x
                const_spec((D, 3 * D)),                              # fused QKV weight
                const_spec((D, D)),                                  # wo
                const_spec((D, 2 * D)),                              # ffn w1
                const_spec((2 * D, D)),                              # ffn w2
                const_spec((8, CW)),                                 # packed biases / LN params
                smem_spec,                                           # [z, rand] scalars
            ],
            out_specs=pl.BlockSpec((b_tile, L, D), lambda n: (n, 0, 0)),
        ),
        compiler_params=pltpu.CompilerParams(
            dimension_semantics=("parallel",),
            vmem_limit_bytes=vmem_limit,
        ),
    )(x, wqkv, wo, w1, w2, consts, zr)


def _reference(x, p, *, num_heads=4, eps=1e-12):
    """Pure-JAX (f32) reference for sanity checking."""
    N, L, D = x.shape
    dh = D // num_heads
    q = x @ p["wq"] + p["bq"]
    k = x @ p["wk"] + p["bk"]
    v = x @ p["wv"] + p["bv"]
    qh = q.reshape(N, L, num_heads, dh).transpose(0, 2, 1, 3)
    kh = k.reshape(N, L, num_heads, dh).transpose(0, 2, 1, 3)
    vh = v.reshape(N, L, num_heads, dh).transpose(0, 2, 1, 3)
    s = jnp.einsum("nhqd,nhkd->nhqk", qh, kh) / math.sqrt(dh)
    a = jax.nn.softmax(s, axis=-1)
    ctx = jnp.einsum("nhqk,nhkd->nhqd", a, vh).transpose(0, 2, 1, 3).reshape(N, L, D)
    target = ctx @ p["wo"] + p["bo"]
    z = p["z"][0, 0]
    x1 = z * x + (1.0 - z) * target

    def ln(y):
        mu = jnp.mean(y, -1, keepdims=True)
        var = jnp.mean((y - mu) ** 2, -1, keepdims=True)
        return (y - mu) / jnp.sqrt(var + eps) * p["ln_g"][0] + p["ln_b"][0]

    x1 = ln(x1)
    h1 = jax.nn.relu(x1 @ p["w1"] + p["b1"])
    ffn = h1 @ p["w2"] + p["b2"]
    r = p["rand"][0, 0]
    return ln(r * x1 + (1.0 - r) * ffn)


if __name__ == "__main__":
    # small shapes consistent with (N, L, D)
    N, L, D = 8, 8, 32
    NUM_HEADS = 4
    EPS = 1e-12
    H = 2 * D

    key = jax.random.PRNGKey(0)
    ks = jax.random.split(key, 16)
    sc = 0.1
    params = {
        "wq": sc * jax.random.normal(ks[0], (D, D), jnp.float32),
        "bq": sc * jax.random.normal(ks[1], (1, D), jnp.float32),
        "wk": sc * jax.random.normal(ks[2], (D, D), jnp.float32),
        "bk": sc * jax.random.normal(ks[3], (1, D), jnp.float32),
        "wv": sc * jax.random.normal(ks[4], (D, D), jnp.float32),
        "bv": sc * jax.random.normal(ks[5], (1, D), jnp.float32),
        "wo": sc * jax.random.normal(ks[6], (D, D), jnp.float32),
        "bo": sc * jax.random.normal(ks[7], (1, D), jnp.float32),
        "z": jax.random.normal(ks[8], (1, 1), jnp.float32),      # torch.randn(1)
        "rand": jax.random.normal(ks[9], (1, 1), jnp.float32),   # torch.randn(1)
        "ln_g": jnp.ones((1, D), jnp.float32),
        "ln_b": jnp.zeros((1, D), jnp.float32),
        "w1": sc * jax.random.normal(ks[10], (D, H), jnp.float32),
        "b1": sc * jax.random.normal(ks[11], (1, H), jnp.float32),
        "w2": sc * jax.random.normal(ks[12], (H, D), jnp.float32),
        "b2": sc * jax.random.normal(ks[13], (1, D), jnp.float32),
    }
    x = jax.random.normal(ks[14], (N, L, D), jnp.float32)

    out = trm_enc_layer(x, params, num_heads=NUM_HEADS, eps=EPS)
    out = jax.block_until_ready(out)

    ref = _reference(x, params, num_heads=NUM_HEADS, eps=EPS)
    assert out.shape == (N, L, D)
    # bf16 MXU inputs (f32 accumulation) + approx reciprocal -> looser tolerance than pure f32.
    assert jnp.allclose(out, ref, rtol=3e-2, atol=3e-2), "mismatch vs JAX reference"

    print("KERNEL_OK")
</pallas_src>

<mosaic_0001>
module attributes {stable_mosaic.version = 11 : i64} {
  func.func @_trm_enc_kernel(%arg0: i32, %arg1: memref<8x8x32xf32, #tpu.memory_space<vmem>>, %arg2: memref<32x96xbf16, #tpu.memory_space<vmem>>, %arg3: memref<32x32xbf16, #tpu.memory_space<vmem>>, %arg4: memref<32x64xbf16, #tpu.memory_space<vmem>>, %arg5: memref<64x32xbf16, #tpu.memory_space<vmem>>, %arg6: memref<8x128xf32, #tpu.memory_space<vmem>>, %arg7: memref<2xf32, #tpu.memory_space<smem>>, %arg8: memref<8x8x32xf32, #tpu.memory_space<vmem>>) attributes {dimension_semantics = [#tpu.dimension_semantics<parallel>], iteration_bounds = array<i64: 1>, scalar_prefetch = 0 : i64, scratch_operands = 0 : i64, tpu.core_type = #tpu.core_type<tc>, window_params = [{transform_indices = @transform_0, window_bounds = array<i64: 8, 8, 32>}, {pipeline_mode = #tpu.pipeline_mode<synchronous>, transform_indices = @transform_1, window_bounds = array<i64: 32, 96>}, {pipeline_mode = #tpu.pipeline_mode<synchronous>, transform_indices = @transform_2, window_bounds = array<i64: 32, 32>}, {pipeline_mode = #tpu.pipeline_mode<synchronous>, transform_indices = @transform_3, window_bounds = array<i64: 32, 64>}, {pipeline_mode = #tpu.pipeline_mode<synchronous>, transform_indices = @transform_4, window_bounds = array<i64: 64, 32>}, {pipeline_mode = #tpu.pipeline_mode<synchronous>, transform_indices = @transform_5, window_bounds = array<i64: 8, 128>}, {transform_indices = @transform_6, window_bounds = array<i64: 2>}, {transform_indices = @transform_7, window_bounds = array<i64: 8, 8, 32>}]} {
    %c0 = arith.constant 0 : index
    %c0_0 = arith.constant 0 : index
    %c0_1 = arith.constant 0 : index
    %0 = vector.load %arg1[%c0, %c0_0, %c0_1] : memref<8x8x32xf32, #tpu.memory_space<vmem>>, vector<8x8x32xf32>
    %1 = vector.shape_cast %0 : vector<8x8x32xf32> to vector<64x32xf32>
    %2 = arith.truncf %1 : vector<64x32xf32> to vector<64x32xbf16>
    %c0_2 = arith.constant 0 : index
    %c0_3 = arith.constant 0 : index
    %3 = vector.load %arg6[%c0_2, %c0_3] : memref<8x128xf32, #tpu.memory_space<vmem>>, vector<8x128xf32>
    %4 = vector.extract_strided_slice %3 {offsets = [0, 0], sizes = [1, 96], strides = [1, 1]} : vector<8x128xf32> to vector<1x96xf32>
    %5 = vector.extract_strided_slice %3 {offsets = [1, 0], sizes = [1, 32], strides = [1, 1]} : vector<8x128xf32> to vector<1x32xf32>
    %6 = vector.extract_strided_slice %3 {offsets = [2, 0], sizes = [1, 32], strides = [1, 1]} : vector<8x128xf32> to vector<1x32xf32>
    %7 = vector.extract_strided_slice %3 {offsets = [3, 0], sizes = [1, 32], strides = [1, 1]} : vector<8x128xf32> to vector<1x32xf32>
    %8 = vector.extract_strided_slice %3 {offsets = [4, 0], sizes = [1, 64], strides = [1, 1]} : vector<8x128xf32> to vector<1x64xf32>
    %9 = vector.extract_strided_slice %3 {offsets = [5, 0], sizes = [1, 32], strides = [1, 1]} : vector<8x128xf32> to vector<1x32xf32>
    %c0_4 = arith.constant 0 : index
    %c0_5 = arith.constant 0 : index
    %10 = vector.load %arg2[%c0_4, %c0_5] : memref<32x96xbf16, #tpu.memory_space<vmem>>, vector<32x96xbf16>
    %cst = arith.constant dense<0.000000e+00> : vector<64x96xf32>
    %11 = tpu.matmul %2, %10, %cst {dimension_numbers = #tpu.dot_dimension_numbers<[1], [0], [0], [1], [0, 0, 1, 1], [], []>} : vector<64x32xbf16>, vector<32x96xbf16>, vector<64x96xf32> -> vector<64x96xf32>
    %12 = vector.broadcast %4 : vector<1x96xf32> to vector<64x96xf32>
    %13 = arith.addf %11, %12 : vector<64x96xf32>
    %14 = vector.extract_strided_slice %13 {offsets = [0, 0], sizes = [64, 32], strides = [1, 1]} : vector<64x96xf32> to vector<64x32xf32>
    %15 = vector.shape_cast %14 : vector<64x32xf32> to vector<8x8x32xf32>
    %16 = vector.extract_strided_slice %13 {offsets = [0, 32], sizes = [64, 32], strides = [1, 1]} : vector<64x96xf32> to vector<64x32xf32>
    %17 = vector.shape_cast %16 : vector<64x32xf32> to vector<8x8x32xf32>
    %18 = vector.extract_strided_slice %13 {offsets = [0, 64], sizes = [64, 32], strides = [1, 1]} : vector<64x96xf32> to vector<64x32xf32>
    %19 = vector.shape_cast %18 : vector<64x32xf32> to vector<8x8x32xf32>
    %20 = vector.extract_strided_slice %15 {offsets = [0, 0, 0], sizes = [8, 8, 8], strides = [1, 1, 1]} : vector<8x8x32xf32> to vector<8x8x8xf32>
    %21 = vector.extract_strided_slice %15 {offsets = [0, 0, 8], sizes = [8, 8, 8], strides = [1, 1, 1]} : vector<8x8x32xf32> to vector<8x8x8xf32>
    %22 = vector.extract_strided_slice %15 {offsets = [0, 0, 16], sizes = [8, 8, 8], strides = [1, 1, 1]} : vector<8x8x32xf32> to vector<8x8x8xf32>
    %23 = vector.extract_strided_slice %15 {offsets = [0, 0, 24], sizes = [8, 8, 8], strides = [1, 1, 1]} : vector<8x8x32xf32> to vector<8x8x8xf32>
    %24 = tpu.concatenate %20, %21, %22, %23 in 0 : vector<8x8x8xf32>, vector<8x8x8xf32>, vector<8x8x8xf32>, vector<8x8x8xf32> -> vector<32x8x8xf32>
    %25 = arith.truncf %24 : vector<32x8x8xf32> to vector<32x8x8xbf16>
    %26 = vector.extract_strided_slice %17 {offsets = [0, 0, 0], sizes = [8, 8, 8], strides = [1, 1, 1]} : vector<8x8x32xf32> to vector<8x8x8xf32>
    %27 = vector.extract_strided_slice %17 {offsets = [0, 0, 8], sizes = [8, 8, 8], strides = [1, 1, 1]} : vector<8x8x32xf32> to vector<8x8x8xf32>
    %28 = vector.extract_strided_slice %17 {offsets = [0, 0, 16], sizes = [8, 8, 8], strides = [1, 1, 1]} : vector<8x8x32xf32> to vector<8x8x8xf32>
    %29 = vector.extract_strided_slice %17 {offsets = [0, 0, 24], sizes = [8, 8, 8], strides = [1, 1, 1]} : vector<8x8x32xf32> to vector<8x8x8xf32>
    %30 = tpu.concatenate %26, %27, %28, %29 in 0 : vector<8x8x8xf32>, vector<8x8x8xf32>, vector<8x8x8xf32>, vector<8x8x8xf32> -> vector<32x8x8xf32>
    %31 = arith.truncf %30 : vector<32x8x8xf32> to vector<32x8x8xbf16>
    %32 = vector.extract_strided_slice %19 {offsets = [0, 0, 0], sizes = [8, 8, 8], strides = [1, 1, 1]} : vector<8x8x32xf32> to vector<8x8x8xf32>
    %33 = vector.extract_strided_slice %19 {offsets = [0, 0, 8], sizes = [8, 8, 8], strides = [1, 1, 1]} : vector<8x8x32xf32> to vector<8x8x8xf32>
    %34 = vector.extract_strided_slice %19 {offsets = [0, 0, 16], sizes = [8, 8, 8], strides = [1, 1, 1]} : vector<8x8x32xf32> to vector<8x8x8xf32>
    %35 = vector.extract_strided_slice %19 {offsets = [0, 0, 24], sizes = [8, 8, 8], strides = [1, 1, 1]} : vector<8x8x32xf32> to vector<8x8x8xf32>
    %36 = tpu.concatenate %32, %33, %34, %35 in 0 : vector<8x8x8xf32>, vector<8x8x8xf32>, vector<8x8x8xf32>, vector<8x8x8xf32> -> vector<32x8x8xf32>
    %37 = arith.truncf %36 : vector<32x8x8xf32> to vector<32x8x8xbf16>
    "tpu.trace_start"() <{level = 10 : i32, message = "bqd,bkd->bqk"}> : () -> ()
    %cst_6 = arith.constant dense<0.000000e+00> : vector<32x8x8xf32>
    %38 = tpu.matmul %25, %31, %cst_6 {dimension_numbers = #tpu.dot_dimension_numbers<[2], [2], [1], [1], [0, 0, 0, 1, 1, 1], [0], [0]>} : vector<32x8x8xbf16>, vector<32x8x8xbf16>, vector<32x8x8xf32> -> vector<32x8x8xf32>
    "tpu.trace_stop"() : () -> ()
    %cst_7 = arith.constant 0.353553385 : f32
    %39 = vector.broadcast %cst_7 : f32 to vector<32x8x8xf32>
    %40 = arith.mulf %38, %39 : vector<32x8x8xf32>
    %cst_8 = arith.constant dense<0xFF800000> : vector<32x8xf32>
    %41 = vector.multi_reduction <maximumf>, %40, %cst_8 [2] : vector<32x8x8xf32> to vector<32x8xf32>
    %42 = vector.shape_cast %41 : vector<32x8xf32> to vector<32x8x1xf32>
    %43 = vector.broadcast %42 : vector<32x8x1xf32> to vector<32x8x8xf32>
    %44 = arith.subf %40, %43 : vector<32x8x8xf32>
    %45 = math.exp %44 : vector<32x8x8xf32>
    %cst_9 = arith.constant dense<0.000000e+00> : vector<32x8xf32>
    %46 = vector.multi_reduction <add>, %45, %cst_9 [2] : vector<32x8x8xf32> to vector<32x8xf32>
    %47 = vector.shape_cast %46 : vector<32x8xf32> to vector<32x8x1xf32>
    %48 = tpu.reciprocal %47 {approx = true} : vector<32x8x1xf32> -> vector<32x8x1xf32>
    %49 = vector.broadcast %48 : vector<32x8x1xf32> to vector<32x8x8xf32>
    %50 = arith.mulf %45, %49 : vector<32x8x8xf32>
    %51 = arith.truncf %50 : vector<32x8x8xf32> to vector<32x8x8xbf16>
    "tpu.trace_start"() <{level = 10 : i32, message = "bqk,bkd->bqd"}> : () -> ()
    %cst_10 = arith.constant dense<0.000000e+00> : vector<32x8x8xf32>
    %52 = tpu.matmul %51, %37, %cst_10 {dimension_numbers = #tpu.dot_dimension_numbers<[2], [1], [1], [2], [0, 0, 0, 1, 1, 2], [0], [0]>} : vector<32x8x8xbf16>, vector<32x8x8xbf16>, vector<32x8x8xf32> -> vector<32x8x8xf32>
    "tpu.trace_stop"() : () -> ()
    %53 = vector.extract_strided_slice %52 {offsets = [0, 0, 0], sizes = [8, 8, 8], strides = [1, 1, 1]} : vector<32x8x8xf32> to vector<8x8x8xf32>
    %54 = vector.extract_strided_slice %52 {offsets = [8, 0, 0], sizes = [8, 8, 8], strides = [1, 1, 1]} : vector<32x8x8xf32> to vector<8x8x8xf32>
    %55 = vector.extract_strided_slice %52 {offsets = [16, 0, 0], sizes = [8, 8, 8], strides = [1, 1, 1]} : vector<32x8x8xf32> to vector<8x8x8xf32>
    %56 = vector.extract_strided_slice %52 {offsets = [24, 0, 0], sizes = [8, 8, 8], strides = [1, 1, 1]} : vector<32x8x8xf32> to vector<8x8x8xf32>
    %57 = tpu.concatenate %53, %54, %55, %56 in 2 : vector<8x8x8xf32>, vector<8x8x8xf32>, vector<8x8x8xf32>, vector<8x8x8xf32> -> vector<8x8x32xf32>
    %58 = vector.shape_cast %57 : vector<8x8x32xf32> to vector<64x32xf32>
    %59 = arith.truncf %58 : vector<64x32xf32> to vector<64x32xbf16>
    %c0_11 = arith.constant 0 : index
    %c0_12 = arith.constant 0 : index
    %60 = vector.load %arg3[%c0_11, %c0_12] : memref<32x32xbf16, #tpu.memory_space<vmem>>, vector<32x32xbf16>
    %cst_13 = arith.constant dense<0.000000e+00> : vector<64x32xf32>
    %61 = tpu.matmul %59, %60, %cst_13 {dimension_numbers = #tpu.dot_dimension_numbers<[1], [0], [0], [1], [0, 0, 1, 1], [], []>} : vector<64x32xbf16>, vector<32x32xbf16>, vector<64x32xf32> -> vector<64x32xf32>
    %62 = vector.broadcast %5 : vector<1x32xf32> to vector<64x32xf32>
    %63 = arith.addf %61, %62 : vector<64x32xf32>
    %c0_14 = arith.constant 0 : index
    %64 = memref.load %arg7[%c0_14] : memref<2xf32, #tpu.memory_space<smem>>
    %c1 = arith.constant 1 : index
    %65 = memref.load %arg7[%c1] : memref<2xf32, #tpu.memory_space<smem>>
    %cst_15 = arith.constant 1.000000e+00 : f32
    %66 = arith.subf %cst_15, %64 : f32
    %cst_16 = arith.constant 1.000000e+00 : f32
    %67 = arith.subf %cst_16, %65 : f32
    %68 = vector.shape_cast %6 : vector<1x32xf32> to vector<1x32xf32>
    %69 = vector.broadcast %68 : vector<1x32xf32> to vector<64x32xf32>
    %70 = vector.shape_cast %7 : vector<1x32xf32> to vector<1x32xf32>
    %71 = vector.broadcast %70 : vector<1x32xf32> to vector<64x32xf32>
    %72 = vector.broadcast %64 : f32 to vector<64x32xf32>
    %73 = arith.mulf %72, %1 : vector<64x32xf32>
    %74 = vector.broadcast %66 : f32 to vector<64x32xf32>
    %75 = arith.mulf %74, %63 : vector<64x32xf32>
    %76 = arith.addf %73, %75 : vector<64x32xf32>
    %cst_17 = arith.constant dense<0.000000e+00> : vector<64xf32>
    %77 = vector.multi_reduction <add>, %76, %cst_17 [1] : vector<64x32xf32> to vector<64xf32>
    %78 = vector.shape_cast %77 : vector<64xf32> to vector<64x1xf32>
    %cst_18 = arith.constant 3.200000e+01 : f32
    %79 = vector.broadcast %cst_18 : f32 to vector<64x1xf32>
    %80 = arith.divf %78, %79 : vector<64x1xf32>
    %81 = vector.broadcast %80 : vector<64x1xf32> to vector<64x32xf32>
    %82 = arith.subf %76, %81 : vector<64x32xf32>
    %83 = arith.mulf %82, %82 : vector<64x32xf32>
    %cst_19 = arith.constant dense<0.000000e+00> : vector<64xf32>
    %84 = vector.multi_reduction <add>, %83, %cst_19 [1] : vector<64x32xf32> to vector<64xf32>
    %85 = vector.shape_cast %84 : vector<64xf32> to vector<64x1xf32>
    %cst_20 = arith.constant 3.200000e+01 : f32
    %86 = vector.broadcast %cst_20 : f32 to vector<64x1xf32>
    %87 = arith.divf %85, %86 : vector<64x1xf32>
    %cst_21 = arith.constant 9.99999996E-13 : f32
    %88 = vector.broadcast %cst_21 : f32 to vector<64x1xf32>
    %89 = arith.addf %87, %88 : vector<64x1xf32>
    %90 = math.rsqrt %89 : vector<64x1xf32>
    %91 = vector.broadcast %90 : vector<64x1xf32> to vector<64x32xf32>
    %92 = arith.mulf %82, %91 : vector<64x32xf32>
    %93 = arith.mulf %92, %69 : vector<64x32xf32>
    %94 = arith.addf %93, %71 : vector<64x32xf32>
    %95 = arith.truncf %94 : vector<64x32xf32> to vector<64x32xbf16>
    %c0_22 = arith.constant 0 : index
    %c0_23 = arith.constant 0 : index
    %96 = vector.load %arg4[%c0_22, %c0_23] : memref<32x64xbf16, #tpu.memory_space<vmem>>, vector<32x64xbf16>
    %cst_24 = arith.constant dense<0.000000e+00> : vector<64x64xf32>
    %97 = tpu.matmul %95, %96, %cst_24 {dimension_numbers = #tpu.dot_dimension_numbers<[1], [0], [0], [1], [0, 0, 1, 1], [], []>} : vector<64x32xbf16>, vector<32x64xbf16>, vector<64x64xf32> -> vector<64x64xf32>
    %98 = vector.broadcast %8 : vector<1x64xf32> to vector<64x64xf32>
    %99 = arith.addf %97, %98 : vector<64x64xf32>
    %cst_25 = arith.constant 0.000000e+00 : f32
    %100 = vector.broadcast %cst_25 : f32 to vector<64x64xf32>
    %101 = arith.maximumf %99, %100 : vector<64x64xf32>
    %102 = arith.truncf %101 : vector<64x64xf32> to vector<64x64xbf16>
    %c0_26 = arith.constant 0 : index
    %c0_27 = arith.constant 0 : index
    %103 = vector.load %arg5[%c0_26, %c0_27] : memref<64x32xbf16, #tpu.memory_space<vmem>>, vector<64x32xbf16>
    %cst_28 = arith.constant dense<0.000000e+00> : vector<64x32xf32>
    %104 = tpu.matmul %102, %103, %cst_28 {dimension_numbers = #tpu.dot_dimension_numbers<[1], [0], [0], [1], [0, 0, 1, 1], [], []>} : vector<64x64xbf16>, vector<64x32xbf16>, vector<64x32xf32> -> vector<64x32xf32>
    %105 = vector.broadcast %9 : vector<1x32xf32> to vector<64x32xf32>
    %106 = arith.addf %104, %105 : vector<64x32xf32>
    %107 = vector.broadcast %65 : f32 to vector<64x32xf32>
    %108 = arith.mulf %107, %94 : vector<64x32xf32>
    %109 = vector.broadcast %67 : f32 to vector<64x32xf32>
    %110 = arith.mulf %109, %106 : vector<64x32xf32>
    %111 = arith.addf %108, %110 : vector<64x32xf32>
    %cst_29 = arith.constant dense<0.000000e+00> : vector<64xf32>
    %112 = vector.multi_reduction <add>, %111, %cst_29 [1] : vector<64x32xf32> to vector<64xf32>
    %113 = vector.shape_cast %112 : vector<64xf32> to vector<64x1xf32>
    %cst_30 = arith.constant 3.200000e+01 : f32
    %114 = vector.broadcast %cst_30 : f32 to vector<64x1xf32>
    %115 = arith.divf %113, %114 : vector<64x1xf32>
    %116 = vector.broadcast %115 : vector<64x1xf32> to vector<64x32xf32>
    %117 = arith.subf %111, %116 : vector<64x32xf32>
    %118 = arith.mulf %117, %117 : vector<64x32xf32>
    %cst_31 = arith.constant dense<0.000000e+00> : vector<64xf32>
    %119 = vector.multi_reduction <add>, %118, %cst_31 [1] : vector<64x32xf32> to vector<64xf32>
    %120 = vector.shape_cast %119 : vector<64xf32> to vector<64x1xf32>
    %cst_32 = arith.constant 3.200000e+01 : f32
    %121 = vector.broadcast %cst_32 : f32 to vector<64x1xf32>
    %122 = arith.divf %120, %121 : vector<64x1xf32>
    %cst_33 = arith.constant 9.99999996E-13 : f32
    %123 = vector.broadcast %cst_33 : f32 to vector<64x1xf32>
    %124 = arith.addf %122, %123 : vector<64x1xf32>
    %125 = math.rsqrt %124 : vector<64x1xf32>
    %126 = vector.broadcast %125 : vector<64x1xf32> to vector<64x32xf32>
    %127 = arith.mulf %117, %126 : vector<64x32xf32>
    %128 = arith.mulf %127, %69 : vector<64x32xf32>
    %129 = arith.addf %128, %71 : vector<64x32xf32>
    %130 = vector.shape_cast %129 : vector<64x32xf32> to vector<8x8x32xf32>
    %c0_34 = arith.constant 0 : index
    %c0_35 = arith.constant 0 : index
    %c0_36 = arith.constant 0 : index
    %131 = vector.load %arg8[%c0_34, %c0_35, %c0_36] : memref<8x8x32xf32, #tpu.memory_space<vmem>>, vector<8x8x32xf32>
    tpu.vector_store %arg8[%c0_34, %c0_35, %c0_36], %130 {strides = array<i32>} : memref<8x8x32xf32, #tpu.memory_space<vmem>>, vector<8x8x32xf32>,
    return
  }
  func.func @transform_0(%arg0: i32) -> (i32, i32, i32) {
    %c0_i32 = arith.constant 0 : i32
    %c0_i32_0 = arith.constant 0 : i32
    %c0_i32_1 = arith.constant 0 : i32
    return %arg0, %c0_i32, %c0_i32_0 : i32, i32, i32
  }
  func.func @transform_1(%arg0: i32) -> (i32, i32) {
    %c0_i32 = arith.constant 0 : i32
    %c0_i32_0 = arith.constant 0 : i32
    %c0_i32_1 = arith.constant 0 : i32
    return %c0_i32, %c0_i32_0 : i32, i32
  }
  func.func @transform_2(%arg0: i32) -> (i32, i32) {
    %c0_i32 = arith.constant 0 : i32
    %c0_i32_0 = arith.constant 0 : i32
    %c0_i32_1 = arith.constant 0 : i32
    return %c0_i32, %c0_i32_0 : i32, i32
  }
  func.func @transform_3(%arg0: i32) -> (i32, i32) {
    %c0_i32 = arith.constant 0 : i32
    %c0_i32_0 = arith.constant 0 : i32
    %c0_i32_1 = arith.constant 0 : i32
    return %c0_i32, %c0_i32_0 : i32, i32
  }
  func.func @transform_4(%arg0: i32) -> (i32, i32) {
    %c0_i32 = arith.constant 0 : i32
    %c0_i32_0 = arith.constant 0 : i32
    %c0_i32_1 = arith.constant 0 : i32
    return %c0_i32, %c0_i32_0 : i32, i32
  }
  func.func @transform_5(%arg0: i32) -> (i32, i32) {
    %c0_i32 = arith.constant 0 : i32
    %c0_i32_0 = arith.constant 0 : i32
    %c0_i32_1 = arith.constant 0 : i32
    return %c0_i32, %c0_i32_0 : i32, i32
  }
  func.func @transform_6(%arg0: i32) -> i32 {
    %c0_i32 = arith.constant 0 : i32
    %c0_i32_0 = arith.constant 0 : i32
    return %c0_i32 : i32
  }
  func.func @transform_7(%arg0: i32) -> (i32, i32, i32) {
    %c0_i32 = arith.constant 0 : i32
    %c0_i32_0 = arith.constant 0 : i32
    %c0_i32_1 = arith.constant 0 : i32
    return %arg0, %c0_i32, %c0_i32_0 : i32, i32, i32
  }
}

</mosaic_0001>

<bundles_post_ra>
// kernel: tpu_custom_call.1
= control target key start
LH: loop header
LB: loop body
LE: loop exit
PB: predicated region body
PF: predicated region fallthrough
CT: control target
= control target key end

     0   :  { %12 = vsyncpa [#allocation3], 0  ;;  %s4823_s0 = inlined_call_operand.hbm [shape: f32[8,8,32], index: 0, kind: input, shape index: {}]   ;;  %s4824_s1 = inlined_call_operand.vmem [shape: bf16[32,96], index: 1, kind: input, shape index: {}]   ;;  %s4825_s2 = inlined_call_operand.vmem [shape: bf16[32,32], index: 2, kind: input, shape index: {}]   ;;  %s4826_s3 = inlined_call_operand.vmem [shape: bf16[32,64], index: 3, kind: input, shape index: {}]   ;;  %s4827_s4 = inlined_call_operand.vmem [shape: bf16[64,32], index: 4, kind: input, shape index: {}]   ;;  %s4828_s5 = inlined_call_operand.hbm [shape: f32[8,128], index: 5, kind: input, shape index: {}]   ;;  %s4829_s6 = inlined_call_operand.vmem [shape: f32[2], index: 6, kind: input, shape index: {}]   ;;  %s4830_s7 = inlined_call_operand.hbm [shape: f32[8,8,32], index: 7, kind: output, shape index: {}]  }
   0x1   :  { %13 = vsyncpa [#allocation7], 0 }
   0x2   :  { %14 = vsyncpa [#allocation5], 0 }
   0x3   :  { %15 = vsyncpa [#allocation4], 0  ;;  %s20_s26 = sshll.u32 %s4823_s0, 4  ;;  %s3454_s27 = smov [#allocation2]   ;;  %s21_s26 = int_to_ptr.hbm [resolvable:$true] %s20_s26 }
   0x4   :  { %s22_s28 = sshll.u32 %s3454_s27, 4  ;;  %s42_s8 = sshll.u32 %s4828_s5, 4  ;;  %s23_s28 = int_to_ptr.vmem [resolvable:$true] %s22_s28  ;;  %s43_s8 = int_to_ptr.hbm [resolvable:$true] %s42_s8 }
   0x5   :  { %s3455_s9 = smov 128   ;;  %s3456_s10 = smov 8  }
   0x6   :  { %28 = dma.hbm_to_vmem [thread:$0]  %s21_s26, 1024, %s23_s28, [#allocation3], %s3455_s9, %s3455_s9, %s3456_s10  }
   0x7   :  { %s3457_s11 = smov [#allocation6]   ;;  %s53_s0 = sshll.u32 %s4829_s6, 4  ;;  %s54_s0 = int_to_ptr.vmem [resolvable:$true] %s53_s0 }
   0x8   :  { %s44_s12 = sshll.u32 %s3457_s11, 4  ;;  %s3458_s15 = smov [#allocation8]   ;;  %s45_s12 = int_to_ptr.vmem [resolvable:$true] %s44_s12 }
   0x9   :  { %47 = dma.hbm_to_vmem [thread:$0]  %s43_s8, 128, %s45_s12, [#allocation7]  }
   0xa   :  { %56 = dma.vmem_to_smem %s54_s0, 16, %s3458_s15, [#allocation5]  }
   0xb   :  { %3446 = dma.done.wait [#allocation3], 1024  }
   0xc   :  { %3447 = vsyncadd [#allocation3], 4294966272 }
   0xd   :  { %3448 = dma.done.wait [#allocation7], 128  }
   0xe   :  { %3449 = vsyncadd [#allocation7], 4294967168 }
   0xf   :  { %3450 = dma.done.wait [#allocation5], 16  }
  0x10   :  { %3451 = vsyncadd [#allocation5], 4294967280 }
  0x11   :  { %69 = sfence }
  0x12   :  { %v3046_v0 = vld [vmem:[%s4824_s1 + $0x8] sm:$0xff]  ;;  %v3045_v1 = vld [vmem:[%s4824_s1] sm:$0xff]  ;;  %v73_v4 = vld [vmem:[#allocation2 + $0x10] sm:$0xff]  ;;  %vm101_vm0 = vcmask 261120   ;;  %s3459_s1 = smov 96   ;;  %s3460_s6 = smov 104  }
  0x13   :  { %v71_v2 = vld [vmem:[#allocation2] sm:$0xff]  ;;  %120 = vmatpush.bf16.msra.mxu0 %v3046_v0  ;;  %3055 = vmatpush.bf16.msra.mxu3 %v3046_v0  ;;  %v72_v3 = vld [vmem:[#allocation2 + $0x8] sm:$0xff]  ;;  %v74_v5 = vld [vmem:[#allocation2 + $0x18] sm:$0xff]  ;;  %s3461_s19 = smov 112   ;;  %s3462_s20 = smov 120   ;;  %vm260_vm1 = vcmask 64512  }
  0x14   :  { %v79_v6 = vpack.c.bf16 %v72_v3, %v71_v2  ;;  %v80_v7 = vpack.c.bf16 %v74_v5, %v73_v4  ;;  %v75_v8 = vld [vmem:[#allocation2 + $0x20] sm:$0xff]  ;;  %v76_v9 = vld [vmem:[#allocation2 + $0x28] sm:$0xff]  ;;  %v77_v11 = vld [vmem:[#allocation2 + $0x30] sm:$0xff]  ;;  %s3463_s21 = smov 64   ;;  %vm1445_vm2 = vcmask 1043456   ;;  %s3464_s22 = smov 16  }
  0x15   :  { %v81_v10 = vpack.c.bf16 %v76_v9, %v75_v8  ;;  %v78_v12 = vld [vmem:[#allocation2 + $0x38] sm:$0xff]  ;;  %v83_v14 = vld [vmem:[#allocation6] sm:$0xff]  ;;  %s3465_s23 = smov 24   ;;  %vm2217_vm3 = vcmask 130048   ;;  %vm2226_vm4 = vcmask 195584   ;;  %s3467_s18 = smov [#allocation9]  }
  0x16   :  { %v82_v13 = vpack.c.bf16 %v78_v12, %v77_v11  ;;  %v88_v15 = vperm.slane %v83_v14, 0 }
  0x17   :  { %121 = vmatpush.bf16.msra.mxu0 %v3045_v1  ;;  %3056 = vmatpush.bf16.msra.mxu3 %v3045_v1 }
  0x1a   :  { %2932 = vmatmul.msk.bf16.vlgmr.msra.gmra.mxu0 %vm101_vm0, %v79_v6  ;;  %2933 = vmatmul.msk.bf16.vlgmr.msra.gmra.mxu3 %vm101_vm0, %v80_v7 }
  0x2a   :  { %2934 = vmatmul.msk.bf16.gmra.mxu3 %vm101_vm0, %v81_v10 }
  0x3a   :  { %2935 = vmatmul.msk.bf16.gmra.mxu3 %vm101_vm0, %v82_v13 }
  0x97   :  { %v123_v16 = vpop.f32.mrf.mxu0 }
  0x98   :  { %v124_v17 = vadd.f32 %v123_v16, %v88_v15 }
  0x9a   :  { %v3530_v18 = vpack.c.bf16 %v124_v17, %v124_v17 }
  0x9c   :  { %v256_v19 = vunpack.c.l.b16 %v3530_v18 }
  0x9d   :  { %v128_v20 = vpop.f32.mrf.mxu3 }
  0x9e   :  { %v129_v21 = vadd.f32 %v128_v20, %v88_v15  ;;  %v3533_v22 = vpack.c.b16 %v256_v19, %v256_v19 }
  0x9f   :  { %v125_v23 = vpop.f32.mrf.mxu0 }
  0xa0   :  { %v126_v24 = vadd.f32 %v125_v23, %v88_v15  ;;  %258 = vrot.lane.b32.xlu0 %v3533_v22, %s3459_s1  ;;  %v3537_v26 = vpack.c.bf16 %v129_v21, %v129_v21 }
  0xa2   :  { %v3081_v25 = vpack.i.bf16 %v126_v24, %v124_v17  ;;  %v3539_v27 = vpack.c.bf16 %v126_v24, %v126_v24  ;;  %v305_v29 = vunpack.c.l.b16 %v3537_v26 }
  0xa4   :  { %3082 = vrot.lane.b32.xlu1 %v3081_v25, %s3460_s6  ;;  %3077 = vrot.lane.b32.xlu2 %v3081_v25, %s3461_s19  ;;  %v281_v30 = vunpack.c.l.b16 %v3539_v27  ;;  %v3546_v31 = vpack.c.b16 %v305_v29, %v305_v29 }
  0xa5   :  { %v130_v28 = vpop.f32.mrf.mxu3 }
  0xa6   :  { %v3548_v32 = vpack.c.b16 %v281_v30, %v281_v30  ;;  %v131_v34 = vadd.f32 %v130_v28, %v88_v15 }
  0xa8   :  { %3072 = vrot.lane.b32.xlu0 %v3081_v25, %s3462_s20  ;;  %v3086_v35 = vpack.i.bf16 %v131_v34, %v129_v21  ;;  %v3554_v36 = vpack.c.bf16 %v131_v34, %v131_v34 }
  0xaa   :  { %v329_v40 = vunpack.c.l.b16 %v3554_v36 }
  0xac   :  { %307 = vrot.lane.b32.xlu1 %v3546_v31, %s3459_s1  ;;  %283 = vrot.lane.b32.xlu2 %v3548_v32, %s3459_s1  ;;  %v3560_v42 = vpack.c.b16 %v329_v40, %v329_v40 }
  0xad   :  { %v133_v33 = vpop.f32.mrf.mxu3 }
  0xae   :  { %v134_v38 = vadd.f32 %v133_v33, %v88_v15 }
  0xb0   :  { %v3562_v43 = vpack.c.bf16 %v134_v38, %v134_v38 }
  0xb2   :  { %v353_v46 = vunpack.c.l.b16 %v3562_v43 }
  0xb4   :  { %3087 = vrot.lane.b32.xlu1 %v3086_v35, %s3462_s20  ;;  %3092 = vrot.lane.b32.xlu2 %v3086_v35, %s3461_s19  ;;  %v3571_v48 = vpack.c.b16 %v353_v46, %v353_v46 }
  0xb5   :  { %v135_v37 = vpop.f32.mrf.mxu3 }
  0xb6   :  { %v136_v39 = vadd.f32 %v135_v37, %v88_v15 }
  0xb8   :  { %v3101_v41 = vpack.i.bf16 %v136_v39, %v134_v38  ;;  %v3564_v44 = vpack.c.bf16 %v136_v39, %v136_v39 }
  0xba   :  { %3102 = vrot.lane.b32.xlu0 %v3101_v41, %s3462_s20  ;;  %v377_v47 = vunpack.c.l.b16 %v3564_v44 }
  0xbc   :  { %3097 = vrot.lane.b32.xlu1 %v3086_v35, %s3460_s6  ;;  %331 = vrot.lane.b32.xlu2 %v3560_v42, %s3459_s1  ;;  %v3573_v49 = vpack.c.b16 %v377_v47, %v377_v47 }
  0xbd   :  { %v138_v45 = vpop.f32.mrf.mxu3 }
  0xbe   :  { %v139_v51 = vadd.f32 %v138_v45, %v88_v15 }
  0xc0   :  { %v3585_v55 = vpack.c.bf16 %v139_v51, %v139_v51 }
  0xc2   :  { %v401_v57 = vunpack.c.l.b16 %v3585_v55 }
  0xc4   :  { %355 = vrot.lane.b32.xlu1 %v3571_v48, %s3459_s1  ;;  %379 = vrot.lane.b32.xlu2 %v3573_v49, %s3459_s1  ;;  %v3595_v59 = vpack.c.b16 %v401_v57, %v401_v57 }
  0xc5   :  { %v140_v50 = vpop.f32.mrf.mxu3 }
  0xc6   :  { %v141_v52 = vadd.f32 %v140_v50, %v88_v15 }
  0xc8   :  { %v3579_v53 = vpack.i.bf16 %v141_v52, %v139_v51  ;;  %v3581_v54 = vpack.c.bf16 %v141_v52, %v141_v52 }
  0xca   :  { %3117 = vrot.lane.b32.xlu0 %v3579_v53, %s3462_s20  ;;  %v425_v56 = vunpack.c.l.b16 %v3581_v54  ;;  %s2909_s20 = sshll.u32 %s4830_s7, 4  ;;  %s2910_s20 = int_to_ptr.hbm [resolvable:$true] %s2909_s20 }
  0xcc   :  { %3107 = vrot.lane.b32.xlu1 %v3101_v41, %s3461_s19  ;;  %3112 = vrot.lane.b32.xlu2 %v3101_v41, %s3460_s6  ;;  %v3591_v58 = vpack.c.b16 %v425_v56, %v425_v56 }
  0xd2   :  { %427 = vrot.lane.b32.xlu0 %v3591_v58, %s3459_s1 }
  0xd4   :  { %403 = vrot.lane.b32.xlu1 %v3595_v59, %s3459_s1 }
  0xdc   :  { %3122 = vrot.lane.b32.xlu1 %v3579_v53, %s3461_s19 }
  0xfe   :  { %v3078_v60 = vpop.permute.xlu2 %3077 }
  0xff   :  { %v3079_v61 = vunpack.i.l.bf16 %v3078_v60  ;;  %v3080_v12 = vunpack.i.h.bf16 %v3078_v60 }
 0x101   :  { %v3601_v62 = vpack.c.bf16 %v3079_v61, %v3079_v61 }
 0x103   :  { %v641_v63 = vunpack.c.l.b16 %v3601_v62 }
 0x105   :  { %v3604_v0 = vpack.c.b16 %v641_v63, %v641_v63 }
 0x106   :  { %v284_v1 = vpop.permute.xlu2 %283 }
 0x107   :  { %643 = vrot.lane.b32.xlu2 %v3604_v0, %s3459_s1  ;;  %v289_v5 = vsel %vm260_vm1, %v284_v1, 0 }
 0x10e   :  { %v3093_v2 = vpop.permute.xlu2 %3092 }
 0x10f   :  { %v3094_v15 = vunpack.i.l.bf16 %v3093_v2 }
 0x111   :  { %v3631_v28 = vpack.c.bf16 %v3094_v15, %v3094_v15 }
 0x112   :  { %v259_v3 = vpop.permute.xlu0 %258 }
 0x113   :  { %v265_v4 = vsel %vm260_vm1, %v259_v3, 0  ;;  %v689_v33 = vunpack.c.l.b16 %v3631_v28 }
 0x114   :  { %274 = vmatpush.bf16.xpose.msrb.mxu0 %v265_v4 }
 0x115   :  { %v3647_v40 = vpack.c.b16 %v689_v33, %v689_v33 }
 0x116   :  { %v3610_v6 = vpop.permute.xlu1 %3082  ;;  %v332_v7 = vpop.permute.xlu2 %331 }
 0x117   :  { %v337_v8 = vsel %vm260_vm1, %v332_v7, 0 }
 0x118   :  { %346 = vmatpush.bf16.xpose.msra.mxu1 %v337_v8 }
 0x11a   :  { %v3073_v9 = vpop.permute.xlu0 %3072 }
 0x11b   :  { %v3075_v10 = vunpack.i.h.bf16 %v3073_v9  ;;  %v3074_v11 = vunpack.i.l.bf16 %v3073_v9  ;;  %2936 = vmatmul.msk.bf16.vlgmr.msrb.gmra.mxu0 %vm260_vm1, %v3530_v18  ;;  %v3625_v18 = vpack.c.bf16 %v3080_v12, %v3080_v12  ;;  %v3085_v12 = vunpack.i.h.bf16 %v3610_v6 }
 0x11c   :  { %298 = vmatpush.bf16.xpose.msra.mxu0 %v289_v5 }
 0x11d   :  { %v3615_v13 = vpack.c.bf16 %v3075_v10, %v3075_v10  ;;  %v3617_v14 = vpack.c.bf16 %v3074_v11, %v3074_v11  ;;  %v665_v29 = vunpack.c.l.b16 %v3625_v18 }
 0x11e   :  { %v308_v16 = vpop.permute.xlu1 %307  ;;  %v380_v17 = vpop.permute.xlu2 %379 }
 0x11f   :  { %v385_v19 = vsel %vm260_vm1, %v380_v17, 0  ;;  %2939 = vmatmul.msk.bf16.vlgmr.msra.gmra.mxu1 %vm260_vm1, %v3554_v36  ;;  %v313_v20 = vsel %vm260_vm1, %v308_v16, 0  ;;  %v473_v21 = vunpack.c.l.b16 %v3615_v13  ;;  %v449_v23 = vunpack.c.l.b16 %v3617_v14 }
 0x120   :  { %322 = vmatpush.bf16.xpose.msrb.mxu3 %v313_v20  ;;  %v3095_v36 = vunpack.i.h.bf16 %v3093_v2  ;;  %v3645_v39 = vpack.c.b16 %v665_v29, %v665_v29 }
 0x121   :  { %v3627_v24 = vpack.c.b16 %v473_v21, %v473_v21  ;;  %v3629_v25 = vpack.c.b16 %v449_v23, %v449_v23 }
 0x123   :  { %475 = vrot.lane.b32.xlu0 %v3627_v24, %s3459_s1  ;;  %451 = vrot.lane.b32.xlu1 %v3629_v25, %s3459_s1 }
 0x126   :  { %v3088_v30 = vpop.permute.xlu1 %3087 }
 0x127   :  { %v3090_v34 = vunpack.i.h.bf16 %v3088_v30  ;;  %v3089_v35 = vunpack.i.l.bf16 %v3088_v30  ;;  %2938 = vmatmul.msk.bf16.vlgmr.msrb.gmra.mxu3 %vm260_vm1, %v3537_v26  ;;  %v3656_v26 = vpack.c.bf16 %v3095_v36, %v3095_v36  ;;  %v3708_v30 = vpack.c.bf16 %v3085_v12, %v3085_v12 }
 0x128   :  { %394 = vmatpush.bf16.xpose.msra.mxu3 %v385_v19 }
 0x129   :  { %v3641_v37 = vpack.c.bf16 %v3090_v34, %v3090_v34  ;;  %v3643_v38 = vpack.c.bf16 %v3089_v35, %v3089_v35  ;;  %v713_v52 = vunpack.c.l.b16 %v3656_v26  ;;  %v3113_v34 = vpop.permute.xlu2 %3112  ;;  %v3084_v35 = vunpack.i.l.bf16 %v3610_v6 }
 0x12b   :  { %2937 = vmatmul.msk.bf16.vlgmr.msra.gmra.mxu0 %vm260_vm1, %v3539_v27  ;;  %667 = vrot.lane.b32.xlu0 %v3645_v39, %s3459_s1  ;;  %v497_v41 = vunpack.c.l.b16 %v3643_v38  ;;  %v521_v46 = vunpack.c.l.b16 %v3641_v37  ;;  %v3672_v57 = vpack.c.b16 %v713_v52, %v713_v52 }
 0x12c   :  { %691 = vrot.lane.b32.xlu1 %v3647_v40, %s3459_s1  ;;  %v3103_v47 = vpop.permute.xlu0 %3102 }
 0x12d   :  { %v3658_v45 = vpack.c.b16 %v497_v41, %v497_v41  ;;  %v3104_v27 = vunpack.i.l.bf16 %v3103_v47  ;;  %v3665_v51 = vpack.c.b16 %v521_v46, %v521_v46  ;;  %v3105_v11 = vunpack.i.h.bf16 %v3103_v47 }
 0x12e   :  { %v3661_v50 = vpop.permute.xlu1 %3097  ;;  %v3114_v46 = vunpack.i.l.bf16 %v3113_v34  ;;  %v857_v47 = vunpack.c.l.b16 %v3708_v30 }
 0x12f   :  { %499 = vrot.lane.b32.xlu2 %v3658_v45, %s3459_s1  ;;  %v3670_v56 = vpack.c.bf16 %v3104_v27, %v3104_v27  ;;  %v3706_v23 = vpack.c.bf16 %v3105_v11, %v3105_v11  ;;  %v3099_v36 = vunpack.i.l.bf16 %v3661_v50  ;;  %v3721_v27 = vpack.c.bf16 %v3084_v35, %v3084_v35 }
 0x130   :  { %v858_v6 = vpack.c.b16 %v857_v47, %v857_v47 }
 0x131   :  { %v545_v63 = vunpack.c.l.b16 %v3670_v56  ;;  %v569_v41 = vunpack.c.l.b16 %v3706_v23  ;;  %v3723_v52 = vpack.c.bf16 %v3099_v36, %v3099_v36 }
 0x133   :  { %523 = vrot.lane.b32.xlu0 %v3665_v51, %s3459_s1  ;;  %v3683_v3 = vpack.c.b16 %v545_v63, %v545_v63  ;;  %v3115_v63 = vunpack.i.h.bf16 %v3113_v34 }
 0x136   :  { %v356_v60 = vpop.permute.xlu1 %355 }
 0x137   :  { %2941 = vmatmul.msk.bf16.vlgmr.msra.gmra.mxu3 %vm260_vm1, %v3564_v44  ;;  %715 = vrot.lane.b32.xlu2 %v3672_v57, %s3459_s1  ;;  %v361_v61 = vsel %vm260_vm1, %v356_v60, 0  ;;  %v570_v60 = vpack.c.b16 %v569_v41, %v569_v41 }
 0x138   :  { %370 = vmatpush.bf16.xpose.msra.mxu2 %v361_v61  ;;  %v3725_v61 = vpack.c.bf16 %v3114_v46, %v3114_v46 }
 0x13c   :  { %v3680_v1 = vpop.permute.xlu0 %3117 }
 0x13d   :  { %v3119_v2 = vunpack.i.l.bf16 %v3680_v1 }
 0x13e   :  { %v3108_v4 = vpop.permute.xlu1 %3107 }
 0x13f   :  { %v3685_v5 = vpack.c.bf16 %v3119_v2, %v3119_v2  ;;  %v3110_v7 = vunpack.i.h.bf16 %v3108_v4  ;;  %v3109_v8 = vunpack.i.l.bf16 %v3108_v4  ;;  %2940 = vmatmul.msk.bf16.vlgmr.msra.gmra.mxu2 %vm260_vm1, %v3562_v43  ;;  %547 = vrot.lane.b32.xlu2 %v3683_v3, %s3459_s1  ;;  %v3100_v2 = vunpack.i.h.bf16 %v3661_v50 }
 0x140   :  { %v881_v4 = vunpack.c.l.b16 %v3723_v52 }
 0x141   :  { %v3691_v44 = vpack.c.bf16 %v3110_v7, %v3110_v7  ;;  %v3693_v9 = vpack.c.bf16 %v3109_v8, %v3109_v8  ;;  %v593_v10 = vunpack.c.l.b16 %v3685_v5  ;;  %v833_v7 = vunpack.c.l.b16 %v3721_v27 }
 0x142   :  { %v3739_v8 = vpack.c.bf16 %v3115_v63, %v3115_v63 }
 0x143   :  { %v737_v15 = vunpack.c.l.b16 %v3693_v9  ;;  %v761_v16 = vunpack.c.l.b16 %v3691_v44  ;;  %v3700_v43 = vpack.c.b16 %v593_v10, %v593_v10  ;;  %v3743_v10 = vpack.c.b16 %v881_v4, %v881_v4 }
 0x144   :  { %v428_v17 = vpop.permute.xlu0 %427  ;;  %v953_v50 = vunpack.c.l.b16 %v3739_v8 }
 0x145   :  { %v433_v19 = vsel %vm260_vm1, %v428_v17, 0  ;;  %v3702_v20 = vpack.c.b16 %v737_v15, %v737_v15  ;;  %v3704_v21 = vpack.c.b16 %v761_v16, %v761_v16 }
 0x146   :  { %v404_v29 = vpop.permute.xlu1 %403  ;;  %442 = vmatpush.bf16.xpose.msrb.mxu2 %v433_v19  ;;  %v3757_v15 = vpack.c.b16 %v953_v50, %v953_v50 }
 0x147   :  { %595 = vrot.lane.b32.xlu2 %v3700_v43, %s3459_s1  ;;  %739 = vrot.lane.b32.xlu0 %v3702_v20, %s3459_s1  ;;  %v409_v33 = vsel %vm260_vm1, %v404_v29, 0 }
 0x148   :  { %763 = vrot.lane.b32.xlu1 %v3704_v21, %s3459_s1  ;;  %418 = vmatpush.bf16.xpose.msrb.mxu1 %v409_v33 }
 0x14f   :  { %2942 = vmatmul.msk.bf16.vlgmr.msrb.gmra.mxu1 %vm260_vm1, %v3585_v55  ;;  %2943 = vmatmul.msk.bf16.vlgmr.msrb.gmra.mxu2 %vm260_vm1, %v3581_v54  ;;  %v929_v55 = vunpack.c.l.b16 %v3725_v61  ;;  %v3741_v54 = vpack.c.bf16 %v3100_v2, %v3100_v2 }
 0x150   :  { %3127 = vrot.lane.b32.xlu2 %v3579_v53, %s3460_s6  ;;  %571 = vrot.lane.b32.xlu0 %v570_v60, %s3459_s1  ;;  %v3745_v53 = vpack.c.b16 %v833_v7, %v833_v7 }
 0x151   :  { %859 = vrot.lane.b32.xlu1 %v858_v6, %s3459_s1  ;;  %v3747_v11 = vpack.c.b16 %v929_v55, %v929_v55  ;;  %v905_v12 = vunpack.c.l.b16 %v3741_v54 }
 0x153   :  { %4832 = vst [vmem:[#allocation14_spill] sm:$0xff] %v3747_v11  ;;  %v3759_v16 = vpack.c.b16 %v905_v12, %v905_v12 }
 0x158   :  { %883 = vrot.lane.b32.xlu2 %v3743_v10, %s3459_s1  ;;  %835 = vrot.lane.b32.xlu0 %v3745_v53, %s3459_s1 }
 0x159   :  { %931 = vrot.lane.b32.xlu1 %v3747_v11, %s3459_s1 }
 0x160   :  { %955 = vrot.lane.b32.xlu2 %v3757_v15, %s3459_s1  ;;  %907 = vrot.lane.b32.xlu0 %v3759_v16, %s3459_s1 }
 0x161   :  { %1440 = vrot.lane.b32.xlu1 %v3533_v22, %s3463_s21  ;;  %v3123_v22 = vpop.permute.xlu1 %3122 }
 0x168   :  { %1462 = vrot.lane.b32.xlu2 %v3548_v32, %s3463_s21  ;;  %1483 = vrot.lane.b32.xlu0 %v3546_v31, %s3463_s21  ;;  %v644_v31 = vpop.permute.xlu2 %643  ;;  %v3124_v32 = vunpack.i.l.bf16 %v3123_v22 }
 0x169   :  { %1546 = vrot.lane.b32.xlu1 %v3573_v49, %s3463_s21  ;;  %v3120_v49 = vunpack.i.h.bf16 %v3680_v1  ;;  %v649_v36 = vsel %vm260_vm1, %v644_v31, 0 }
 0x170   :  { %1525 = vrot.lane.b32.xlu2 %v3571_v48, %s3463_s21  ;;  %1504 = vrot.lane.b32.xlu0 %v3560_v42, %s3463_s21  ;;  %v3790_v42 = vpack.c.bf16 %v3124_v32, %v3124_v32 }
 0x171   :  { %1609 = vrot.lane.b32.xlu1 %v3629_v25, %s3463_s21 }
 0x178   :  { %1567 = vrot.lane.b32.xlu2 %v3595_v59, %s3463_s21  ;;  %1588 = vrot.lane.b32.xlu0 %v3591_v58, %s3463_s21  ;;  %v785_v59 = vunpack.c.l.b16 %v3790_v42 }
 0x179   :  { %1714 = vrot.lane.b32.xlu1 %v570_v60, %s3463_s21 }
 0x17a   :  { %v3803_v25 = vpack.c.b16 %v785_v59, %v785_v59 }
 0x180   :  { %1630 = vrot.lane.b32.xlu2 %v3627_v24, %s3463_s21  ;;  %1672 = vrot.lane.b32.xlu0 %v3665_v51, %s3463_s21  ;;  %v3801_v24 = vpack.c.bf16 %v3120_v49, %v3120_v49 }
 0x181   :  { %1777 = vrot.lane.b32.xlu1 %v3604_v0, %s3463_s21  ;;  %v3125_v0 = vunpack.i.h.bf16 %v3123_v22 }
 0x182   :  { %v617_v1 = vunpack.c.l.b16 %v3801_v24 }
 0x184   :  { %v618_v29 = vpack.c.b16 %v617_v1, %v617_v1 }
 0x188   :  { %1651 = vrot.lane.b32.xlu2 %v3658_v45, %s3463_s21  ;;  %1693 = vrot.lane.b32.xlu0 %v3683_v3, %s3463_s21  ;;  %v3805_v45 = vpack.c.bf16 %v3125_v0, %v3125_v0 }
 0x189   :  { %1882 = vrot.lane.b32.xlu1 %v3704_v21, %s3463_s21  ;;  %v500_v48 = vpop.permute.xlu2 %499 }
 0x18a   :  { %v505_v58 = vsel %vm260_vm1, %v500_v48, 0  ;;  %v809_v3 = vunpack.c.l.b16 %v3805_v45 }
 0x18b   :  { %514 = vmatpush.bf16.xpose.msra.mxu2 %v505_v58 }
 0x18c   :  { %v810_v33 = vpack.c.b16 %v809_v3, %v809_v3 }
 0x190   :  { %1840 = vrot.lane.b32.xlu2 %v3672_v57, %s3463_s21  ;;  %787 = vrot.lane.b32.xlu0 %v3803_v25, %s3459_s1 }
 0x191   :  { %1966 = vrot.lane.b32.xlu1 %v858_v6, %s3463_s21  ;;  %v3812_v51 = vpop.permute.xlu2 %715 }
 0x192   :  { %2946 = vmatmul.msk.bf16.vlgmr.msra.gmra.mxu2 %vm260_vm1, %v3643_v38 }
 0x195   :  { %v476_v17 = vpop.permute.xlu0 %475  ;;  %v452_v19 = vpop.permute.xlu1 %451 }
 0x196   :  { %v481_v21 = vsel %vm260_vm1, %v476_v17, 0  ;;  %v457_v57 = vsel %vm260_vm1, %v452_v19, 0 }
 0x197   :  { %490 = vmatpush.bf16.xpose.msra.mxu1 %v481_v21  ;;  %466 = vmatpush.bf16.xpose.msrb.mxu3 %v457_v57 }
 0x198   :  { %1756 = vrot.lane.b32.xlu2 %v618_v29, %s3463_s21  ;;  %v276_v34 = vpop.f32.mrf.mxu0 }
 0x199   :  { %811 = vrot.lane.b32.xlu1 %v810_v33, %s3459_s1  ;;  %v548_v38 = vpop.permute.xlu2 %547  ;;  %v3875_v57 = vmul.f32 0.35355338, %v276_v34 }
 0x19a   :  { %v553_v35 = vsel %vm260_vm1, %v548_v38, 0 }
 0x19b   :  { %562 = vmatpush.bf16.xpose.msrb.mxu0 %v553_v35 }
 0x19c   :  { %v3824_v41 = vpop.f32.mrf.mxu1 }
 0x19d   :  { %v668_v46 = vpop.permute.xlu0 %667 }
 0x19e   :  { %2944 = vmatmul.msk.bf16.vlgmr.msrb.gmra.mxu3 %vm260_vm1, %v3617_v14  ;;  %2945 = vmatmul.msk.bf16.vlgmr.msra.gmra.mxu1 %vm260_vm1, %v3615_v13  ;;  %v692_v47 = vpop.permute.xlu1 %691 }
 0x19f   :  { %v697_v2 = vsel %vm260_vm1, %v692_v47, 0 }
 0x1a0   :  { %1924 = vrot.lane.b32.xlu2 %v810_v33, %s3463_s21  ;;  %v278_v60 = vpop.f32.mrf.mxu0 }
 0x1a1   :  { %1987 = vrot.lane.b32.xlu1 %v3743_v10, %s3463_s21  ;;  %v596_v6 = vpop.permute.xlu2 %595 }
 0x1a2   :  { %v601_v63 = vsel %vm260_vm1, %v596_v6, 0  ;;  %2948 = vmatmul.msk.bf16.vlgmr.msrb.gmra.mxu0 %vm260_vm1, %v3670_v56 }
 0x1a3   :  { %658 = vmatpush.bf16.xpose.msra.mxu0 %v649_v36  ;;  %610 = vmatpush.bf16.xpose.msrb.mxu2 %v601_v63 }
 0x1a4   :  { %v350_v14 = vpop.f32.mrf.mxu1 }
 0x1a5   :  { %v524_v4 = vpop.permute.xlu0 %523 }
 0x1a6   :  { %v529_v13 = vsel %vm260_vm1, %v524_v4, 0 }
 0x1a7   :  { %538 = vmatpush.bf16.xpose.msra.mxu3 %v529_v13 }
 0x1a8   :  { %v3838_v7 = vpop.f32.mrf.mxu0 }
 0x1aa   :  { %v3128_v55 = vpop.permute.xlu2 %3127  ;;  %v3840_v50 = vpop.f32.mrf.mxu3  ;;  %2950 = vmatmul.msk.bf16.vlgmr.msrb.gmra.mxu2 %vm260_vm1, %v3685_v5 }
 0x1ab   :  { %706 = vmatpush.bf16.xpose.msra.mxu2 %v697_v2  ;;  %v3130_v10 = vunpack.i.h.bf16 %v3128_v55  ;;  %v3129_v12 = vunpack.i.l.bf16 %v3128_v55  ;;  %v3902_v13 = vmul.f32 0.35355338, %v3840_v50 }
 0x1ad   :  { %v3844_v56 = vpack.c.bf16 %v3130_v10, %v3130_v10  ;;  %v3846_v22 = vpack.c.bf16 %v3129_v12, %v3129_v12  ;;  %v1062_v50 = vsel %vm260_vm1, %v3902_v13, -inf }
 0x1ae   :  { %2947 = vmatmul.msk.bf16.vlgmr.msra.gmra.mxu3 %vm260_vm1, %v3641_v37 }
 0x1af   :  { %v1001_v31 = vunpack.c.l.b16 %v3844_v56  ;;  %v977_v32 = vunpack.c.l.b16 %v3846_v22 }
 0x1b0   :  { %v302_v48 = vpop.f32.mrf.mxu0 }
 0x1b1   :  { %v3852_v49 = vpack.c.b16 %v977_v32, %v977_v32  ;;  %v3854_v58 = vpack.c.b16 %v1001_v31, %v1001_v31 }
 0x1b2   :  { %v326_v59 = vpop.f32.mrf.mxu3  ;;  %2952 = vmatmul.msk.bf16.vlgmr.msra.gmra.mxu0 %vm260_vm1, %v3601_v62  ;;  %v3868_v3 = vpop.permute.xlu2 %883 }
 0x1b3   :  { %979 = vrot.lane.b32.xlu0 %v3852_v49, %s3459_s1  ;;  %1003 = vrot.lane.b32.xlu1 %v3854_v58, %s3459_s1 }
 0x1b9   :  { %v740_v37 = vpop.permute.xlu0 %739 }
 0x1ba   :  { %v745_v5 = vsel %vm260_vm1, %v740_v37, 0  ;;  %v764_v0 = vpop.permute.xlu1 %763  ;;  %2954 = vmatmul.msk.bf16.vlgmr.msra.gmra.mxu2 %vm260_vm1, %v3631_v28  ;;  %v3865_v1 = vpop.f32.mrf.mxu3  ;;  %v673_v28 = vsel %vm260_vm1, %v668_v46, 0 }
 0x1bb   :  { %619 = vrot.lane.b32.xlu0 %v618_v29, %s3459_s1  ;;  %754 = vmatpush.bf16.xpose.msrb.mxu0 %v745_v5  ;;  %v1056_v29 = vsel %vm260_vm1, %v3875_v57, -inf  ;;  %v956_v34 = vpop.permute.xlu2 %955  ;;  %s2907_s1 = sshll.u32 %s3467_s18, 4  ;;  %s2908_s1 = int_to_ptr.vmem [resolvable:$true] %s2907_s1 }
 0x1bc   :  { %v961_v5 = vsel %vm260_vm1, %v956_v34, 0 }
 0x1c2   :  { %v572_v62 = vpop.permute.xlu0 %571  ;;  %2956 = vmatmul.msk.bf16.vlgmr.msrb.gmra.mxu0 %vm260_vm1, %v3693_v9  ;;  %v372_v21 = vpop.f32.mrf.mxu2  ;;  %v769_v9 = vsel %vm260_vm1, %v764_v0, 0 }
 0x1c3   :  { %v577_v17 = vsel %vm260_vm1, %v572_v62, 0  ;;  %v860_v19 = vpop.permute.xlu1 %859  ;;  %1735 = vrot.lane.b32.xlu0 %v3700_v43, %s3463_s21  ;;  %v398_v33 = vpop.f32.mrf.mxu3  ;;  %v3887_v43 = vmul.f32 0.35355338, %v3824_v41 }
 0x1c4   :  { %586 = vmatpush.bf16.xpose.msrb.mxu1 %v577_v17  ;;  %v1463_v4 = vpop.permute.xlu2 %1462 }
 0x1c5   :  { %v1065_v6 = vsel %vm260_vm1, %v3887_v43, -inf  ;;  %v1468_v62 = vsel %vm1445_vm2, %v1463_v4, 0 }
 0x1c9   :  { %1057 = vmax.xlane.f32.xlu2 %v1056_v29  ;;  %v3959_v29 = vmul.f32 0.35355338, %v3838_v7 }
 0x1ca   :  { %v836_v38 = vpop.permute.xlu0 %835  ;;  %v374_v47 = vpop.f32.mrf.mxu2 }
 0x1cb   :  { %v841_v35 = vsel %vm260_vm1, %v836_v38, 0  ;;  %v932_v36 = vpop.permute.xlu1 %931  ;;  %1798 = vrot.lane.b32.xlu0 %v3645_v39, %s3463_s21  ;;  %2949 = vmatmul.msk.bf16.vlgmr.msrb.gmra.mxu1 %vm260_vm1, %v3706_v23  ;;  %v3898_v23 = vmul.f32 0.35355338, %v372_v21 }
 0x1cc   :  { %682 = vmatpush.bf16.xpose.msra.mxu1 %v673_v28  ;;  %v937_v46 = vsel %vm260_vm1, %v932_v36, 0  ;;  %850 = vmatpush.bf16.xpose.msra.mxu0 %v841_v35  ;;  %v420_v60 = vpop.f32.mrf.mxu1  ;;  %v1526_v31 = vpop.permute.xlu2 %1525 }
 0x1cd   :  { %v1068_v55 = vsel %vm260_vm1, %v3898_v23, -inf  ;;  %v3917_v32 = vmul.f32 0.35355338, %v420_v60 }
 0x1d1   :  { %1066 = vmax.xlane.f32.xlu2 %v1065_v6 }
 0x1d2   :  { %v3892_v63 = vpop.permute.xlu0 %907  ;;  %v444_v2 = vpop.f32.mrf.mxu2 }
 0x1d3   :  { %v1441_v39 = vpop.permute.xlu1 %1440  ;;  %1819 = vrot.lane.b32.xlu0 %v3647_v40, %s3463_s21  ;;  %2960 = vmatmul.msk.bf16.vlgmr.msra.gmra.mxu0 %vm260_vm1, %v3721_v27  ;;  %v865_v40 = vsel %vm260_vm1, %v860_v19, 0  ;;  %v3913_v27 = vmul.f32 0.35355338, %v444_v2 }
 0x1d4   :  { %778 = vmatpush.bf16.xpose.msrb.mxu1 %v769_v9  ;;  %946 = vmatpush.bf16.xpose.msrb.mxu0 %v937_v46  ;;  %v1447_v41 = vsel %vm1445_vm2, %v1441_v39, 0  ;;  %v422_v14 = vpop.f32.mrf.mxu1  ;;  %v1568_v19 = vpop.permute.xlu2 %1567 }
 0x1d5   :  { %v1077_v48 = vsel %vm260_vm1, %v3913_v27, -inf }
 0x1d9   :  { %1069 = vmax.xlane.f32.xlu2 %v1068_v55 }
 0x1da   :  { %v3906_v10 = vpop.permute.xlu0 %1483  ;;  %v446_v12 = vpop.f32.mrf.mxu2 }
 0x1db   :  { %1861 = vrot.lane.b32.xlu0 %v3702_v20, %s3463_s21  ;;  %2953 = vmatmul.msk.bf16.vlgmr.msra.gmra.mxu1 %vm260_vm1, %v3625_v18  ;;  %v1531_v20 = vsel %vm1445_vm2, %v1526_v31, 0  ;;  %v1074_v18 = vsel %vm260_vm1, %v3917_v32, -inf  ;;  %v1547_v0 = vpop.permute.xlu1 %1546 }
 0x1dc   :  { %1456 = vmatpush.bf16.msra.mxu0 %v1447_v41  ;;  %874 = vmatpush.bf16.xpose.msra.mxu1 %v865_v40  ;;  %v1552_v28 = vsel %vm1445_vm2, %v1547_v0, 0 }
 0x1dd   :  { %1063 = vmax.xlane.f32.xlu1 %v1062_v50  ;;  %v1489_v50 = vsel %vm1445_vm2, %v3906_v10, 0  ;;  %v721_v10 = vsel %vm260_vm1, %v3812_v51, 0 }
 0x1e1   :  { %1078 = vmax.xlane.f32.xlu2 %v1077_v48 }
 0x1e2   :  { %v3921_v59 = vpop.permute.xlu0 %1504 }
 0x1e3   :  { %1903 = vrot.lane.b32.xlu0 %v3803_v25, %s3463_s21  ;;  %2964 = vmatmul.msk.bf16.vlgmr.msrb.gmra.mxu0 %vm260_vm1, %v3725_v61  ;;  %v3944_v17 = vpop.permute.xlu1 %1609 }
 0x1e4   :  { %1540 = vmatpush.bf16.msrb.mxu0 %v1531_v20 }
 0x1e5   :  { %1075 = vmax.xlane.f32.xlu1 %v1074_v18 }
 0x1ea   :  { %v3930_v37 = vpop.permute.xlu0 %1588 }
 0x1eb   :  { %1945 = vrot.lane.b32.xlu0 %v3745_v53, %s3463_s21  ;;  %2957 = vmatmul.msk.bf16.vlgmr.msrb.gmra.mxu1 %vm260_vm1, %v3691_v44  ;;  %v889_v44 = vsel %vm260_vm1, %v3868_v3, 0  ;;  %v3950_v33 = vpop.permute.xlu1 %1714  ;;  %v1059_v3 = vsel %vm260_vm1, %v3959_v29, -inf }
 0x1ec   :  { %970 = vmatpush.bf16.xpose.msrb.mxu1 %v961_v5 }
 0x1f2   :  { %v3937_v25 = vpop.permute.xlu0 %1672 }
 0x1f3   :  { %v3963_v38 = vpop.permute.xlu1 %1777 }
 0x1fa   :  { %v3939_v61 = vpop.permute.xlu0 %1693 }
 0x1fb   :  { %2961 = vmatmul.msk.bf16.vlgmr.msra.gmra.mxu1 %vm260_vm1, %v3708_v30  ;;  %v3956_v30 = vpop.permute.xlu2 %1630 }
 0x1fc   :  { %1477 = vmatpush.bf16.msra.mxu1 %v1468_v62  ;;  %v1573_v62 = vsel %vm1445_vm2, %v1568_v19, 0 }
 0x202   :  { %v788_v21 = vpop.permute.xlu0 %787 }
 0x203   :  { %v793_v53 = vsel %vm260_vm1, %v788_v21, 0  ;;  %v3965_v35 = vpop.permute.xlu2 %1651 }
 0x204   :  { %802 = vmatpush.bf16.xpose.msrb.mxu2 %v793_v53 }
 0x20b   :  { %2958 = vmatmul.msk.bf16.vlgmr.msrb.gmra.mxu2 %vm260_vm1, %v3790_v42  ;;  %2965 = vmatmul.msk.bf16.vlgmr.msrb.gmra.mxu1 %vm260_vm1, %v3739_v8  ;;  %v3970_v42 = vmul.f32 0.35355338, %v3865_v1  ;;  %v3982_v1 = vpop.permute.xlu1 %1882  ;;  %v3984_v39 = vpop.permute.xlu2 %1840 }
 0x20c   :  { %898 = vmatpush.bf16.xpose.msra.mxu2 %v889_v44  ;;  %1561 = vmatpush.bf16.msrb.mxu1 %v1552_v28 }
 0x20d   :  { %v1071_v34 = vsel %vm260_vm1, %v3970_v42, -inf }
 0x213   :  { %v3997_v48 = vpop.permute.xlu1 %1966  ;;  %v3999_v18 = vpop.permute.xlu2 %1756 }
 0x214   :  { %4833 = vst [vmem:[#allocation15_spill] sm:$0xff] %v3997_v48 }
 0x215   :  { %1060 = vmax.xlane.f32.xlu0 %v1059_v3  ;;  %v516_v9 = vpop.f32.mrf.mxu2 }
 0x216   :  { %v3967_v36 = vmul.f32 0.35355338, %v516_v9 }
 0x218   :  { %v1086_v8 = vsel %vm260_vm1, %v3967_v36, -inf }
 0x219   :  { %1087 = vmax.xlane.f32.xlu2 %v1086_v8 }
 0x21b   :  { %2962 = vmatmul.msk.bf16.vlgmr.msra.gmra.mxu2 %vm260_vm1, %v3723_v52  ;;  %v492_v7 = vpop.f32.mrf.mxu1  ;;  %v812_v28 = vpop.permute.xlu1 %811 }
 0x21c   :  { %v3976_v47 = vmul.f32 0.35355338, %v492_v7  ;;  %v4011_v3 = vpop.permute.xlu2 %1924  ;;  %v817_v19 = vsel %vm260_vm1, %v812_v28, 0 }
 0x21d   :  { %1072 = vmax.xlane.f32.xlu0 %v1071_v34  ;;  %v518_v46 = vpop.f32.mrf.mxu2  ;;  %4834 = vst [vmem:[#allocation16_spill] sm:$0xff] %v4011_v3 }
 0x21e   :  { %v1083_v60 = vsel %vm260_vm1, %v3976_v47, -inf }
 0x21f   :  { %v564_v6 = vpop.f32.mrf.mxu0  ;;  %1084 = vmax.xlane.f32.xlu1 %v1083_v60 }
 0x220   :  { %v3986_v41 = vmul.f32 0.35355338, %v564_v6 }
 0x221   :  { %v468_v2 = vpop.f32.mrf.mxu3 }
 0x222   :  { %v3988_v52 = vmul.f32 0.35355338, %v468_v2  ;;  %v1092_v12 = vsel %vm260_vm1, %v3986_v41, -inf }
 0x223   :  { %v494_v14 = vpop.f32.mrf.mxu1  ;;  %v4021_v6 = vpop.permute.xlu1 %1987 }
 0x224   :  { %v1080_v4 = vsel %vm260_vm1, %v3988_v52, -inf  ;;  %4835 = vst [vmem:[#allocation17_spill] sm:$0xff] %v4021_v6 }
 0x225   :  { %v980_v55 = vpop.permute.xlu0 %979  ;;  %1081 = vmax.xlane.f32.xlu0 %v1080_v4  ;;  %v913_v4 = vsel %vm260_vm1, %v3892_v63, 0 }
 0x226   :  { %v985_v40 = vsel %vm260_vm1, %v980_v55, 0 }
 0x227   :  { %994 = vmatpush.bf16.xpose.msrb.mxu2 %v985_v40  ;;  %v566_v31 = vpop.f32.mrf.mxu0  ;;  %1093 = vmax.xlane.f32.xlu1 %v1092_v12 }
 0x229   :  { %v470_v20 = vpop.f32.mrf.mxu3 }
 0x22b   :  { %v1004_v12 = vpop.permute.xlu1 %1003 }
 0x22d   :  { %v620_v5 = vpop.permute.xlu0 %619  ;;  %v4001_v0 = vpop.f32.mrf.mxu2 }
 0x22e   :  { %v625_v21 = vsel %vm260_vm1, %v620_v5, 0  ;;  %2966 = vmatmul.msk.bf16.vlgmr.msrb.gmra.mxu2 %vm260_vm1, %v3846_v22 }
 0x22f   :  { %1498 = vmatpush.bf16.msra.mxu2 %v1489_v50  ;;  %634 = vmatpush.bf16.xpose.msrb.mxu3 %v625_v21  ;;  %v4009_v53 = vpop.f32.mrf.mxu0 }
 0x231   :  { %v540_v44 = vpop.f32.mrf.mxu3 }
 0x232   :  { %v4035_v20 = vmul.f32 0.35355338, %v540_v44 }
 0x233   :  { %1582 = vmatpush.bf16.msrb.mxu2 %v1573_v62 }
 0x234   :  { %v1089_v28 = vsel %vm260_vm1, %v4035_v20, -inf }
 0x235   :  { %v614_v9 = vpop.f32.mrf.mxu2 }
 0x236   :  { %2951 = vmatmul.msk.bf16.vlgmr.msrb.gmra.mxu3 %vm260_vm1, %v3801_v24 }
 0x237   :  { %730 = vmatpush.bf16.xpose.msra.mxu3 %v721_v10  ;;  %v662_v22 = vpop.f32.mrf.mxu0 }
 0x239   :  { %v542_v8 = vpop.f32.mrf.mxu3 }
 0x23a   :  { %v1009_v8 = vsel %vm260_vm1, %v1004_v12, 0 }
 0x23c   :  { %v1058_v7 = vpop.xlane.xlu2 %1057 }
 0x23d   :  { %v1152_v51 = vsub.f32 %v3875_v57, %v1058_v7  ;;  %v4017_v34 = vpop.f32.mrf.mxu2 }
 0x23f   :  { %826 = vmatpush.bf16.xpose.msrb.mxu3 %v817_v19  ;;  %v1184_v46 = vmul.f32 1.442695, %v1152_v51  ;;  %v4019_v60 = vpop.f32.mrf.mxu0 }
 0x241   :  { %3191 = vpow2.f32 %v1184_v46 }
 0x244   :  { %v1067_v2 = vpop.xlane.xlu2 %1066 }
 0x245   :  { %v710_v14 = vpop.f32.mrf.mxu2  ;;  %v1155_v44 = vsub.f32 %v3887_v43, %v1067_v2 }
 0x246   :  { %2955 = vmatmul.msk.bf16.vlgmr.msra.gmra.mxu3 %vm260_vm1, %v3656_v26  ;;  %v4037_v26 = vpop.permute.xlu0 %1735 }
 0x247   :  { %v4027_v24 = vpop.eup %3191  ;;  %922 = vmatpush.bf16.xpose.msra.mxu3 %v913_v4  ;;  %v758_v57 = vpop.f32.mrf.mxu0  ;;  %v1190_v51 = vmul.f32 1.442695, %v1155_v44 }
 0x248   :  { %v588_v55 = vpop.f32.mrf.mxu1  ;;  %v1248_v40 = vsel %vm260_vm1, %v4027_v24, 0.0  ;;  %v4059_v57 = vmul.f32 0.35355338, %v4001_v0 }
 0x249   :  { %v4031_v50 = vmul.f32 0.35355338, %v588_v55  ;;  %1249 = vadd.xlane.f32.xlu0 %v1248_v40 }
 0x24b   :  { %v1095_v31 = vsel %vm260_vm1, %v4031_v50, -inf }
 0x24c   :  { %v1070_v63 = vpop.xlane.xlu2 %1069  ;;  %1096 = vmax.xlane.f32.xlu2 %v1095_v31  ;;  %v1098_v31 = vsel %vm260_vm1, %v4059_v57, -inf }
 0x24d   :  { %v1156_v5 = vsub.f32 %v3898_v23, %v1070_v63 }
 0x24e   :  { %v4051_v7 = vpop.permute.xlu0 %1798 }
 0x24f   :  { %v1192_v62 = vmul.f32 1.442695, %v1156_v5 }
 0x250   :  { %v590_v21 = vpop.f32.mrf.mxu1  ;;  %v4040_v10 = vpop.f32.mrf.mxu0 }
 0x251   :  { %3193 = vpow2.f32 %v1192_v62  ;;  %v1064_v9 = vpop.xlane.xlu1 %1063  ;;  %1090 = vmax.xlane.f32.xlu0 %v1089_v28  ;;  %v1510_v62 = vsel %vm1445_vm2, %v3921_v59, 0 }
 0x252   :  { %v1154_v19 = vsub.f32 %v3902_v13, %v1064_v9 }
 0x254   :  { %v1188_v22 = vmul.f32 1.442695, %v1154_v19  ;;  %v4084_v19 = vmul.f32 0.35355338, %v4009_v53 }
 0x256   :  { %3195 = vpow2.f32 %v1188_v22  ;;  %2959 = vmatmul.msk.bf16.vlgmr.msrb.gmra.mxu3 %vm260_vm1, %v3805_v45  ;;  %v4069_v63 = vpop.permute.xlu0 %1819  ;;  %v1104_v59 = vsel %vm260_vm1, %v4084_v19, -inf }
 0x257   :  { %v4049_v23 = vpop.eup %3193  ;;  %1018 = vmatpush.bf16.xpose.msrb.mxu3 %v1009_v8  ;;  %3197 = vpow2.f32 %v1190_v51 }
 0x258   :  { %v684_v46 = vpop.f32.mrf.mxu1  ;;  %v854_v14 = vpop.f32.mrf.mxu0  ;;  %v1260_v13 = vsel %vm260_vm1, %v4049_v23, 0.0 }
 0x259   :  { %v1076_v4 = vpop.xlane.xlu1 %1075  ;;  %1261 = vadd.xlane.f32.xlu2 %v1260_v13 }
 0x25a   :  { %v1158_v43 = vsub.f32 %v3917_v32, %v1076_v4 }
 0x25c   :  { %v4056_v2 = vpop.eup %3195  ;;  %v1196_v45 = vmul.f32 1.442695, %v1158_v43 }
 0x25d   :  { %v1254_v55 = vsel %vm260_vm1, %v4056_v2, 0.0  ;;  %v4067_v32 = vpop.eup %3197 }
 0x25e   :  { %1255 = vadd.xlane.f32.xlu0 %v1254_v55  ;;  %3199 = vpow2.f32 %v1196_v45  ;;  %v1257_v5 = vsel %vm260_vm1, %v4067_v32, 0.0  ;;  %v4086_v44 = vpop.permute.xlu0 %1861 }
 0x260   :  { %v686_v40 = vpop.f32.mrf.mxu1  ;;  %v4063_v12 = vpop.f32.mrf.mxu0 }
 0x261   :  { %1099 = vmax.xlane.f32.xlu2 %v1098_v31 }
 0x264   :  { %v4071_v0 = vpop.eup %3199 }
 0x265   :  { %v1266_v9 = vsel %vm260_vm1, %v4071_v0, 0.0 }
 0x266   :  { %1258 = vadd.xlane.f32.xlu0 %v1257_v5  ;;  %2963 = vmatmul.msk.bf16.vlgmr.msra.gmra.mxu3 %vm260_vm1, %v3741_v54  ;;  %v1594_v54 = vsel %vm1445_vm2, %v3930_v37, 0  ;;  %v4092_v8 = vpop.permute.xlu0 %1903 }
 0x267   :  { %1519 = vmatpush.bf16.msra.mxu3 %v1510_v62 }
 0x268   :  { %v4079_v21 = vpop.f32.mrf.mxu1  ;;  %v950_v28 = vpop.f32.mrf.mxu0 }
 0x269   :  { %1267 = vadd.xlane.f32.xlu2 %v1266_v9 }
 0x26e   :  { %1105 = vmax.xlane.f32.xlu0 %v1104_v59  ;;  %v4098_v53 = vpop.permute.xlu0 %1945  ;;  %v1079_v59 = vpop.xlane.xlu2 %1078 }
 0x270   :  { %v782_v22 = vpop.f32.mrf.mxu1 }
 0x271   :  { %v4110_v22 = vmul.f32 0.35355338, %v684_v46 }
 0x276   :  { %2967 = vmatmul.msk.bf16.vlgmr.msrb.gmra.mxu3 %vm260_vm1, %v3844_v56 }
 0x277   :  { %1603 = vmatpush.bf16.msrb.mxu3 %v1594_v54 }
 0x278   :  { %v4096_v51 = vpop.f32.mrf.mxu1 }
 0x280   :  { %v878_v14 = vpop.f32.mrf.mxu1 }
 0x281   :  { %v1159_v14 = vsub.f32 %v3913_v27, %v1079_v59 }
 0x288   :  { %v1061_v13 = vpop.xlane.xlu0 %1060  ;;  %v972_v4 = vpop.f32.mrf.mxu1 }
 0x289   :  { %v1153_v43 = vsub.f32 %v3959_v29, %v1061_v13  ;;  %v4101_v45 = vmul.f32 0.35355338, %v972_v4  ;;  %v1107_v13 = vsel %vm260_vm1, %v4110_v22, -inf }
 0x28b   :  { %v1186_v55 = vmul.f32 1.442695, %v1153_v43  ;;  %v1143_v37 = vsel %vm260_vm1, %v4101_v45, -inf  ;;  %v1198_v43 = vmul.f32 1.442695, %v1159_v14 }
 0x28c   :  { %1144 = vmax.xlane.f32.xlu2 %v1143_v37 }
 0x28d   :  { %3201 = vpow2.f32 %v1186_v55  ;;  %v4122_v55 = vmul.f32 0.35355338, %v4017_v34 }
 0x28e   :  { %v804_v40 = vpop.f32.mrf.mxu2 }
 0x28f   :  { %v1110_v46 = vsel %vm260_vm1, %v4122_v55, -inf }
 0x290   :  { %v1073_v56 = vpop.xlane.xlu0 %1072  ;;  %v974_v31 = vpop.f32.mrf.mxu1 }
 0x291   :  { %v1157_v5 = vsub.f32 %v3970_v42, %v1073_v56  ;;  %v4131_v31 = vmul.f32 0.35355338, %v4040_v10 }
 0x293   :  { %v4106_v62 = vpop.eup %3201  ;;  %v1194_v28 = vmul.f32 1.442695, %v1157_v5  ;;  %v1128_v34 = vsel %vm260_vm1, %v4131_v31, -inf }
 0x294   :  { %v1251_v9 = vsel %vm260_vm1, %v4106_v62, 0.0 }
 0x295   :  { %3203 = vpow2.f32 %v1194_v28  ;;  %1252 = vadd.xlane.f32.xlu1 %v1251_v9  ;;  %v4137_v9 = vmul.f32 0.35355338, %v804_v40  ;;  %v4150_v40 = vmul.f32 0.35355338, %v4019_v60  ;;  %v1615_v60 = vsel %vm1445_vm2, %v3944_v17, 0 }
 0x296   :  { %v806_v29 = vpop.f32.mrf.mxu2  ;;  %3205 = vpow2.f32 %v1198_v43 }
 0x297   :  { %v4139_v29 = vpop.xlane.xlu1 %1084  ;;  %v1122_v10 = vsel %vm260_vm1, %v4137_v9, -inf  ;;  %v1116_v6 = vsel %vm260_vm1, %v4150_v40, -inf }
 0x298   :  { %v1082_v28 = vpop.xlane.xlu0 %1081 }
 0x29b   :  { %v4112_v54 = vpop.eup %3203 }
 0x29c   :  { %v1263_v42 = vsel %vm260_vm1, %v4112_v54, 0.0  ;;  %v4126_v37 = vpop.eup %3205 }
 0x29d   :  { %1108 = vmax.xlane.f32.xlu1 %v1107_v13  ;;  %1264 = vadd.xlane.f32.xlu0 %v1263_v42  ;;  %v1269_v56 = vsel %vm260_vm1, %v4126_v37, 0.0  ;;  %v4143_v42 = vpop.xlane.xlu2 %1087 }
 0x29e   :  { %v4119_v4 = vpop.f32.mrf.mxu2 }
 0x2a5   :  { %1111 = vmax.xlane.f32.xlu1 %v1110_v46 }
 0x2a6   :  { %v902_v27 = vpop.f32.mrf.mxu2 }
 0x2ad   :  { %1270 = vadd.xlane.f32.xlu1 %v1269_v56 }
 0x2b1   :  { %v4133_v5 = vpop.f32.mrf.mxu2 }
 0x2b5   :  { %1129 = vmax.xlane.f32.xlu1 %v1128_v34  ;;  %v1094_v34 = vpop.xlane.xlu1 %1093 }
 0x2b9   :  { %v636_v59 = vpop.f32.mrf.mxu3  ;;  %v998_v14 = vpop.f32.mrf.mxu2 }
 0x2ba   :  { %v4141_v13 = vmul.f32 0.35355338, %v636_v59 }
 0x2bc   :  { %v1250_v43 = vpop.xlane.xlu0 %1249  ;;  %v1101_v46 = vsel %vm260_vm1, %v4141_v13, -inf }
 0x2bd   :  { %3207 = vrcp.f32 %v1250_v43  ;;  %1123 = vmax.xlane.f32.xlu1 %v1122_v10  ;;  %1102 = vmax.xlane.f32.xlu0 %v1101_v46  ;;  %v1164_v10 = vsub.f32 %v3986_v41, %v1094_v34  ;;  %v1160_v34 = vsub.f32 %v3988_v52, %v1082_v28 }
 0x2bf   :  { %v4153_v14 = vpop.xlane.xlu2 %1096 }
 0x2c1   :  { %v638_v27 = vpop.f32.mrf.mxu3 }
 0x2c2   :  { %v4162_v27 = vmul.f32 0.35355338, %v4079_v21 }
 0x2c3   :  { %v3208_v56 = vpop.eup %3207 }
 0x2c4   :  { %v1376_v59 = vmul.f32 %v3208_v56, %v4027_v24  ;;  %v1091_v3 = vpop.xlane.xlu0 %1090  ;;  %v1208_v56 = vmul.f32 1.442695, %v1164_v10 }
 0x2c5   :  { %v1163_v48 = vsub.f32 %v4035_v20, %v1091_v3  ;;  %1117 = vmax.xlane.f32.xlu0 %v1116_v6  ;;  %v1119_v3 = vsel %vm260_vm1, %v4162_v27, -inf }
 0x2c6   :  { %v1408_v43 = vpack.c.bf16 %v1376_v59, %v1376_v59 }
 0x2c7   :  { %v1206_v46 = vmul.f32 1.442695, %v1163_v48 }
 0x2c8   :  { %2968 = vmatmul.msk.bf16.vlgmr.msra.gmra.mxu0 %vm260_vm1, %v1408_v43 }
 0x2c9   :  { %3209 = vpow2.f32 %v1206_v46  ;;  %1624 = vmatpush.bf16.msra.mxu0 %v1615_v60  ;;  %v732_v24 = vpop.f32.mrf.mxu3 }
 0x2ca   :  { %v4169_v48 = vmul.f32 0.35355338, %v732_v24 }
 0x2cc   :  { %v1262_v11 = vpop.xlane.xlu2 %1261 }
 0x2cd   :  { %3211 = vrcp.f32 %v1262_v11  ;;  %1120 = vmax.xlane.f32.xlu0 %v1119_v3  ;;  %v1113_v11 = vsel %vm260_vm1, %v4169_v48, -inf  ;;  %v1699_v3 = vsel %vm1445_vm2, %v3939_v61, 0 }
 0x2ce   :  { %3213 = vpow2.f32 %v1208_v56 }
 0x2cf   :  { %v4167_v41 = vpop.eup %3209 }
 0x2d0   :  { %v1281_v17 = vsel %vm260_vm1, %v4167_v41, 0.0 }
 0x2d1   :  { %v1256_v6 = vpop.xlane.xlu0 %1255  ;;  %v734_v20 = vpop.f32.mrf.mxu3  ;;  %1282 = vadd.xlane.f32.xlu2 %v1281_v17  ;;  %v1200_v17 = vmul.f32 1.442695, %v1160_v34 }
 0x2d2   :  { %3215 = vrcp.f32 %v1256_v6 }
 0x2d3   :  { %v3212_v21 = vpop.eup %3211 }
 0x2d4   :  { %v1380_v59 = vmul.f32 %v3212_v21, %v4049_v23  ;;  %v1100_v43 = vpop.xlane.xlu2 %1099  ;;  %v4177_v10 = vpop.eup %3213  ;;  %v4186_v23 = vmul.f32 0.35355338, %v4096_v51  ;;  %v1161_v21 = vsub.f32 %v3976_v47, %v4139_v29  ;;  %v4203_v29 = vmul.f32 0.35355338, %v4063_v12 }
 0x2d5   :  { %v1166_v46 = vsub.f32 %v4059_v57, %v1100_v43  ;;  %1114 = vmax.xlane.f32.xlu0 %v1113_v11  ;;  %v1284_v52 = vsel %vm260_vm1, %v4177_v10, 0.0 }
 0x2d6   :  { %v1412_v60 = vpack.c.bf16 %v1380_v59, %v1380_v59  ;;  %v1131_v59 = vsel %vm260_vm1, %v4186_v23, -inf  ;;  %v1202_v11 = vmul.f32 1.442695, %v1161_v21  ;;  %v1140_v12 = vsel %vm260_vm1, %v4203_v29, -inf }
 0x2d7   :  { %v1212_v24 = vmul.f32 1.442695, %v1166_v46 }
 0x2d8   :  { %v3216_v56 = vpop.eup %3215  ;;  %2972 = vmatmul.msk.bf16.vlgmr.msrb.gmra.mxu0 %vm260_vm1, %v1412_v60 }
 0x2d9   :  { %v1378_v28 = vmul.f32 %v3216_v56, %v4056_v2  ;;  %3217 = vpow2.f32 %v1212_v24  ;;  %1708 = vmatpush.bf16.msrb.mxu0 %v1699_v3  ;;  %v1259_v57 = vpop.xlane.xlu0 %1258  ;;  %v828_v6 = vpop.f32.mrf.mxu3  ;;  %1285 = vadd.xlane.f32.xlu2 %v1284_v52  ;;  %v1657_v2 = vsel %vm1445_vm2, %v3965_v35, 0  ;;  %v1678_v52 = vsel %vm1445_vm2, %v3937_v25, 0 }
 0x2da   :  { %3219 = vrcp.f32 %v1259_v57  ;;  %v4189_v20 = vmul.f32 0.35355338, %v828_v6  ;;  %v1165_v25 = vsub.f32 %v4031_v50, %v4153_v14  ;;  %v4243_v14 = vmul.f32 0.35355338, %v4133_v5 }
 0x2db   :  { %v1410_v61 = vpack.c.bf16 %v1378_v28, %v1378_v28  ;;  %3221 = vpow2.f32 %v1200_v17  ;;  %v1162_v17 = vsub.f32 %v3967_v36, %v4143_v42  ;;  %v4221_v36 = vmul.f32 0.35355338, %v4119_v4 }
 0x2dc   :  { %v1268_v34 = vpop.xlane.xlu2 %1267  ;;  %v1125_v51 = vsel %vm260_vm1, %v4189_v20, -inf  ;;  %v1210_v4 = vmul.f32 1.442695, %v1165_v25 }
 0x2dd   :  { %2970 = vmatmul.msk.bf16.vlgmr.msra.gmra.mxu2 %vm260_vm1, %v1410_v61  ;;  %1126 = vmax.xlane.f32.xlu1 %v1125_v51  ;;  %3223 = vrcp.f32 %v1268_v34  ;;  %v1204_v57 = vmul.f32 1.442695, %v1162_v17  ;;  %v1134_v21 = vsel %vm260_vm1, %v4221_v36, -inf  ;;  %v1741_v34 = vsel %vm1445_vm2, %v4037_v26, 0 }
 0x2de   :  { %1666 = vmatpush.bf16.msra.mxu2 %v1657_v2  ;;  %1132 = vmax.xlane.f32.xlu0 %v1131_v59  ;;  %3225 = vpow2.f32 %v1202_v11 }
 0x2df   :  { %v4200_v43 = vpop.eup %3217  ;;  %3227 = vpow2.f32 %v1204_v57 }
 0x2e0   :  { %v3220_v47 = vpop.eup %3219  ;;  %v1290_v46 = vsel %vm260_vm1, %v4200_v43, 0.0  ;;  %3229 = vpow2.f32 %v1210_v4 }
 0x2e1   :  { %v1379_v35 = vmul.f32 %v3220_v47, %v4067_v32  ;;  %v830_v60 = vpop.f32.mrf.mxu3  ;;  %1291 = vadd.xlane.f32.xlu2 %v1290_v46  ;;  %v4208_v24 = vpop.eup %3221 }
 0x2e2   :  { %v1272_v32 = vsel %vm260_vm1, %v4208_v24, 0.0  ;;  %v1106_v47 = vpop.xlane.xlu0 %1105  ;;  %v1146_v60 = vsel %vm260_vm1, %v4243_v14, -inf }
 0x2e3   :  { %v1411_v56 = vpack.c.bf16 %v1379_v35, %v1379_v35  ;;  %v3224_v3 = vpop.eup %3223  ;;  %v1168_v35 = vsub.f32 %v4084_v19, %v1106_v47 }
 0x2e4   :  { %v1382_v28 = vmul.f32 %v3224_v3, %v4071_v0  ;;  %v4223_v6 = vpop.eup %3225 }
 0x2e5   :  { %2971 = vmatmul.msk.bf16.vlgmr.msra.gmra.mxu3 %vm260_vm1, %v1411_v56  ;;  %1141 = vmax.xlane.f32.xlu1 %v1140_v12  ;;  %v1275_v0 = vsel %vm260_vm1, %v4223_v6, 0.0  ;;  %v4236_v59 = vpop.eup %3227  ;;  %v1216_v3 = vmul.f32 1.442695, %v1168_v35 }
 0x2e6   :  { %1687 = vmatpush.bf16.msra.mxu3 %v1678_v52  ;;  %1273 = vadd.xlane.f32.xlu0 %v1272_v32  ;;  %v1414_v61 = vpack.c.bf16 %v1382_v28, %v1382_v28  ;;  %v1278_v26 = vsel %vm260_vm1, %v4236_v59, 0.0  ;;  %v4245_v46 = vpop.eup %3229 }
 0x2e7   :  { %v1287_v56 = vsel %vm260_vm1, %v4245_v46, 0.0  ;;  %3231 = vpow2.f32 %v1216_v3 }
 0x2e9   :  { %v924_v42 = vpop.f32.mrf.mxu3 }
 0x2ea   :  { %v4234_v51 = vmul.f32 0.35355338, %v924_v42 }
 0x2ec   :  { %v1137_v50 = vsel %vm260_vm1, %v4234_v51, -inf }
 0x2ed   :  { %2974 = vmatmul.msk.bf16.vlgmr.msrb.gmra.mxu2 %vm260_vm1, %v1414_v61  ;;  %1135 = vmax.xlane.f32.xlu1 %v1134_v21  ;;  %v4256_v32 = vpop.eup %3231 }
 0x2ee   :  { %1750 = vmatpush.bf16.msrb.mxu2 %v1741_v34  ;;  %1276 = vadd.xlane.f32.xlu0 %v1275_v0  ;;  %v1296_v19 = vsel %vm260_vm1, %v4256_v32, 0.0  ;;  %v1636_v0 = vsel %vm1445_vm2, %v3956_v30, 0 }
 0x2f1   :  { %v926_v2 = vpop.f32.mrf.mxu3 }
 0x2f5   :  { %1138 = vmax.xlane.f32.xlu1 %v1137_v50 }
 0x2f6   :  { %1279 = vadd.xlane.f32.xlu0 %v1278_v26 }
 0x2f9   :  { %v1020_v11 = vpop.f32.mrf.mxu3 }
 0x2fa   :  { %v4252_v17 = vmul.f32 0.35355338, %v1020_v11 }
 0x2fc   :  { %v1149_v5 = vsel %vm260_vm1, %v4252_v17, -inf }
 0x2fd   :  { %1147 = vmax.xlane.f32.xlu1 %v1146_v60  ;;  %v1720_v60 = vsel %vm1445_vm2, %v3950_v33, 0 }
 0x2fe   :  { %1288 = vadd.xlane.f32.xlu0 %v1287_v56 }
 0x301   :  { %v1022_v12 = vpop.f32.mrf.mxu3 }
 0x302   :  { %v1762_v12 = vsel %vm1445_vm2, %v3999_v18, 0 }
 0x305   :  { %1150 = vmax.xlane.f32.xlu1 %v1149_v5 }
 0x308   :  { %v1253_v52 = vpop.xlane.xlu1 %1252 }
 0x309   :  { %3233 = vrcp.f32 %v1253_v52 }
 0x30d   :  { %1297 = vadd.xlane.f32.xlu1 %v1296_v19 }
 0x30f   :  { %v3234_v28 = vpop.eup %3233 }
 0x310   :  { %v1377_v57 = vmul.f32 %v3234_v28, %v4106_v62  ;;  %v1109_v42 = vpop.xlane.xlu1 %1108  ;;  %v1265_v61 = vpop.xlane.xlu0 %1264 }
 0x311   :  { %v1169_v25 = vsub.f32 %v4110_v22, %v1109_v42  ;;  %3235 = vrcp.f32 %v1265_v61 }
 0x312   :  { %v1409_v21 = vpack.c.bf16 %v1377_v57, %v1377_v57 }
 0x313   :  { %v1218_v34 = vmul.f32 1.442695, %v1169_v25 }
 0x314   :  { %2969 = vmatmul.msk.bf16.vlgmr.msra.gmra.mxu1 %vm260_vm1, %v1409_v21 }
 0x315   :  { %3237 = vpow2.f32 %v1218_v34  ;;  %1645 = vmatpush.bf16.msra.mxu1 %v1636_v0 }
 0x317   :  { %v3236_v50 = vpop.eup %3235 }
 0x318   :  { %v1112_v4 = vpop.xlane.xlu1 %1111  ;;  %v1381_v47 = vmul.f32 %v3236_v50, %v4112_v54 }
 0x319   :  { %v1170_v2 = vsub.f32 %v4122_v55, %v1112_v4 }
 0x31a   :  { %v1413_v11 = vpack.c.bf16 %v1381_v47, %v1381_v47 }
 0x31b   :  { %v4266_v26 = vpop.eup %3237  ;;  %v1220_v62 = vmul.f32 1.442695, %v1170_v2 }
 0x31c   :  { %v1299_v22 = vsel %vm260_vm1, %v4266_v26, 0.0 }
 0x31d   :  { %3239 = vpow2.f32 %v1220_v62  ;;  %1300 = vadd.xlane.f32.xlu2 %v1299_v22 }
 0x320   :  { %v1271_v30 = vpop.xlane.xlu1 %1270 }
 0x321   :  { %3241 = vrcp.f32 %v1271_v30 }
 0x323   :  { %v4271_v35 = vpop.eup %3239 }
 0x324   :  { %2973 = vmatmul.msk.bf16.vlgmr.msrb.gmra.mxu1 %vm260_vm1, %v1413_v11  ;;  %v1302_v55 = vsel %vm260_vm1, %v4271_v35, 0.0 }
 0x325   :  { %1729 = vmatpush.bf16.msrb.mxu1 %v1720_v60  ;;  %1303 = vadd.xlane.f32.xlu2 %v1302_v55 }
 0x326   :  { %2008 = vrot.lane.b32.xlu1 %v3759_v16, %s3463_s21 }
 0x327   :  { %v3242_v56 = vpop.eup %3241 }
 0x328   :  { %v1383_v54 = vmul.f32 %v3242_v56, %v4126_v37  ;;  %v1130_v28 = vpop.xlane.xlu1 %1129  ;;  %v4288_v37 = vpop.xlane.xlu2 %1144 }
 0x329   :  { %v1176_v61 = vsub.f32 %v4131_v31, %v1130_v28 }
 0x32a   :  { %v1415_v3 = vpack.c.bf16 %v1383_v54, %v1383_v54 }
 0x32b   :  { %v1232_v25 = vmul.f32 1.442695, %v1176_v61 }
 0x32c   :  { %2975 = vmatmul.msk.bf16.vlgmr.msrb.gmra.mxu3 %vm260_vm1, %v1415_v3 }
 0x32d   :  { %1771 = vmatpush.bf16.msrb.mxu3 %v1762_v12 }
 0x330   :  { %v1103_v33 = vpop.xlane.xlu0 %1102  ;;  %v1124_v31 = vpop.xlane.xlu1 %1123 }
 0x331   :  { %v1167_v5 = vsub.f32 %v4141_v13, %v1103_v33  ;;  %v1174_v47 = vsub.f32 %v4137_v9, %v1124_v31  ;;  %v1846_v9 = vsel %vm1445_vm2, %v3984_v39, 0 }
 0x333   :  { %v1214_v52 = vmul.f32 1.442695, %v1167_v5  ;;  %v1228_v54 = vmul.f32 1.442695, %v1174_v47 }
 0x335   :  { %3243 = vpow2.f32 %v1214_v52 }
 0x338   :  { %v1118_v19 = vpop.xlane.xlu0 %1117 }
 0x339   :  { %v1172_v57 = vsub.f32 %v4150_v40, %v1118_v19 }
 0x33b   :  { %v4286_v16 = vpop.eup %3243  ;;  %v1224_v42 = vmul.f32 1.442695, %v1172_v57 }
 0x33c   :  { %v1293_v18 = vsel %vm260_vm1, %v4286_v16, 0.0 }
 0x33d   :  { %3245 = vpow2.f32 %v1224_v42  ;;  %1294 = vadd.xlane.f32.xlu0 %v1293_v18 }
 0x33e   :  { %3247 = vpow2.f32 %v1232_v25 }
 0x340   :  { %v1121_v13 = vpop.xlane.xlu0 %1120 }
 0x341   :  { %v1173_v21 = vsub.f32 %v4162_v27, %v1121_v13 }
 0x343   :  { %v4294_v34 = vpop.eup %3245  ;;  %v1226_v0 = vmul.f32 1.442695, %v1173_v21 }
 0x344   :  { %v1283_v40 = vpop.xlane.xlu2 %1282  ;;  %v1308_v4 = vsel %vm260_vm1, %v4294_v34, 0.0  ;;  %v4301_v22 = vpop.eup %3247 }
 0x345   :  { %3249 = vpow2.f32 %v1226_v0  ;;  %v4298_v2 = vpop.f32.mrf.mxu0  ;;  %1309 = vadd.xlane.f32.xlu0 %v1308_v4 }
 0x346   :  { %3251 = vrcp.f32 %v1283_v40 }
 0x348   :  { %v1115_v50 = vpop.xlane.xlu0 %1114 }
 0x349   :  { %v1171_v62 = vsub.f32 %v4169_v48, %v1115_v50  ;;  %v1320_v48 = vsel %vm260_vm1, %v4301_v22, 0.0 }
 0x34b   :  { %v4303_v27 = vpop.eup %3249  ;;  %v1222_v30 = vmul.f32 1.442695, %v1171_v62 }
 0x34c   :  { %v3252_v11 = vpop.eup %3251  ;;  %v1311_v60 = vsel %vm260_vm1, %v4303_v27, 0.0 }
 0x34d   :  { %v1387_v55 = vmul.f32 %v3252_v11, %v4167_v41  ;;  %3253 = vpow2.f32 %v1222_v30  ;;  %v1460_v56 = vpop.f32.mrf.mxu0  ;;  %1312 = vadd.xlane.f32.xlu2 %v1311_v60  ;;  %v1286_v11 = vpop.xlane.xlu2 %1285 }
 0x34e   :  { %3255 = vpow2.f32 %v1228_v54  ;;  %v1783_v54 = vsel %vm1445_vm2, %v3963_v38, 0 }
 0x34f   :  { %v1419_v3 = vpack.c.bf16 %v1387_v55, %v1387_v55 }
 0x350   :  { %1321 = vadd.xlane.f32.xlu1 %v1320_v48  ;;  %v1127_v12 = vpop.xlane.xlu1 %1126 }
 0x351   :  { %v1133_v33 = vpop.xlane.xlu0 %1132  ;;  %2979 = vmatmul.msk.bf16.vlgmr.msra.gmra.mxu3 %vm260_vm1, %v1419_v3  ;;  %v1175_v19 = vsub.f32 %v4189_v20, %v1127_v12 }
 0x352   :  { %v1177_v5 = vsub.f32 %v4186_v23, %v1133_v33  ;;  %1855 = vmatpush.bf16.msra.mxu3 %v1846_v9 }
 0x353   :  { %v4315_v41 = vpop.eup %3253  ;;  %v1230_v39 = vmul.f32 1.442695, %v1175_v19 }
 0x354   :  { %v1234_v52 = vmul.f32 1.442695, %v1177_v5  ;;  %v1305_v28 = vsel %vm260_vm1, %v4315_v41, 0.0  ;;  %v4322_v61 = vpop.eup %3255 }
 0x355   :  { %v4320_v57 = vpop.f32.mrf.mxu0  ;;  %1306 = vadd.xlane.f32.xlu0 %v1305_v28  ;;  %v1314_v20 = vsel %vm260_vm1, %v4322_v61, 0.0 }
 0x356   :  { %3257 = vpow2.f32 %v1234_v52 }
 0x358   :  { %v1142_v42 = vpop.xlane.xlu1 %1141 }
 0x359   :  { %v1274_v18 = vpop.xlane.xlu0 %1273  ;;  %v1180_v23 = vsub.f32 %v4203_v29, %v1142_v42  ;;  %v1804_v42 = vsel %vm1445_vm2, %v4051_v7, 0 }
 0x35a   :  { %3259 = vrcp.f32 %v1274_v18 }
 0x35b   :  { %v1240_v25 = vmul.f32 1.442695, %v1180_v23  ;;  %3261 = vpow2.f32 %v1230_v39 }
 0x35c   :  { %v4325_v13 = vpop.eup %3257 }
 0x35d   :  { %3263 = vpow2.f32 %v1240_v25  ;;  %v1544_v21 = vpop.f32.mrf.mxu0  ;;  %v1323_v0 = vsel %vm260_vm1, %v4325_v13, 0.0  ;;  %1315 = vadd.xlane.f32.xlu0 %v1314_v20 }
 0x35e   :  { %1324 = vadd.xlane.f32.xlu2 %v1323_v0 }
 0x360   :  { %v3260_v40 = vpop.eup %3259  ;;  %v4331_v4 = vpop.f32.mrf.mxu2 }
 0x361   :  { %v1136_v31 = vpop.xlane.xlu1 %1135  ;;  %v1384_v29 = vmul.f32 %v3260_v40, %v4208_v24  ;;  %v1277_v50 = vpop.xlane.xlu0 %1276  ;;  %v1181_v24 = vsub.f32 %v4101_v45, %v4288_v37 }
 0x362   :  { %v1178_v62 = vsub.f32 %v4221_v36, %v1136_v31  ;;  %v4335_v47 = vpop.eup %3261  ;;  %3265 = vrcp.f32 %v1277_v50  ;;  %v1292_v40 = vpop.xlane.xlu2 %1291  ;;  %v1867_v50 = vsel %vm1445_vm2, %v4086_v44, 0 }
 0x363   :  { %v4337_v30 = vpop.eup %3263  ;;  %v1416_v60 = vpack.c.bf16 %v1384_v29, %v1384_v29  ;;  %v1317_v36 = vsel %vm260_vm1, %v4335_v47, 0.0  ;;  %v1242_v9 = vmul.f32 1.442695, %v1181_v24 }
 0x364   :  { %v1236_v55 = vmul.f32 1.442695, %v1178_v62  ;;  %v1332_v56 = vsel %vm260_vm1, %v4337_v30, 0.0 }
 0x365   :  { %2976 = vmatmul.msk.bf16.vlgmr.msra.gmra.mxu0 %vm260_vm1, %v1416_v60  ;;  %1333 = vadd.xlane.f32.xlu1 %v1332_v56 }
 0x366   :  { %3267 = vpow2.f32 %v1236_v55  ;;  %1792 = vmatpush.bf16.msra.mxu0 %v1783_v54  ;;  %1318 = vadd.xlane.f32.xlu2 %v1317_v36  ;;  %v1888_v54 = vsel %vm1445_vm2, %v3982_v1, 0 }
 0x367   :  { %3269 = vrcp.f32 %v1286_v11 }
 0x368   :  { %v3266_v3 = vpop.eup %3265  ;;  %v1502_v48 = vpop.f32.mrf.mxu2 }
 0x369   :  { %v4348_v12 = vpop.f32.mrf.mxu3  ;;  %v1385_v38 = vmul.f32 %v3266_v3, %v4223_v6  ;;  %v1280_v33 = vpop.xlane.xlu0 %1279 }
 0x36a   :  { %v1139_v5 = vpop.xlane.xlu1 %1138  ;;  %3271 = vrcp.f32 %v1280_v33 }
 0x36b   :  { %v1179_v45 = vsub.f32 %v4234_v51, %v1139_v5  ;;  %v1417_v52 = vpack.c.bf16 %v1385_v38, %v1385_v38  ;;  %3273 = vpow2.f32 %v1242_v9 }
 0x36c   :  { %v4352_v37 = vpop.eup %3267 }
 0x36d   :  { %v3270_v19 = vpop.eup %3269  ;;  %v1238_v28 = vmul.f32 1.442695, %v1179_v45  ;;  %v1326_v39 = vsel %vm260_vm1, %v4352_v37, 0.0  ;;  %2977 = vmatmul.msk.bf16.vlgmr.msra.gmra.mxu1 %vm260_vm1, %v1417_v52  ;;  %v4837_v45 = vld [vmem:[#allocation15_spill] sm:$0xff] }
 0x36e   :  { %1327 = vadd.xlane.f32.xlu0 %v1326_v39  ;;  %1813 = vmatpush.bf16.msra.mxu1 %v1804_v42  ;;  %v1388_v6 = vmul.f32 %v3270_v19, %v4177_v10  ;;  %v1825_v10 = vsel %vm1445_vm2, %v4069_v63, 0 }
 0x36f   :  { %3275 = vpow2.f32 %v1238_v28 }
 0x370   :  { %v3272_v51 = vpop.eup %3271  ;;  %v4360_v23 = vpop.f32.mrf.mxu2  ;;  %v1420_v7 = vpack.c.bf16 %v1388_v6, %v1388_v6  ;;  %v4838_v6 = vld [vmem:[#allocation17_spill] sm:$0xff] }
 0x371   :  { %v1523_v18 = vpop.f32.mrf.mxu3  ;;  %v1386_v25 = vmul.f32 %v3272_v51, %v4236_v59  ;;  %v1289_v20 = vpop.xlane.xlu0 %1288 }
 0x372   :  { %v4363_v21 = vpop.xlane.xlu1 %1147  ;;  %3277 = vrcp.f32 %v1289_v20  ;;  %v4365_v0 = vpop.eup %3273 }
 0x373   :  { %v1418_v31 = vpack.c.bf16 %v1386_v25, %v1386_v25  ;;  %3279 = vrcp.f32 %v1292_v40  ;;  %v1335_v62 = vsel %vm260_vm1, %v4365_v0, 0.0  ;;  %v1182_v51 = vsub.f32 %v4243_v14, %v4363_v21 }
 0x375   :  { %v4367_v29 = vpop.eup %3275  ;;  %2978 = vmatmul.msk.bf16.vlgmr.msra.gmra.mxu2 %vm260_vm1, %v1418_v31  ;;  %2980 = vmatmul.msk.bf16.vlgmr.msrb.gmra.mxu0 %vm260_vm1, %v1420_v7  ;;  %v1244_v20 = vmul.f32 1.442695, %v1182_v51 }
 0x376   :  { %v1329_v59 = vsel %vm260_vm1, %v4367_v29, 0.0  ;;  %1834 = vmatpush.bf16.msra.mxu2 %v1825_v10  ;;  %1876 = vmatpush.bf16.msrb.mxu0 %v1867_v50 }
 0x377   :  { %1336 = vadd.xlane.f32.xlu0 %v1335_v62  ;;  %1330 = vadd.xlane.f32.xlu2 %v1329_v59 }
 0x378   :  { %v3278_v11 = vpop.eup %3277  ;;  %v1586_v63 = vpop.f32.mrf.mxu2 }
 0x379   :  { %v1389_v60 = vmul.f32 %v3278_v11, %v4245_v46  ;;  %v3280_v56 = vpop.eup %3279  ;;  %v1909_v46 = vsel %vm1445_vm2, %v4092_v8, 0  ;;  %v4836_v8 = vld [vmem:[#allocation14_spill] sm:$0xff]  ;;  %v4839_v63 = vld [vmem:[#allocation16_spill] sm:$0xff] }
 0x37a   :  { %v1151_v44 = vpop.xlane.xlu1 %1150  ;;  %v1390_v24 = vmul.f32 %v3280_v56, %v4200_v43 }
 0x37b   :  { %v1421_v55 = vpack.c.bf16 %v1389_v60, %v1389_v60  ;;  %v1183_v42 = vsub.f32 %v4252_v17, %v1151_v44  ;;  %v1930_v60 = vsel %vm1445_vm2, %v4839_v63, 0 }
 0x37c   :  { %v1422_v3 = vpack.c.bf16 %v1390_v24, %v1390_v24 }
 0x37d   :  { %2981 = vmatmul.msk.bf16.vlgmr.msrb.gmra.mxu1 %vm260_vm1, %v1421_v55  ;;  %v1246_v18 = vmul.f32 1.442695, %v1183_v42 }
 0x37e   :  { %1897 = vmatpush.bf16.msrb.mxu1 %v1888_v54  ;;  %2071 = vrot.lane.b32.xlu1 %v3852_v49, %s3463_s21  ;;  %v1951_v49 = vsel %vm1445_vm2, %v4098_v53, 0  ;;  %v1972_v53 = vsel %vm1445_vm2, %v4837_v45, 0 }
 0x382   :  { %v1298_v36 = vpop.xlane.xlu1 %1297 }
 0x383   :  { %3281 = vrcp.f32 %v1298_v36 }
 0x385   :  { %2982 = vmatmul.msk.bf16.vlgmr.msrb.gmra.mxu2 %vm260_vm1, %v1422_v3 }
 0x386   :  { %1918 = vmatpush.bf16.msrb.mxu2 %v1909_v46  ;;  %2092 = vrot.lane.b32.xlu1 %v3854_v58, %s3463_s21 }
 0x389   :  { %v3282_v1 = vpop.eup %3281 }
 0x38a   :  { %v1392_v48 = vmul.f32 %v3282_v1, %v4256_v32 }
 0x38b   :  { %2050 = vrot.lane.b32.xlu0 %v3757_v15, %s3463_s21 }
 0x38c   :  { %v1424_v9 = vpack.c.bf16 %v1392_v48, %v1392_v48 }
 0x38e   :  { %2984 = vmatmul.msk.bf16.vlgmr.msra.gmra.mxu0 %vm260_vm1, %v1424_v9 }
 0x38f   :  { %1960 = vmatpush.bf16.msra.mxu0 %v1951_v49  ;;  %2029 = vrot.lane.b32.xlu2 %v4836_v8, %s3463_s21 }
 0x390   :  { %v1301_v43 = vpop.xlane.xlu2 %1300 }
 0x391   :  { %3283 = vrcp.f32 %v1301_v43  ;;  %v4399_v38 = vpop.f32.mrf.mxu1 }
 0x397   :  { %v3284_v58 = vpop.eup %3283 }
 0x398   :  { %v1393_v32 = vmul.f32 %v3284_v58, %v4266_v26  ;;  %v1304_v33 = vpop.xlane.xlu2 %1303  ;;  %v1993_v26 = vsel %vm1445_vm2, %v4838_v6, 0  ;;  %v2009_v11 = vpop.permute.xlu1 %2008 }
 0x399   :  { %3285 = vrcp.f32 %v1304_v33  ;;  %v1481_v5 = vpop.f32.mrf.mxu1 }
 0x39a   :  { %v1425_v15 = vpack.c.bf16 %v1393_v32, %v1393_v32  ;;  %3287 = vpow2.f32 %v1246_v18  ;;  %v2014_v32 = vsel %vm1445_vm2, %v2009_v11, 0 }
 0x39b   :  { %3289 = vpow2.f32 %v1244_v20 }
 0x39c   :  { %2985 = vmatmul.msk.bf16.vlgmr.msra.gmra.mxu1 %vm260_vm1, %v1425_v15 }
 0x39d   :  { %1981 = vmatpush.bf16.msra.mxu1 %v1972_v53 }
 0x39f   :  { %v3286_v52 = vpop.eup %3285 }
 0x3a0   :  { %v1394_v19 = vmul.f32 %v3286_v52, %v4271_v35  ;;  %v4416_v40 = vpop.eup %3287 }
 0x3a1   :  { %v4406_v28 = vpop.f32.mrf.mxu1  ;;  %v4418_v17 = vpop.eup %3289  ;;  %v1341_v31 = vsel %vm260_vm1, %v4416_v40, 0.0 }
 0x3a2   :  { %v1426_v39 = vpack.c.bf16 %v1394_v19, %v1394_v19  ;;  %v1338_v14 = vsel %vm260_vm1, %v4418_v17, 0.0 }
 0x3a4   :  { %2986 = vmatmul.msk.bf16.vlgmr.msra.gmra.mxu2 %vm260_vm1, %v1426_v39 }
 0x3a5   :  { %2002 = vmatpush.bf16.msra.mxu2 %v1993_v26 }
 0x3a9   :  { %v1565_v25 = vpop.f32.mrf.mxu1 }
 0x3af   :  { %v4414_v35 = vpop.f32.mrf.mxu3 }
 0x3b0   :  { %v1295_v7 = vpop.xlane.xlu0 %1294 }
 0x3b1   :  { %3291 = vrcp.f32 %v1295_v7 }
 0x3b5   :  { %1342 = vadd.xlane.f32.xlu0 %v1341_v31 }
 0x3b7   :  { %v3292_v10 = vpop.eup %3291  ;;  %v1607_v21 = vpop.f32.mrf.mxu3 }
 0x3b8   :  { %v1391_v50 = vmul.f32 %v3292_v10, %v4286_v16  ;;  %1339 = vadd.xlane.f32.xlu2 %v1338_v14  ;;  %v1310_v59 = vpop.xlane.xlu0 %1309 }
 0x3b9   :  { %3293 = vrcp.f32 %v1310_v59 }
 0x3ba   :  { %v1423_v62 = vpack.c.bf16 %v1391_v50, %v1391_v50 }
 0x3bc   :  { %2983 = vmatmul.msk.bf16.vlgmr.msrb.gmra.mxu3 %vm260_vm1, %v1423_v62 }
 0x3bd   :  { %1939 = vmatpush.bf16.msrb.mxu3 %v1930_v60 }
 0x3bf   :  { %v3294_v44 = vpop.eup %3293 }
 0x3c0   :  { %v1396_v55 = vmul.f32 %v3294_v44, %v4294_v34  ;;  %v1313_v56 = vpop.xlane.xlu2 %1312 }
 0x3c1   :  { %3295 = vrcp.f32 %v1313_v56 }
 0x3c2   :  { %v1428_v54 = vpack.c.bf16 %v1396_v55, %v1396_v55 }
 0x3c3   :  { %v1322_v24 = vpop.xlane.xlu1 %1321 }
 0x3c4   :  { %2988 = vmatmul.msk.bf16.vlgmr.msrb.gmra.mxu0 %vm260_vm1, %v1428_v54  ;;  %3297 = vrcp.f32 %v1322_v24 }
 0x3c7   :  { %v3296_v16 = vpop.eup %3295 }
 0x3c8   :  { %v1397_v36 = vmul.f32 %v3296_v16, %v4303_v27  ;;  %v1307_v3 = vpop.xlane.xlu0 %1306 }
 0x3c9   :  { %3299 = vrcp.f32 %v1307_v3 }
 0x3ca   :  { %v1429_v46 = vpack.c.bf16 %v1397_v36, %v1397_v36  ;;  %v3298_v1 = vpop.eup %3297 }
 0x3cb   :  { %v1400_v48 = vmul.f32 %v3298_v1, %v4301_v22 }
 0x3cc   :  { %2989 = vmatmul.msk.bf16.vlgmr.msrb.gmra.mxu1 %vm260_vm1, %v1429_v46 }
 0x3cd   :  { %v1432_v43 = vpack.c.bf16 %v1400_v48, %v1400_v48 }
 0x3cf   :  { %v3300_v9 = vpop.eup %3299 }
 0x3d0   :  { %v1395_v34 = vmul.f32 %v3300_v9, %v4315_v41  ;;  %v1316_v49 = vpop.xlane.xlu0 %1315 }
 0x3d1   :  { %v1325_v8 = vpop.xlane.xlu2 %1324  ;;  %3301 = vrcp.f32 %v1316_v49 }
 0x3d2   :  { %v1427_v58 = vpack.c.bf16 %v1395_v34, %v1395_v34  ;;  %3303 = vrcp.f32 %v1325_v8 }
 0x3d4   :  { %v1689_v27 = vpop.f32.mrf.mxu3  ;;  %2987 = vmatmul.msk.bf16.vlgmr.msra.gmra.mxu3 %vm260_vm1, %v1427_v58  ;;  %2992 = vmatmul.msk.bf16.vlgmr.msra.gmra.mxu0 %vm260_vm1, %v1432_v43 }
 0x3d5   :  { %2023 = vmatpush.bf16.msra.mxu3 %v2014_v32 }
 0x3d7   :  { %v3302_v33 = vpop.eup %3301 }
 0x3d8   :  { %v3304_v5 = vpop.eup %3303  ;;  %v1398_v22 = vmul.f32 %v3302_v33, %v4322_v61  ;;  %v1334_v51 = vpop.xlane.xlu1 %1333 }
 0x3d9   :  { %v1401_v41 = vmul.f32 %v3304_v5, %v4325_v13  ;;  %v1319_v15 = vpop.xlane.xlu2 %1318 }
 0x3da   :  { %v1430_v45 = vpack.c.bf16 %v1398_v22, %v1398_v22  ;;  %3305 = vrcp.f32 %v1319_v15 }
 0x3db   :  { %v1433_v53 = vpack.c.bf16 %v1401_v41, %v1401_v41 }
 0x3dc   :  { %v1691_v52 = vpop.f32.mrf.mxu3  ;;  %2990 = vmatmul.msk.bf16.vlgmr.msrb.gmra.mxu2 %vm260_vm1, %v1430_v45 }
 0x3dd   :  { %2993 = vmatmul.msk.bf16.vlgmr.msra.gmra.mxu1 %vm260_vm1, %v1433_v53 }
 0x3e0   :  { %v3306_v19 = vpop.eup %3305 }
 0x3e1   :  { %v1328_v39 = vpop.xlane.xlu0 %1327  ;;  %v1399_v42 = vmul.f32 %v3306_v19, %v4335_v47 }
 0x3e2   :  { %3307 = vrcp.f32 %v1328_v39  ;;  %v1626_v6 = vpop.f32.mrf.mxu0 }
 0x3e3   :  { %v1431_v26 = vpack.c.bf16 %v1399_v42, %v1399_v42  ;;  %3309 = vrcp.f32 %v1334_v51 }
 0x3e5   :  { %2991 = vmatmul.msk.bf16.vlgmr.msrb.gmra.mxu3 %vm260_vm1, %v1431_v26 }
 0x3e8   :  { %v3308_v61 = vpop.eup %3307 }
 0x3e9   :  { %v1402_v13 = vmul.f32 %v3308_v61, %v4352_v37  ;;  %v3310_v10 = vpop.eup %3309 }
 0x3ea   :  { %v1331_v25 = vpop.xlane.xlu2 %1330  ;;  %v1628_v20 = vpop.f32.mrf.mxu0  ;;  %v1404_v21 = vmul.f32 %v3310_v10, %v4337_v30 }
 0x3eb   :  { %v1434_v18 = vpack.c.bf16 %v1402_v13, %v1402_v13  ;;  %v1647_v7 = vpop.f32.mrf.mxu1  ;;  %3311 = vrcp.f32 %v1331_v25  ;;  %v1337_v47 = vpop.xlane.xlu0 %1336 }
 0x3ec   :  { %v3131_v31 = vpack.i.bf16 %v1647_v7, %v1626_v6  ;;  %3313 = vrcp.f32 %v1337_v47  ;;  %v1436_v44 = vpack.c.bf16 %v1404_v21, %v1404_v21 }
 0x3ed   :  { %2994 = vmatmul.msk.bf16.vlgmr.msra.gmra.mxu2 %vm260_vm1, %v1434_v18 }
 0x3ee   :  { %3132 = vrot.lane.b32.xlu1 %v3131_v31, %s3456_s10 }
 0x3f0   :  { %v2072_v14 = vpop.permute.xlu1 %2071 }
 0x3f1   :  { %v2077_v50 = vsel %vm1445_vm2, %v2072_v14, 0  ;;  %v3312_v59 = vpop.eup %3311 }
 0x3f2   :  { %v2030_v62 = vpop.permute.xlu2 %2029  ;;  %2086 = vmatpush.bf16.msrb.mxu2 %v2077_v50  ;;  %v1403_v37 = vmul.f32 %v3312_v59, %v4367_v29  ;;  %v4450_v60 = vpop.f32.mrf.mxu0 }
 0x3f3   :  { %v2035_v11 = vsel %vm1445_vm2, %v2030_v62, 0  ;;  %v1649_v63 = vpop.f32.mrf.mxu1  ;;  %v3314_v54 = vpop.eup %3313 }
 0x3f4   :  { %2044 = vmatpush.bf16.msrb.mxu0 %v2035_v11  ;;  %v1435_v55 = vpack.c.bf16 %v1403_v37, %v1403_v37  ;;  %v1405_v3 = vmul.f32 %v3314_v54, %v4365_v0 }
 0x3f6   :  { %2995 = vmatmul.msk.bf16.vlgmr.msra.gmra.mxu3 %vm260_vm1, %v1435_v55  ;;  %v1437_v9 = vpack.c.bf16 %v1405_v3, %v1405_v3  ;;  %v3047_v3 = vld [vmem:[%s4825_s2] sm:$0xff] }
 0x3f7   :  { %2996 = vmatmul.msk.bf16.vlgmr.msrb.gmra.mxu0 %vm260_vm1, %v1436_v44 }
 0x3f8   :  { %v1668_v30 = vpop.f32.mrf.mxu2  ;;  %v2093_v56 = vpop.permute.xlu1 %2092 }
 0x3f9   :  { %v3146_v24 = vpack.i.bf16 %v1689_v27, %v1668_v30  ;;  %v2098_v16 = vsel %vm1445_vm2, %v2093_v56, 0 }
 0x3fa   :  { %2107 = vmatpush.bf16.msrb.mxu3 %v2098_v16  ;;  %v1712_v29 = vpop.f32.mrf.mxu0 }
 0x3fb   :  { %v1731_v36 = vpop.f32.mrf.mxu1  ;;  %3147 = vrot.lane.b32.xlu1 %v3146_v24, %s3456_s10 }
 0x3fc   :  { %v3161_v46 = vpack.i.bf16 %v1731_v36, %v4450_v60  ;;  %v3048_v36 = vld [vmem:[%s4825_s2 + $0x8] sm:$0xff]  ;;  %s2297_s2 = sld [smem:[#allocation8]] }
 0x3fd   :  { %v2051_v1 = vpop.permute.xlu0 %2050  ;;  %2274 = vmatpush.bf16.msra.mxu0 %v3048_v36 }
 0x3fe   :  { %v2056_v48 = vsel %vm1445_vm2, %v2051_v1, 0 }
 0x3ff   :  { %2065 = vmatpush.bf16.msrb.mxu1 %v2056_v48 }
 0x400   :  { %v1670_v34 = vpop.f32.mrf.mxu2 }
 0x401   :  { %2275 = vmatpush.bf16.msra.mxu0 %v3047_v3 }
 0x402   :  { %2997 = vmatmul.msk.bf16.vlgmr.msrb.gmra.mxu1 %vm260_vm1, %v1437_v9  ;;  %s2299_s28 = ssub.f32 1.0, %s2297_s2 }
 0x403   :  { %v1733_v49 = vpop.f32.mrf.mxu1 }
 0x408   :  { %v1752_v8 = vpop.f32.mrf.mxu2 }
 0x40b   :  { %v1794_v43 = vpop.f32.mrf.mxu0 }
 0x410   :  { %v1754_v58 = vpop.f32.mrf.mxu2 }
 0x413   :  { %v1796_v32 = vpop.f32.mrf.mxu0 }
 0x419   :  { %v1815_v27 = vpop.f32.mrf.mxu1 }
 0x41a   :  { %v3136_v33 = vpack.i.bf16 %v1815_v27, %v1794_v43 }
 0x41c   :  { %3137 = vrot.lane.b32.xlu2 %v3136_v33, %s3464_s22 }
 0x421   :  { %v1817_v0 = vpop.f32.mrf.mxu1 }
 0x427   :  { %v1836_v5 = vpop.f32.mrf.mxu2 }
 0x428   :  { %v1343_v22 = vpop.xlane.xlu0 %1342 }
 0x429   :  { %3315 = vrcp.f32 %v1343_v22 }
 0x42b   :  { %v1340_v41 = vpop.xlane.xlu2 %1339 }
 0x42c   :  { %3317 = vrcp.f32 %v1340_v41 }
 0x42f   :  { %v3316_v15 = vpop.eup %3315  ;;  %v1838_v45 = vpop.f32.mrf.mxu2 }
 0x430   :  { %v1407_v53 = vmul.f32 %v3316_v15, %v4416_v40 }
 0x432   :  { %v3318_v52 = vpop.eup %3317  ;;  %v1439_v19 = vpack.c.bf16 %v1407_v53, %v1407_v53 }
 0x433   :  { %v1406_v39 = vmul.f32 %v3318_v52, %v4418_v17 }
 0x434   :  { %2999 = vmatmul.msk.bf16.vlgmr.msrb.gmra.mxu3 %vm260_vm1, %v1439_v19 }
 0x435   :  { %v1438_v42 = vpack.c.bf16 %v1406_v39, %v1406_v39 }
 0x437   :  { %2998 = vmatmul.msk.bf16.vlgmr.msrb.gmra.mxu2 %vm260_vm1, %v1438_v42 }
 0x43f   :  { %v1773_v6 = vpop.f32.mrf.mxu3 }
 0x440   :  { %v3176_v59 = vpack.i.bf16 %v1773_v6, %v1752_v8 }
 0x441   :  { %v1878_v26 = vpop.f32.mrf.mxu0 }
 0x447   :  { %v1775_v51 = vpop.f32.mrf.mxu3 }
 0x449   :  { %v1880_v61 = vpop.f32.mrf.mxu0  ;;  %v1899_v13 = vpop.f32.mrf.mxu1 }
 0x44a   :  { %v3166_v18 = vpack.i.bf16 %v1899_v13, %v1878_v26 }
 0x44c   :  { %3167 = vrot.lane.b32.xlu2 %v3166_v18, %s3464_s22 }
 0x451   :  { %v1901_v25 = vpop.f32.mrf.mxu1  ;;  %v1962_v20 = vpop.f32.mrf.mxu0 }
 0x457   :  { %v1857_v40 = vpop.f32.mrf.mxu3 }
 0x458   :  { %v3151_v7 = vpack.i.bf16 %v1857_v40, %v1836_v5 }
 0x459   :  { %v1964_v31 = vpop.f32.mrf.mxu0 }
 0x45a   :  { %v1983_v10 = vpop.f32.mrf.mxu1  ;;  %3152 = vrot.lane.b32.xlu1 %v3151_v7, %s3464_s22 }
 0x45b   :  { %v3141_v17 = vpack.i.bf16 %v1983_v10, %v1962_v20 }
 0x45d   :  { %3142 = vrot.lane.b32.xlu0 %v3141_v17, %s3465_s23 }
 0x45f   :  { %v1859_v47 = vpop.f32.mrf.mxu3  ;;  %v1920_v14 = vpop.f32.mrf.mxu2 }
 0x460   :  { %v3133_v49 = vpop.permute.xlu1 %3132 }
 0x461   :  { %v3135_v43 = vunpack.i.h.bf16 %v3133_v49  ;;  %v3134_v58 = vunpack.i.l.bf16 %v3133_v49 }
 0x462   :  { %v1985_v21 = vpop.f32.mrf.mxu1  ;;  %3162 = vrot.lane.b32.xlu1 %v3161_v46, %s3456_s10 }
 0x463   :  { %v2210_v0 = vsel %vm260_vm1, %v4399_v38, %v3135_v43  ;;  %v2209_v5 = vsel %vm260_vm1, %v4298_v2, %v3134_v58  ;;  %v4521_v43 = vstv %s2297_s2 }
 0x467   :  { %v1922_v50 = vpop.f32.mrf.mxu2 }
 0x468   :  { %v1941_v62 = vpop.f32.mrf.mxu3 }
 0x469   :  { %v3181_v37 = vpack.i.bf16 %v1941_v62, %v1920_v14 }
 0x46a   :  { %3177 = vrot.lane.b32.xlu1 %v3176_v59, %s3456_s10 }
 0x46b   :  { %3182 = vrot.lane.b32.xlu2 %v3181_v37, %s3464_s22 }
 0x46d   :  { %v3148_v39 = vpop.permute.xlu1 %3147 }
 0x46e   :  { %v3150_v6 = vunpack.i.h.bf16 %v3148_v39  ;;  %v3149_v38 = vunpack.i.l.bf16 %v3148_v39 }
 0x470   :  { %v2004_v11 = vpop.f32.mrf.mxu2  ;;  %v1943_v63 = vpop.f32.mrf.mxu3  ;;  %v2212_v61 = vsel %vm260_vm1, %v4348_v12, %v3150_v6  ;;  %v2211_v13 = vsel %vm260_vm1, %v4331_v4, %v3149_v38 }
 0x474   :  { %v2046_v60 = vpop.f32.mrf.mxu0 }
 0x476   :  { %v3138_v8 = vpop.permute.xlu2 %3137 }
 0x477   :  { %v3140_v32 = vunpack.i.h.bf16 %v3138_v8  ;;  %v3139_v27 = vunpack.i.l.bf16 %v3138_v8 }
 0x478   :  { %v2006_v44 = vpop.f32.mrf.mxu2 }
 0x479   :  { %v2025_v55 = vpop.f32.mrf.mxu3  ;;  %v2218_v15 = vsel %vm2217_vm3, %v2209_v5, %v3139_v27  ;;  %v2219_v45 = vsel %vm2217_vm3, %v2210_v0, %v3140_v32  ;;  %v4523_v32 = vstv %s2299_s28 }
 0x47a   :  { %v3156_v30 = vpack.i.bf16 %v2025_v55, %v2004_v11 }
 0x47c   :  { %v2048_v56 = vpop.f32.mrf.mxu0  ;;  %3157 = vrot.lane.b32.xlu0 %v3156_v30, %s3465_s23 }
 0x47f   :  { %v2067_v54 = vpop.f32.mrf.mxu1 }
 0x480   :  { %v3171_v16 = vpack.i.bf16 %v2067_v54, %v2046_v60 }
 0x481   :  { %v2027_v24 = vpop.f32.mrf.mxu3 }
 0x484   :  { %3172 = vrot.lane.b32.xlu0 %v3171_v16, %s3465_s23 }
 0x487   :  { %v2069_v29 = vpop.f32.mrf.mxu1 }
 0x4a6   :  { %v3168_v21 = vpop.permute.xlu2 %3167 }
 0x4a7   :  { %v3170_v37 = vunpack.i.h.bf16 %v3168_v21  ;;  %v3169_v11 = vunpack.i.l.bf16 %v3168_v21 }
 0x4b7   :  { %v2109_v46 = vpop.f32.mrf.mxu3 }
 0x4ba   :  { %v2088_v1 = vpop.f32.mrf.mxu2 }
 0x4bb   :  { %v3186_v48 = vpack.i.bf16 %v2109_v46, %v2088_v1 }
 0x4bd   :  { %3187 = vrot.lane.b32.xlu0 %v3186_v48, %s3465_s23 }
 0x4bf   :  { %v2111_v9 = vpop.f32.mrf.mxu3 }
 0x4c2   :  { %v2090_v34 = vpop.f32.mrf.mxu2 }
 0x4c5   :  { %v3183_v24 = vpop.permute.xlu2 %3182 }
 0x4c6   :  { %v3185_v29 = vunpack.i.h.bf16 %v3183_v24  ;;  %v3184_v36 = vunpack.i.l.bf16 %v3183_v24 }
 0x4cc   :  { %v3153_v42 = vpop.permute.xlu1 %3152 }
 0x4cd   :  { %v3155_v26 = vunpack.i.h.bf16 %v3153_v42  ;;  %v3154_v51 = vunpack.i.l.bf16 %v3153_v42 }
 0x4cf   :  { %v3143_v33 = vpop.permute.xlu0 %3142  ;;  %v2220_v20 = vsel %vm2217_vm3, %v2211_v13, %v3154_v51  ;;  %v2221_v40 = vsel %vm2217_vm3, %v2212_v61, %v3155_v26  ;;  %v3356_v26 = vld [vmem:[#allocation2 + $0x10] sm:$0xff] }
 0x4d0   :  { %v3145_v22 = vunpack.i.h.bf16 %v3143_v33  ;;  %v3144_v41 = vunpack.i.l.bf16 %v3143_v33  ;;  %v3354_v33 = vld [vmem:[#allocation2] sm:$0xff]  ;;  %v2306_v51 = vmul.f32 %v3356_v26, %v4521_v43 }
 0x4d1   :  { %v2304_v0 = vmul.f32 %v3354_v33, %v4521_v43 }
 0x4d2   :  { %v2227_v53 = vsel %vm2226_vm4, %v2218_v15, %v3144_v41  ;;  %v2228_v52 = vsel %vm2226_vm4, %v2219_v45, %v3145_v22 }
 0x4d3   :  { %v2235_v19 = vpack.c.bf16 %v2228_v52, %v2227_v53  ;;  %v3355_v53 = vld [vmem:[#allocation2 + $0x8] sm:$0xff] }
 0x4d4   :  { %v3163_v17 = vpop.permute.xlu1 %3162  ;;  %v2305_v52 = vmul.f32 %v3355_v53, %v4521_v43 }
 0x4d5   :  { %3008 = vmatmul.msk.bf16.vlgmr.msra.gmra.mxu0 %vm101_vm0, %v2235_v19  ;;  %v3165_v47 = vunpack.i.h.bf16 %v3163_v17  ;;  %v3164_v14 = vunpack.i.l.bf16 %v3163_v17 }
 0x4d7   :  { %v2214_v4 = vsel %vm260_vm1, %v4406_v28, %v3165_v47  ;;  %v2213_v50 = vsel %vm260_vm1, %v4320_v57, %v3164_v14  ;;  %v3358_v14 = vld [vmem:[#allocation2 + $0x20] sm:$0xff] }
 0x4d8   :  { %v2222_v63 = vsel %vm2217_vm3, %v2213_v50, %v3169_v11  ;;  %v2223_v60 = vsel %vm2217_vm3, %v2214_v4, %v3170_v37  ;;  %v3359_v37 = vld [vmem:[#allocation2 + $0x28] sm:$0xff] }
 0x4d9   :  { %v2309_v11 = vmul.f32 %v3359_v37, %v4521_v43 }
 0x4dc   :  { %v3178_v56 = vpop.permute.xlu1 %3177 }
 0x4dd   :  { %v3180_v28 = vunpack.i.h.bf16 %v3178_v56  ;;  %v3179_v54 = vunpack.i.l.bf16 %v3178_v56 }
 0x4df   :  { %v2216_v57 = vsel %vm260_vm1, %v4414_v35, %v3180_v28  ;;  %v2215_v16 = vsel %vm260_vm1, %v4360_v23, %v3179_v54  ;;  %v4516_v35 = vld [vmem:[#allocation6] sm:$0xff]  ;;  %v3360_v28 = vld [vmem:[#allocation2 + $0x30] sm:$0xff] }
 0x4e0   :  { %v2224_v48 = vsel %vm2217_vm3, %v2215_v16, %v3184_v36  ;;  %v2225_v9 = vsel %vm2217_vm3, %v2216_v57, %v3185_v29  ;;  %v4519_v23 = vperm.slane %v4516_v35, 1  ;;  %v2310_v54 = vmul.f32 %v3360_v28, %v4521_v43 }
 0x4ee   :  { %v3158_v2 = vpop.permute.xlu0 %3157 }
 0x4ef   :  { %v3160_v18 = vunpack.i.h.bf16 %v3158_v2  ;;  %v3159_v25 = vunpack.i.l.bf16 %v3158_v2 }
 0x4f1   :  { %v2229_v7 = vsel %vm2226_vm4, %v2220_v20, %v3159_v25  ;;  %v2230_v31 = vsel %vm2226_vm4, %v2221_v40, %v3160_v18  ;;  %v3357_v20 = vld [vmem:[#allocation2 + $0x18] sm:$0xff] }
 0x4f2   :  { %v2236_v10 = vpack.c.bf16 %v2230_v31, %v2229_v7  ;;  %v2307_v40 = vmul.f32 %v3357_v20, %v4521_v43 }
 0x4f4   :  { %3009 = vmatmul.msk.bf16.gmra.mxu0 %vm101_vm0, %v2236_v10 }
 0x4f6   :  { %v3173_v12 = vpop.permute.xlu0 %3172 }
 0x4f7   :  { %v3175_v59 = vunpack.i.h.bf16 %v3173_v12  ;;  %v3174_v62 = vunpack.i.l.bf16 %v3173_v12  ;;  %v2308_v12 = vmul.f32 %v3358_v14, %v4521_v43 }
 0x4f9   :  { %v2231_v44 = vsel %vm2226_vm4, %v2222_v63, %v3174_v62  ;;  %v2232_v55 = vsel %vm2226_vm4, %v2223_v60, %v3175_v59 }
 0x4fa   :  { %v2237_v30 = vpack.c.bf16 %v2232_v55, %v2231_v44 }
 0x504   :  { %3010 = vmatmul.msk.bf16.gmra.mxu0 %vm101_vm0, %v2237_v30  ;;  %v3466_v30 = vmov 32.0  }
 0x505   :  { %3319 = vrcp.f32 %v3466_v30 }
 0x50b   :  { %v3320_v16 = vpop.eup %3319 }
 0x50c   :  { %v2354_v36 = vmul.f32 32.0, %v3320_v16  ;;  %vm2358_vm5 = vweird.f32 %v3320_v16 }
 0x52f   :  { %v3188_v3 = vpop.permute.xlu0 %3187 }
 0x530   :  { %v3190_v46 = vunpack.i.h.bf16 %v3188_v3  ;;  %v3189_v1 = vunpack.i.l.bf16 %v3188_v3  ;;  %v2355_v3 = vsub.f32 1.0, %v2354_v36 }
 0x532   :  { %v2233_v34 = vsel %vm2226_vm4, %v2224_v48, %v3189_v1  ;;  %v2234_v49 = vsel %vm2226_vm4, %v2225_v9, %v3190_v46  ;;  %v2356_v46 = vmul.f32 %v3320_v16, %v2355_v3 }
 0x533   :  { %v2238_v8 = vpack.c.bf16 %v2234_v49, %v2233_v34 }
 0x534   :  { %v2357_v1 = vadd.f32 %v3320_v16, %v2356_v46 }
 0x535   :  { %3011 = vmatmul.msk.bf16.gmra.mxu0 %vm101_vm0, %v2238_v8 }
 0x536   :  { %v4565_v48 = vsel %vm2358_vm5, %v3320_v16, %v2357_v1 }
 0x552   :  { %v2277_v58 = vpop.f32.mrf.mxu0 }
 0x553   :  { %v2278_v27 = vadd.f32 %v2277_v58, %v4519_v23 }
 0x555   :  { %v2313_v5 = vmul.f32 %v4523_v32, %v2278_v27 }
 0x557   :  { %v4528_v22 = vadd.f32 %v2313_v5, %v2304_v0  ;;  %v3361_v5 = vld [vmem:[#allocation2 + $0x38] sm:$0xff] }
 0x559   :  { %v2329_v41 = vsel %vm101_vm0, %v4528_v22, 0.0 }
 0x55a   :  { %v2279_v15 = vpop.f32.mrf.mxu0  ;;  %2330 = vadd.xlane.f32.xlu1 %v2329_v41  ;;  %v2311_v41 = vmul.f32 %v3361_v5, %v4521_v43 }
 0x55b   :  { %v2280_v45 = vadd.f32 %v2279_v15, %v4519_v23 }
 0x55d   :  { %v2314_v19 = vmul.f32 %v4523_v32, %v2280_v45 }
 0x55f   :  { %v4535_v39 = vadd.f32 %v2314_v19, %v2305_v52 }
 0x561   :  { %v2332_v42 = vsel %vm101_vm0, %v4535_v39, 0.0 }
 0x562   :  { %2333 = vadd.xlane.f32.xlu2 %v2332_v42 }
 0x571   :  { %v2282_v6 = vpop.f32.mrf.mxu0 }
 0x572   :  { %v2283_v38 = vadd.f32 %v2282_v6, %v4519_v23 }
 0x574   :  { %v2315_v2 = vmul.f32 %v4523_v32, %v2283_v38 }
 0x576   :  { %v4542_v61 = vadd.f32 %v2315_v2, %v2306_v51 }
 0x578   :  { %v2335_v13 = vsel %vm101_vm0, %v4542_v61, 0.0 }
 0x579   :  { %v2284_v18 = vpop.f32.mrf.mxu0  ;;  %2336 = vadd.xlane.f32.xlu0 %v2335_v13 }
 0x57a   :  { %v2285_v25 = vadd.f32 %v2284_v18, %v4519_v23 }
 0x57c   :  { %v2316_v7 = vmul.f32 %v4523_v32, %v2285_v25 }
 0x57e   :  { %v4549_v31 = vadd.f32 %v2316_v7, %v2307_v40 }
 0x580   :  { %v2338_v10 = vsel %vm101_vm0, %v4549_v31, 0.0 }
 0x581   :  { %v2287_v17 = vpop.f32.mrf.mxu0  ;;  %2339 = vadd.xlane.f32.xlu1 %v2338_v10 }
 0x582   :  { %v2288_v47 = vadd.f32 %v2287_v17, %v4519_v23 }
 0x584   :  { %v2317_v21 = vmul.f32 %v4523_v32, %v2288_v47 }
 0x586   :  { %v2325_v4 = vadd.f32 %v2317_v21, %v2308_v12 }
 0x588   :  { %v2341_v50 = vsel %vm101_vm0, %v2325_v4, 0.0 }
 0x589   :  { %v2289_v59 = vpop.f32.mrf.mxu0  ;;  %2342 = vadd.xlane.f32.xlu2 %v2341_v50 }
 0x58a   :  { %v2290_v62 = vadd.f32 %v2289_v59, %v4519_v23 }
 0x58c   :  { %v2318_v63 = vmul.f32 %v4523_v32, %v2290_v62  ;;  %v3050_v62 = vld [vmem:[%s4826_s3 + $0x8] sm:$0xff] }
 0x58d   :  { %2567 = vmatpush.bf16.msra.mxu1 %v3050_v62 }
 0x58e   :  { %v2326_v60 = vadd.f32 %v2318_v63, %v2309_v11  ;;  %v3049_v63 = vld [vmem:[%s4826_s3] sm:$0xff] }
 0x590   :  { %v2344_v44 = vsel %vm101_vm0, %v2326_v60, 0.0 }
 0x591   :  { %2345 = vadd.xlane.f32.xlu0 %v2344_v44  ;;  %2568 = vmatpush.bf16.msra.mxu1 %v3049_v63 }
 0x5b2   :  { %v2292_v55 = vpop.f32.mrf.mxu0 }
 0x5b3   :  { %v2293_v56 = vadd.f32 %v2292_v55, %v4519_v23 }
 0x5b5   :  { %v2319_v24 = vmul.f32 %v4523_v32, %v2293_v56 }
 0x5b7   :  { %v2327_v57 = vadd.f32 %v2319_v24, %v2310_v54 }
 0x5b9   :  { %v2347_v29 = vsel %vm101_vm0, %v2327_v57, 0.0 }
 0x5ba   :  { %2348 = vadd.xlane.f32.xlu0 %v2347_v29  ;;  %v2294_v9 = vpop.f32.mrf.mxu0 }
 0x5bb   :  { %v2295_v8 = vadd.f32 %v2294_v9, %v4519_v23 }
 0x5bd   :  { %v2320_v33 = vmul.f32 %v4523_v32, %v2295_v8 }
 0x5bf   :  { %v2328_v23 = vadd.f32 %v2320_v33, %v2311_v41  ;;  %v4632_v33 = vperm.slane %v4516_v35, 2 }
 0x5c1   :  { %v2350_v32 = vsel %vm101_vm0, %v2328_v23, 0.0 }
 0x5cd   :  { %v2331_v34 = vpop.xlane.xlu1 %2330 }
 0x5ce   :  { %v2360_v49 = vmul.f32 %v4565_v48, %v2331_v34 }
 0x5d0   :  { %v4570_v58 = vsub.f32 %v4528_v22, %v2360_v49 }
 0x5d2   :  { %v2376_v27 = vmul.f32 %v4570_v58, %v4570_v58 }
 0x5d4   :  { %v2384_v0 = vsel %vm101_vm0, %v2376_v27, 0.0 }
 0x5d5   :  { %v2334_v15 = vpop.xlane.xlu2 %2333  ;;  %2385 = vadd.xlane.f32.xlu1 %v2384_v0 }
 0x5d6   :  { %v2361_v45 = vmul.f32 %v4565_v48, %v2334_v15  ;;  %v4636_v15 = vperm.slane %v4516_v35, 3 }
 0x5d8   :  { %v4579_v53 = vsub.f32 %v4535_v39, %v2361_v45 }
 0x5da   :  { %v2377_v22 = vmul.f32 %v4579_v53, %v4579_v53 }
 0x5dc   :  { %v2387_v52 = vsel %vm101_vm0, %v2377_v22, 0.0 }
 0x5dd   :  { %2388 = vadd.xlane.f32.xlu2 %v2387_v52  ;;  %2351 = vadd.xlane.f32.xlu1 %v2350_v32 }
 0x5ec   :  { %v2337_v19 = vpop.xlane.xlu0 %2336 }
 0x5ed   :  { %v2362_v43 = vmul.f32 %v4565_v48, %v2337_v19 }
 0x5ef   :  { %v4587_v42 = vsub.f32 %v4542_v61, %v2362_v43 }
 0x5f1   :  { %v2378_v39 = vmul.f32 %v4587_v42, %v4587_v42 }
 0x5f3   :  { %v2390_v6 = vsel %vm101_vm0, %v2378_v39, 0.0 }
 0x5f4   :  { %2391 = vadd.xlane.f32.xlu2 %v2390_v6  ;;  %v2340_v38 = vpop.xlane.xlu1 %2339 }
 0x5f5   :  { %v2363_v26 = vmul.f32 %v4565_v48, %v2340_v38 }
 0x5f7   :  { %v4594_v51 = vsub.f32 %v4549_v31, %v2363_v26 }
 0x5f9   :  { %v2379_v2 = vmul.f32 %v4594_v51, %v4594_v51 }
 0x5fb   :  { %v2393_v13 = vsel %vm101_vm0, %v2379_v2, 0.0 }
 0x5fc   :  { %v2343_v18 = vpop.xlane.xlu2 %2342  ;;  %2394 = vadd.xlane.f32.xlu0 %v2393_v13 }
 0x5fd   :  { %v2364_v61 = vmul.f32 %v4565_v48, %v2343_v18 }
 0x5ff   :  { %v4600_v25 = vsub.f32 %v2325_v4, %v2364_v61 }
 0x601   :  { %v2380_v20 = vmul.f32 %v4600_v25, %v4600_v25 }
 0x603   :  { %v2396_v40 = vsel %vm101_vm0, %v2380_v20, 0.0 }
 0x604   :  { %v2346_v7 = vpop.xlane.xlu0 %2345  ;;  %2397 = vadd.xlane.f32.xlu1 %v2396_v40 }
 0x605   :  { %v2365_v31 = vmul.f32 %v4565_v48, %v2346_v7 }
 0x607   :  { %v4606_v10 = vsub.f32 %v2326_v60, %v2365_v31 }
 0x609   :  { %v2381_v17 = vmul.f32 %v4606_v10, %v4606_v10 }
 0x60b   :  { %v2399_v47 = vsel %vm101_vm0, %v2381_v17, 0.0 }
 0x60c   :  { %2400 = vadd.xlane.f32.xlu2 %v2399_v47 }
 0x62d   :  { %v2349_v14 = vpop.xlane.xlu0 %2348 }
 0x62e   :  { %v2366_v12 = vmul.f32 %v4565_v48, %v2349_v14 }
 0x630   :  { %v4612_v21 = vsub.f32 %v2327_v57, %v2366_v12 }
 0x632   :  { %v2382_v4 = vmul.f32 %v4612_v21, %v4612_v21 }
 0x634   :  { %v2402_v50 = vsel %vm101_vm0, %v2382_v4, 0.0 }
 0x635   :  { %2403 = vadd.xlane.f32.xlu0 %v2402_v50 }
 0x648   :  { %v2386_v59 = vpop.xlane.xlu1 %2385 }
 0x649   :  { %v2408_v37 = vmul.f32 %v2386_v59, %v4565_v48 }
 0x64b   :  { %v2416_v11 = vadd.f32 1e-12, %v2408_v37 }
 0x64d   :  { %3321 = vrsqrt.f32 %v2416_v11  ;;  %vm2430_vm7 = vweird.f32 %v2416_v11 }
 0x650   :  { %v2389_v60 = vpop.xlane.xlu2 %2388  ;;  %v2352_v44 = vpop.xlane.xlu1 %2351 }
 0x651   :  { %v2409_v55 = vmul.f32 %v2389_v60, %v4565_v48  ;;  %v2367_v30 = vmul.f32 %v4565_v48, %v2352_v44 }
 0x653   :  { %v3322_v56 = vpop.eup %3321  ;;  %v2417_v28 = vadd.f32 1e-12, %v2409_v55  ;;  %v4626_v54 = vsub.f32 %v2328_v23, %v2367_v30 }
 0x654   :  { %v2425_v24 = vmul.f32 %v3322_v56, %v2416_v11  ;;  %vm2431_vm6 = vweird.f32 %v3322_v56 }
 0x655   :  { %3323 = vrsqrt.f32 %v2417_v28  ;;  %v2383_v57 = vmul.f32 %v4626_v54, %v4626_v54  ;;  %vm2432_vm8 = vmor %vm2430_vm7, %vm2431_vm6  ;;  %vm2440_vm10 = vweird.f32 %v2417_v28 }
 0x656   :  { %v2426_v16 = vmul.f32 %v3322_v56, %v2425_v24 }
 0x657   :  { %v2405_v29 = vsel %vm101_vm0, %v2383_v57, 0.0 }
 0x658   :  { %v2427_v36 = vmul.f32 0.5, %v2426_v16  ;;  %2406 = vadd.xlane.f32.xlu1 %v2405_v29 }
 0x65a   :  { %v2428_v3 = vsub.f32 1.5, %v2427_v36 }
 0x65b   :  { %v3324_v46 = vpop.eup %3323 }
 0x65c   :  { %v2429_v1 = vmul.f32 %v3322_v56, %v2428_v3  ;;  %v2435_v9 = vmul.f32 %v3324_v46, %v2417_v28  ;;  %vm2441_vm9 = vweird.f32 %v3324_v46 }
 0x65d   :  { %vm2442_vm11 = vmor %vm2440_vm10, %vm2441_vm9 }
 0x65e   :  { %v2436_v34 = vmul.f32 %v3324_v46, %v2435_v9  ;;  %v2433_v49 = vsel %vm2432_vm8, %v3322_v56, %v2429_v1 }
 0x65f   :  { %v2504_v0 = vmul.f32 %v2433_v49, %v4570_v58 }
 0x660   :  { %v2437_v8 = vmul.f32 0.5, %v2436_v34 }
 0x661   :  { %v2512_v45 = vmul.f32 %v2504_v0, %v4632_v33 }
 0x662   :  { %v2438_v27 = vsub.f32 1.5, %v2437_v8 }
 0x663   :  { %v4643_v19 = vadd.f32 %v2512_v45, %v4636_v15 }
 0x664   :  { %v2439_v5 = vmul.f32 %v3324_v46, %v2438_v27 }
 0x666   :  { %v2443_v41 = vsel %vm2442_vm11, %v3324_v46, %v2439_v5 }
 0x667   :  { %v2505_v23 = vmul.f32 %v2443_v41, %v4579_v53  ;;  %v2392_v22 = vpop.xlane.xlu2 %2391 }
 0x668   :  { %v2410_v32 = vmul.f32 %v2392_v22, %v4565_v48 }
 0x669   :  { %v2513_v52 = vmul.f32 %v2505_v23, %v4632_v33 }
 0x66a   :  { %v2418_v43 = vadd.f32 1e-12, %v2410_v32 }
 0x66b   :  { %v4646_v58 = vadd.f32 %v2513_v52, %v4636_v15 }
 0x66c   :  { %3325 = vrsqrt.f32 %v2418_v43  ;;  %vm2450_vm13 = vweird.f32 %v2418_v43 }
 0x66d   :  { %v2528_v39 = vpack.c.bf16 %v4646_v58, %v4643_v19 }
 0x66f   :  { %3021 = vmatmul.msk.bf16.vlgmr.msra.gmra.mxu1 %vm101_vm0, %v2528_v39  ;;  %v2395_v6 = vpop.xlane.xlu0 %2394 }
 0x670   :  { %v2411_v53 = vmul.f32 %v2395_v6, %v4565_v48 }
 0x672   :  { %v3326_v38 = vpop.eup %3325  ;;  %v2419_v26 = vadd.f32 1e-12, %v2411_v53 }
 0x673   :  { %v2445_v2 = vmul.f32 %v3326_v38, %v2418_v43  ;;  %vm2451_vm12 = vweird.f32 %v3326_v38 }
 0x674   :  { %3327 = vrsqrt.f32 %v2419_v26  ;;  %vm2452_vm14 = vmor %vm2450_vm13, %vm2451_vm12  ;;  %vm2460_vm1 = vweird.f32 %v2419_v26 }
 0x675   :  { %v2446_v13 = vmul.f32 %v3326_v38, %v2445_v2 }
 0x677   :  { %v2447_v18 = vmul.f32 0.5, %v2446_v13  ;;  %v2398_v61 = vpop.xlane.xlu1 %2397 }
 0x678   :  { %v2412_v20 = vmul.f32 %v2398_v61, %v4565_v48 }
 0x679   :  { %v2448_v40 = vsub.f32 1.5, %v2447_v18  ;;  %v3053_v18 = vld [vmem:[%s4827_s4 + $0x10] sm:$0xff] }
 0x67a   :  { %v3328_v7 = vpop.eup %3327  ;;  %v2420_v31 = vadd.f32 1e-12, %v2412_v20  ;;  %v3052_v20 = vld [vmem:[%s4827_s4 + $0x8] sm:$0xff] }
 0x67b   :  { %v2449_v17 = vmul.f32 %v3326_v38, %v2448_v40  ;;  %v2455_v47 = vmul.f32 %v3328_v7, %v2419_v26  ;;  %vm2461_vm15 = vweird.f32 %v3328_v7  ;;  %v3054_v26 = vld [vmem:[%s4827_s4 + $0x18] sm:$0xff] }
 0x67c   :  { %3329 = vrsqrt.f32 %v2420_v31  ;;  %vm2462_vm2 = vmor %vm2460_vm1, %vm2461_vm15  ;;  %vm2470_vm4 = vweird.f32 %v2420_v31  ;;  %2652 = vmatpush.bf16.msra.mxu2 %v3054_v26  ;;  %vm2635_vm15 = vcmask 523264  }
 0x67d   :  { %v2456_v14 = vmul.f32 %v3328_v7, %v2455_v47  ;;  %v2453_v12 = vsel %vm2452_vm14, %v3326_v38, %v2449_v17  ;;  %v3051_v17 = vld [vmem:[%s4827_s4] sm:$0xff]  ;;  %s3012_s4 = sld [smem:[#allocation8 + $0x1]] }
 0x67e   :  { %v2506_v11 = vmul.f32 %v2453_v12, %v4587_v42 }
 0x67f   :  { %v2457_v4 = vmul.f32 0.5, %v2456_v14  ;;  %v2401_v50 = vpop.xlane.xlu2 %2400 }
 0x680   :  { %v2413_v59 = vmul.f32 %v2401_v50, %v4565_v48  ;;  %v2514_v28 = vmul.f32 %v2506_v11, %v4632_v33  ;;  %2653 = vmatpush.bf16.msra.mxu2 %v3053_v18 }
 0x681   :  { %v2458_v62 = vsub.f32 1.5, %v2457_v4 }
 0x682   :  { %v3330_v37 = vpop.eup %3329  ;;  %v2421_v63 = vadd.f32 1e-12, %v2413_v59  ;;  %v4659_v36 = vadd.f32 %v2514_v28, %v4636_v15 }
 0x683   :  { %v2459_v60 = vmul.f32 %v3328_v7, %v2458_v62  ;;  %v2465_v44 = vmul.f32 %v3330_v37, %v2420_v31  ;;  %vm2471_vm3 = vweird.f32 %v3330_v37  ;;  %s2300_s17 = ssub.f32 1.0, %s3012_s4 }
 0x684   :  { %3331 = vrsqrt.f32 %v2421_v63  ;;  %vm2472_vm5 = vmor %vm2470_vm4, %vm2471_vm3  ;;  %vm2480_vm7 = vweird.f32 %v2421_v63  ;;  %2654 = vmatpush.bf16.msra.mxu2 %v3052_v20 }
 0x685   :  { %v2463_v55 = vsel %vm2462_vm2, %v3328_v7, %v2459_v60  ;;  %v2466_v30 = vmul.f32 %v3330_v37, %v2465_v44  ;;  %v2686_v26 = vstv %s2300_s17 }
 0x686   :  { %v2507_v56 = vmul.f32 %v2463_v55, %v4594_v51 }
 0x687   :  { %v2467_v24 = vmul.f32 0.5, %v2466_v30  ;;  %v2536_v30 = vperm.slane %v4516_v35, 4 }
 0x688   :  { %v2515_v57 = vmul.f32 %v2507_v56, %v4632_v33  ;;  %2655 = vmatpush.bf16.msra.mxu2 %v3051_v17 }
 0x689   :  { %v2468_v16 = vsub.f32 1.5, %v2467_v24 }
 0x68a   :  { %v3332_v29 = vpop.eup %3331  ;;  %v4662_v42 = vadd.f32 %v2515_v57, %v4636_v15 }
 0x68b   :  { %v2469_v3 = vmul.f32 %v3330_v37, %v2468_v16  ;;  %v2475_v46 = vmul.f32 %v3332_v29, %v2421_v63  ;;  %vm2481_vm6 = vweird.f32 %v3332_v29 }
 0x68c   :  { %v2529_v1 = vpack.c.bf16 %v4662_v42, %v4659_v36  ;;  %vm2482_vm8 = vmor %vm2480_vm7, %vm2481_vm6 }
 0x68d   :  { %v2476_v51 = vmul.f32 %v3332_v29, %v2475_v46  ;;  %v2473_v9 = vsel %vm2472_vm5, %v3330_v37, %v2469_v3 }
 0x68e   :  { %3022 = vmatmul.msk.bf16.gmra.mxu1 %vm101_vm0, %v2529_v1  ;;  %v2508_v8 = vmul.f32 %v2473_v9, %v4600_v25 }
 0x68f   :  { %v2477_v34 = vmul.f32 0.5, %v2476_v51 }
 0x690   :  { %v2516_v41 = vmul.f32 %v2508_v8, %v4632_v33 }
 0x691   :  { %v2478_v49 = vsub.f32 1.5, %v2477_v34 }
 0x692   :  { %v4672_v23 = vadd.f32 %v2516_v41, %v4636_v15 }
 0x693   :  { %v2479_v27 = vmul.f32 %v3332_v29, %v2478_v49 }
 0x695   :  { %v2483_v0 = vsel %vm2482_vm8, %v3332_v29, %v2479_v27 }
 0x696   :  { %v2509_v5 = vmul.f32 %v2483_v0, %v4606_v10 }
 0x698   :  { %v2517_v45 = vmul.f32 %v2509_v5, %v4632_v33 }
 0x69a   :  { %v4675_v22 = vadd.f32 %v2517_v45, %v4636_v15 }
 0x69c   :  { %v2530_v52 = vpack.c.bf16 %v4675_v22, %v4672_v23 }
 0x69e   :  { %3023 = vmatmul.msk.bf16.gmra.mxu1 %vm101_vm0, %v2530_v52 }
 0x6a8   :  { %v2404_v25 = vpop.xlane.xlu0 %2403 }
 0x6a9   :  { %v2414_v32 = vmul.f32 %v2404_v25, %v4565_v48 }
 0x6ab   :  { %v2422_v43 = vadd.f32 1e-12, %v2414_v32 }
 0x6ad   :  { %3333 = vrsqrt.f32 %v2422_v43  ;;  %vm2490_vm10 = vweird.f32 %v2422_v43 }
 0x6b3   :  { %v3334_v10 = vpop.eup %3333 }
 0x6b4   :  { %v2485_v39 = vmul.f32 %v3334_v10, %v2422_v43  ;;  %vm2491_vm9 = vweird.f32 %v3334_v10 }
 0x6b5   :  { %vm2492_vm11 = vmor %vm2490_vm10, %vm2491_vm9 }
 0x6b6   :  { %v2486_v6 = vmul.f32 %v3334_v10, %v2485_v39 }
 0x6b8   :  { %v2487_v13 = vmul.f32 0.5, %v2486_v6 }
 0x6ba   :  { %v2488_v61 = vsub.f32 1.5, %v2487_v13 }
 0x6bc   :  { %v2489_v7 = vmul.f32 %v3334_v10, %v2488_v61 }
 0x6be   :  { %v2493_v14 = vsel %vm2492_vm11, %v3334_v10, %v2489_v7 }
 0x6bf   :  { %v2510_v50 = vmul.f32 %v2493_v14, %v4612_v21 }
 0x6c1   :  { %v2518_v11 = vmul.f32 %v2510_v50, %v4632_v33 }
 0x6c3   :  { %v4699_v60 = vadd.f32 %v2518_v11, %v4636_v15 }
 0x6cb   :  { %v2407_v53 = vpop.xlane.xlu1 %2406 }
 0x6cc   :  { %v2415_v38 = vmul.f32 %v2407_v53, %v4565_v48  ;;  %v2610_v53 = vperm.slane %v4516_v35, 5 }
 0x6ce   :  { %v2423_v2 = vadd.f32 1e-12, %v2415_v38 }
 0x6d0   :  { %3335 = vrsqrt.f32 %v2423_v2  ;;  %vm2500_vm13 = vweird.f32 %v2423_v2 }
 0x6d6   :  { %v3336_v40 = vpop.eup %3335 }
 0x6d7   :  { %v2495_v31 = vmul.f32 %v3336_v40, %v2423_v2  ;;  %vm2501_vm12 = vweird.f32 %v3336_v40  ;;  %v2677_v2 = vstv %s3012_s4 }
 0x6d8   :  { %vm2502_vm14 = vmor %vm2500_vm13, %vm2501_vm12  ;;  %v2678_v61 = vmul.f32 %v2677_v2, %v4643_v19 }
 0x6d9   :  { %v2496_v47 = vmul.f32 %v3336_v40, %v2495_v31 }
 0x6db   :  { %v2497_v12 = vmul.f32 0.5, %v2496_v47  ;;  %v2679_v47 = vmul.f32 %v2677_v2, %v4646_v58 }
 0x6dd   :  { %v2498_v4 = vsub.f32 1.5, %v2497_v12 }
 0x6df   :  { %v2499_v59 = vmul.f32 %v3336_v40, %v2498_v4 }
 0x6e1   :  { %v2503_v62 = vsel %vm2502_vm14, %v3336_v40, %v2499_v59  ;;  %v2680_v59 = vmul.f32 %v2677_v2, %v4659_v36 }
 0x6e2   :  { %v2511_v37 = vmul.f32 %v2503_v62, %v4626_v54 }
 0x6e4   :  { %v2519_v63 = vmul.f32 %v2511_v37, %v4632_v33 }
 0x6e6   :  { %v4702_v44 = vadd.f32 %v2519_v63, %v4636_v15 }
 0x6e8   :  { %v2531_v55 = vpack.c.bf16 %v4702_v44, %v4699_v60 }
 0x6ea   :  { %3024 = vmatmul.msk.bf16.gmra.mxu1 %vm101_vm0, %v2531_v55  ;;  %v2681_v55 = vmul.f32 %v2677_v2, %v4662_v42 }
 0x6ec   :  { %v2570_v21 = vpop.f32.mrf.mxu1 }
 0x6ed   :  { %v2571_v56 = vadd.f32 %v2570_v21, %v2536_v30 }
 0x6ef   :  { %v2590_v24 = vmax.f32 %v2571_v56, 0.0 }
 0x6f4   :  { %v2572_v54 = vpop.f32.mrf.mxu1 }
 0x6f5   :  { %v2573_v28 = vadd.f32 %v2572_v54, %v2536_v30 }
 0x6f7   :  { %v2591_v57 = vmax.f32 %v2573_v28, 0.0  ;;  %v2682_v28 = vmul.f32 %v2677_v2, %v4672_v23 }
 0x6f9   :  { %v2598_v16 = vpack.c.bf16 %v2591_v57, %v2590_v24 }
 0x6fb   :  { %3041 = vmatmul.msk.bf16.vlgmr.msra.gmra.mxu2 %vm2635_vm15, %v2598_v16 }
 0x70b   :  { %v2575_v29 = vpop.f32.mrf.mxu1 }
 0x70c   :  { %v2576_v3 = vadd.f32 %v2575_v29, %v2536_v30 }
 0x70e   :  { %v2592_v51 = vmax.f32 %v2576_v3, 0.0  ;;  %v2683_v3 = vmul.f32 %v2677_v2, %v4675_v22 }
 0x713   :  { %v2577_v46 = vpop.f32.mrf.mxu1 }
 0x714   :  { %v2578_v1 = vadd.f32 %v2577_v46, %v2536_v30 }
 0x716   :  { %v2593_v9 = vmax.f32 %v2578_v1, 0.0 }
 0x718   :  { %v2599_v34 = vpack.c.bf16 %v2593_v9, %v2592_v51 }
 0x71a   :  { %3042 = vmatmul.msk.bf16.gmra.mxu2 %vm2635_vm15, %v2599_v34 }
 0x71b   :  { %v2580_v49 = vpop.f32.mrf.mxu1 }
 0x71c   :  { %v2581_v8 = vadd.f32 %v2580_v49, %v2536_v30 }
 0x71e   :  { %v2594_v5 = vmax.f32 %v2581_v8, 0.0  ;;  %v2684_v8 = vmul.f32 %v2677_v2, %v4699_v60  ;;  %v2685_v60 = vmul.f32 %v2677_v2, %v4702_v44 }
 0x723   :  { %v2582_v27 = vpop.f32.mrf.mxu1 }
 0x724   :  { %v2583_v0 = vadd.f32 %v2582_v27, %v2536_v30 }
 0x726   :  { %v2595_v41 = vmax.f32 %v2583_v0, 0.0 }
 0x728   :  { %v2600_v45 = vpack.c.bf16 %v2595_v41, %v2594_v5 }
 0x72a   :  { %3043 = vmatmul.msk.bf16.gmra.mxu2 %vm2635_vm15, %v2600_v45 }
 0x767   :  { %v2585_v52 = vpop.f32.mrf.mxu1 }
 0x768   :  { %v2586_v25 = vadd.f32 %v2585_v52, %v2536_v30 }
 0x76a   :  { %v2596_v10 = vmax.f32 %v2586_v25, 0.0 }
 0x76f   :  { %v2587_v32 = vpop.f32.mrf.mxu1 }
 0x770   :  { %v2588_v43 = vadd.f32 %v2587_v32, %v2536_v30 }
 0x772   :  { %v2597_v39 = vmax.f32 %v2588_v43, 0.0 }
 0x774   :  { %v2601_v6 = vpack.c.bf16 %v2597_v39, %v2596_v10 }
 0x776   :  { %3044 = vmatmul.msk.bf16.gmra.mxu2 %vm2635_vm15, %v2601_v6 }
 0x77e   :  { %v2657_v38 = vpop.f32.mrf.mxu2 }
 0x77f   :  { %v2658_v13 = vadd.f32 %v2657_v38, %v2610_v53 }
 0x781   :  { %v2687_v18 = vmul.f32 %v2686_v26, %v2658_v13 }
 0x783   :  { %v2695_v20 = vadd.f32 %v2687_v18, %v2678_v61 }
 0x785   :  { %v2703_v40 = vsel %vm101_vm0, %v2695_v20, 0.0 }
 0x786   :  { %v2659_v7 = vpop.f32.mrf.mxu2  ;;  %2704 = vadd.xlane.f32.xlu2 %v2703_v40 }
 0x787   :  { %v2660_v31 = vadd.f32 %v2659_v7, %v2610_v53 }
 0x789   :  { %v2688_v17 = vmul.f32 %v2686_v26, %v2660_v31 }
 0x78b   :  { %v2696_v14 = vadd.f32 %v2688_v17, %v2679_v47 }
 0x78d   :  { %v2706_v12 = vsel %vm101_vm0, %v2696_v14, 0.0 }
 0x78e   :  { %2707 = vadd.xlane.f32.xlu0 %v2706_v12 }
 0x79d   :  { %v2662_v35 = vpop.f32.mrf.mxu2 }
 0x79e   :  { %v2663_v4 = vadd.f32 %v2662_v35, %v2610_v53 }
 0x7a0   :  { %v2689_v50 = vmul.f32 %v2686_v26, %v2663_v4 }
 0x7a2   :  { %v2697_v62 = vadd.f32 %v2689_v50, %v2680_v59 }
 0x7a4   :  { %v2709_v19 = vsel %vm101_vm0, %v2697_v62, 0.0 }
 0x7a5   :  { %v2664_v37 = vpop.f32.mrf.mxu2  ;;  %2710 = vadd.xlane.f32.xlu1 %v2709_v19 }
 0x7a6   :  { %v2665_v11 = vadd.f32 %v2664_v37, %v2610_v53 }
 0x7a8   :  { %v2690_v63 = vmul.f32 %v2686_v26, %v2665_v11 }
 0x7aa   :  { %v2698_v21 = vadd.f32 %v2690_v63, %v2681_v55 }
 0x7ac   :  { %v2712_v58 = vsel %vm101_vm0, %v2698_v21, 0.0 }
 0x7ad   :  { %2713 = vadd.xlane.f32.xlu2 %v2712_v58  ;;  %v2667_v30 = vpop.f32.mrf.mxu2 }
 0x7ae   :  { %v2668_v56 = vadd.f32 %v2667_v30, %v2610_v53 }
 0x7b0   :  { %v2691_v54 = vmul.f32 %v2686_v26, %v2668_v56 }
 0x7b2   :  { %v2699_v24 = vadd.f32 %v2691_v54, %v2682_v28 }
 0x7b4   :  { %v2715_v36 = vsel %vm101_vm0, %v2699_v24, 0.0 }
 0x7b5   :  { %v2669_v57 = vpop.f32.mrf.mxu2  ;;  %2716 = vadd.xlane.f32.xlu0 %v2715_v36 }
 0x7b6   :  { %v2670_v16 = vadd.f32 %v2669_v57, %v2610_v53 }
 0x7b8   :  { %v2692_v29 = vmul.f32 %v2686_v26, %v2670_v16 }
 0x7ba   :  { %v2700_v46 = vadd.f32 %v2692_v29, %v2683_v3 }
 0x7bc   :  { %v2718_v42 = vsel %vm101_vm0, %v2700_v46, 0.0 }
 0x7bd   :  { %2719 = vadd.xlane.f32.xlu1 %v2718_v42 }
 0x7f9   :  { %v2705_v1 = vpop.xlane.xlu2 %2704  ;;  %v2672_v51 = vpop.f32.mrf.mxu2 }
 0x7fa   :  { %v2727_v9 = vmul.f32 %v2705_v1, %v4565_v48  ;;  %v2673_v34 = vadd.f32 %v2672_v51, %v2610_v53 }
 0x7fc   :  { %v4726_v49 = vsub.f32 %v2695_v20, %v2727_v9  ;;  %v2693_v23 = vmul.f32 %v2686_v26, %v2673_v34 }
 0x7fe   :  { %v2743_v27 = vmul.f32 %v4726_v49, %v4726_v49  ;;  %v2701_v0 = vadd.f32 %v2693_v23, %v2684_v8 }
 0x800   :  { %v2751_v22 = vsel %vm101_vm0, %v2743_v27, 0.0  ;;  %v2721_v5 = vsel %vm101_vm0, %v2701_v0, 0.0 }
 0x801   :  { %v2708_v41 = vpop.xlane.xlu0 %2707  ;;  %2752 = vadd.xlane.f32.xlu1 %v2751_v22  ;;  %v2674_v45 = vpop.f32.mrf.mxu2  ;;  %2722 = vadd.xlane.f32.xlu2 %v2721_v5 }
 0x802   :  { %v2728_v52 = vmul.f32 %v2708_v41, %v4565_v48  ;;  %v2675_v25 = vadd.f32 %v2674_v45, %v2610_v53 }
 0x804   :  { %v4734_v32 = vsub.f32 %v2696_v14, %v2728_v52  ;;  %v2694_v43 = vmul.f32 %v2686_v26, %v2675_v25 }
 0x806   :  { %v2702_v10 = vadd.f32 %v2694_v43, %v2685_v60  ;;  %v2744_v39 = vmul.f32 %v4734_v32, %v4734_v32 }
 0x808   :  { %v2724_v6 = vsel %vm101_vm0, %v2702_v10, 0.0  ;;  %v2754_v38 = vsel %vm101_vm0, %v2744_v39, 0.0 }
 0x809   :  { %2725 = vadd.xlane.f32.xlu0 %v2724_v6  ;;  %2755 = vadd.xlane.f32.xlu2 %v2754_v38 }
 0x818   :  { %v2711_v13 = vpop.xlane.xlu1 %2710 }
 0x819   :  { %v2729_v18 = vmul.f32 %v2711_v13, %v4565_v48 }
 0x81b   :  { %v4742_v61 = vsub.f32 %v2697_v62, %v2729_v18 }
 0x81d   :  { %v2745_v53 = vmul.f32 %v4742_v61, %v4742_v61 }
 0x81f   :  { %v2757_v44 = vsel %vm101_vm0, %v2745_v53, 0.0 }
 0x820   :  { %v2714_v26 = vpop.xlane.xlu2 %2713  ;;  %2758 = vadd.xlane.f32.xlu0 %v2757_v44 }
 0x821   :  { %v2730_v2 = vmul.f32 %v2714_v26, %v4565_v48 }
 0x823   :  { %v4748_v20 = vsub.f32 %v2698_v21, %v2730_v2 }
 0x825   :  { %v2746_v40 = vmul.f32 %v4748_v20, %v4748_v20 }
 0x827   :  { %v2760_v7 = vsel %vm101_vm0, %v2746_v40, 0.0 }
 0x828   :  { %2761 = vadd.xlane.f32.xlu1 %v2760_v7  ;;  %v2717_v31 = vpop.xlane.xlu0 %2716 }
 0x829   :  { %v2731_v17 = vmul.f32 %v2717_v31, %v4565_v48 }
 0x82b   :  { %v4754_v47 = vsub.f32 %v2699_v24, %v2731_v17 }
 0x82d   :  { %v2747_v14 = vmul.f32 %v4754_v47, %v4754_v47 }
 0x82f   :  { %v2763_v12 = vsel %vm101_vm0, %v2747_v14, 0.0 }
 0x830   :  { %2764 = vadd.xlane.f32.xlu2 %v2763_v12  ;;  %v2720_v35 = vpop.xlane.xlu1 %2719 }
 0x831   :  { %v2732_v4 = vmul.f32 %v2720_v35, %v4565_v48 }
 0x833   :  { %v4760_v50 = vsub.f32 %v2700_v46, %v2732_v4 }
 0x835   :  { %v2748_v59 = vmul.f32 %v4760_v50, %v4760_v50 }
 0x837   :  { %v2766_v62 = vsel %vm101_vm0, %v2748_v59, 0.0 }
 0x838   :  { %2767 = vadd.xlane.f32.xlu0 %v2766_v62 }
 0x874   :  { %v2723_v19 = vpop.xlane.xlu2 %2722  ;;  %v2753_v37 = vpop.xlane.xlu1 %2752 }
 0x875   :  { %v2733_v11 = vmul.f32 %v2723_v19, %v4565_v48  ;;  %v2775_v63 = vmul.f32 %v2753_v37, %v4565_v48 }
 0x877   :  { %v4767_v55 = vsub.f32 %v2701_v0, %v2733_v11  ;;  %v2783_v21 = vadd.f32 1e-12, %v2775_v63 }
 0x879   :  { %3337 = vrsqrt.f32 %v2783_v21  ;;  %v2749_v58 = vmul.f32 %v4767_v55, %v4767_v55  ;;  %vm2797_vm2 = vweird.f32 %v2783_v21 }
 0x87b   :  { %v2769_v30 = vsel %vm101_vm0, %v2749_v58, 0.0 }
 0x87c   :  { %v2726_v56 = vpop.xlane.xlu0 %2725  ;;  %2770 = vadd.xlane.f32.xlu1 %v2769_v30  ;;  %v2756_v54 = vpop.xlane.xlu2 %2755 }
 0x87d   :  { %v2734_v28 = vmul.f32 %v2726_v56, %v4565_v48  ;;  %v2776_v24 = vmul.f32 %v2756_v54, %v4565_v48 }
 0x87f   :  { %v3338_v36 = vpop.eup %3337  ;;  %v4774_v57 = vsub.f32 %v2702_v10, %v2734_v28  ;;  %v2784_v16 = vadd.f32 1e-12, %v2776_v24 }
 0x880   :  { %v2792_v29 = vmul.f32 %v3338_v36, %v2783_v21  ;;  %vm2798_vm1 = vweird.f32 %v3338_v36 }
 0x881   :  { %3339 = vrsqrt.f32 %v2784_v16  ;;  %v2750_v3 = vmul.f32 %v4774_v57, %v4774_v57  ;;  %vm2799_vm3 = vmor %vm2797_vm2, %vm2798_vm1  ;;  %vm2807_vm5 = vweird.f32 %v2784_v16 }
 0x882   :  { %v2793_v46 = vmul.f32 %v3338_v36, %v2792_v29 }
 0x883   :  { %v2772_v42 = vsel %vm101_vm0, %v2750_v3, 0.0 }
 0x884   :  { %v2794_v1 = vmul.f32 0.5, %v2793_v46  ;;  %2773 = vadd.xlane.f32.xlu2 %v2772_v42 }
 0x886   :  { %v2795_v51 = vsub.f32 1.5, %v2794_v1 }
 0x887   :  { %v3340_v9 = vpop.eup %3339 }
 0x888   :  { %v2796_v34 = vmul.f32 %v3338_v36, %v2795_v51  ;;  %v2802_v23 = vmul.f32 %v3340_v9, %v2784_v16  ;;  %vm2808_vm4 = vweird.f32 %v3340_v9 }
 0x889   :  { %vm2809_vm6 = vmor %vm2807_vm5, %vm2808_vm4 }
 0x88a   :  { %v2800_v8 = vsel %vm2799_vm3, %v3338_v36, %v2796_v34  ;;  %v2803_v27 = vmul.f32 %v3340_v9, %v2802_v23 }
 0x88b   :  { %v2871_v0 = vmul.f32 %v2800_v8, %v4726_v49 }
 0x88c   :  { %v2804_v22 = vmul.f32 0.5, %v2803_v27 }
 0x88d   :  { %v2879_v5 = vmul.f32 %v2871_v0, %v4632_v33 }
 0x88e   :  { %v2805_v41 = vsub.f32 1.5, %v2804_v22 }
 0x88f   :  { %v2887_v45 = vadd.f32 %v2879_v5, %v4636_v15 }
 0x890   :  { %v2806_v52 = vmul.f32 %v3340_v9, %v2805_v41 }
 0x891   :  { %2895 = vst.msk [vmem:[#allocation9] sm:$0xff] %vm101_vm0, %v2887_v45 }
 0x892   :  { %v2810_v25 = vsel %vm2809_vm6, %v3340_v9, %v2806_v52 }
 0x893   :  { %v2872_v43 = vmul.f32 %v2810_v25, %v4734_v32  ;;  %v2759_v60 = vpop.xlane.xlu0 %2758 }
 0x894   :  { %v2777_v49 = vmul.f32 %v2759_v60, %v4565_v48 }
 0x895   :  { %v2880_v10 = vmul.f32 %v2872_v43, %v4632_v33 }
 0x896   :  { %v2785_v6 = vadd.f32 1e-12, %v2777_v49 }
 0x897   :  { %v2888_v39 = vadd.f32 %v2880_v10, %v4636_v15 }
 0x898   :  { %3341 = vrsqrt.f32 %v2785_v6  ;;  %vm2817_vm8 = vweird.f32 %v2785_v6 }
 0x899   :  { %2896 = vst.msk [vmem:[#allocation9 + $0x8] sm:$0xff] %vm101_vm0, %v2888_v39 }
 0x89b   :  { %v2762_v38 = vpop.xlane.xlu1 %2761 }
 0x89c   :  { %v2778_v13 = vmul.f32 %v2762_v38, %v4565_v48 }
 0x89e   :  { %v3342_v18 = vpop.eup %3341  ;;  %v2786_v53 = vadd.f32 1e-12, %v2778_v13 }
 0x89f   :  { %v2812_v44 = vmul.f32 %v3342_v18, %v2785_v6  ;;  %vm2818_vm7 = vweird.f32 %v3342_v18 }
 0x8a0   :  { %3343 = vrsqrt.f32 %v2786_v53  ;;  %vm2819_vm9 = vmor %vm2817_vm8, %vm2818_vm7  ;;  %vm2827_vm11 = vweird.f32 %v2786_v53 }
 0x8a1   :  { %v2813_v26 = vmul.f32 %v3342_v18, %v2812_v44 }
 0x8a3   :  { %v2814_v32 = vmul.f32 0.5, %v2813_v26  ;;  %v2765_v2 = vpop.xlane.xlu2 %2764 }
 0x8a4   :  { %v2779_v40 = vmul.f32 %v2765_v2, %v4565_v48 }
 0x8a5   :  { %v2815_v7 = vsub.f32 1.5, %v2814_v32 }
 0x8a6   :  { %v3344_v31 = vpop.eup %3343  ;;  %v2787_v17 = vadd.f32 1e-12, %v2779_v40 }
 0x8a7   :  { %v2816_v14 = vmul.f32 %v3342_v18, %v2815_v7  ;;  %v2822_v12 = vmul.f32 %v3344_v31, %v2786_v53  ;;  %vm2828_vm10 = vweird.f32 %v3344_v31 }
 0x8a8   :  { %3345 = vrsqrt.f32 %v2787_v17  ;;  %vm2829_vm12 = vmor %vm2827_vm11, %vm2828_vm10  ;;  %vm2837_vm14 = vweird.f32 %v2787_v17 }
 0x8a9   :  { %v2820_v35 = vsel %vm2819_vm9, %v3342_v18, %v2816_v14  ;;  %v2823_v4 = vmul.f32 %v3344_v31, %v2822_v12 }
 0x8aa   :  { %v2873_v59 = vmul.f32 %v2820_v35, %v4742_v61 }
 0x8ab   :  { %v2824_v62 = vmul.f32 0.5, %v2823_v4  ;;  %v2768_v19 = vpop.xlane.xlu0 %2767 }
 0x8ac   :  { %v2881_v37 = vmul.f32 %v2873_v59, %v4632_v33  ;;  %v2780_v11 = vmul.f32 %v2768_v19, %v4565_v48 }
 0x8ad   :  { %v2825_v63 = vsub.f32 1.5, %v2824_v62 }
 0x8ae   :  { %v3346_v21 = vpop.eup %3345  ;;  %v2889_v58 = vadd.f32 %v2881_v37, %v4636_v15  ;;  %v2788_v30 = vadd.f32 1e-12, %v2780_v11 }
 0x8af   :  { %v2826_v56 = vmul.f32 %v3344_v31, %v2825_v63  ;;  %v2832_v54 = vmul.f32 %v3346_v21, %v2787_v17  ;;  %vm2838_vm13 = vweird.f32 %v3346_v21 }
 0x8b0   :  { %2897 = vst.msk [vmem:[#allocation9 + $0x10] sm:$0xff] %vm101_vm0, %v2889_v58  ;;  %3347 = vrsqrt.f32 %v2788_v30  ;;  %vm2839_vm15 = vmor %vm2837_vm14, %vm2838_vm13  ;;  %vm2847_vm2 = vweird.f32 %v2788_v30 }
 0x8b1   :  { %v2830_v61 = vsel %vm2829_vm12, %v3344_v31, %v2826_v56  ;;  %v2833_v28 = vmul.f32 %v3346_v21, %v2832_v54 }
 0x8b2   :  { %v2874_v24 = vmul.f32 %v2830_v61, %v4748_v20 }
 0x8b3   :  { %v2834_v36 = vmul.f32 0.5, %v2833_v28 }
 0x8b4   :  { %v2882_v16 = vmul.f32 %v2874_v24, %v4632_v33 }
 0x8b5   :  { %v2835_v29 = vsub.f32 1.5, %v2834_v36 }
 0x8b6   :  { %v3348_v3 = vpop.eup %3347  ;;  %v2890_v46 = vadd.f32 %v2882_v16, %v4636_v15 }
 0x8b7   :  { %v2836_v42 = vmul.f32 %v3346_v21, %v2835_v29  ;;  %v2842_v1 = vmul.f32 %v3348_v3, %v2788_v30  ;;  %vm2848_vm1 = vweird.f32 %v3348_v3 }
 0x8b8   :  { %2898 = vst.msk [vmem:[#allocation9 + $0x18] sm:$0xff] %vm101_vm0, %v2890_v46  ;;  %vm2849_vm3 = vmor %vm2847_vm2, %vm2848_vm1 }
 0x8b9   :  { %v2840_v51 = vsel %vm2839_vm15, %v3346_v21, %v2836_v42  ;;  %v2843_v9 = vmul.f32 %v3348_v3, %v2842_v1 }
 0x8ba   :  { %v2875_v34 = vmul.f32 %v2840_v51, %v4754_v47 }
 0x8bb   :  { %v2844_v23 = vmul.f32 0.5, %v2843_v9 }
 0x8bc   :  { %v2883_v20 = vmul.f32 %v2875_v34, %v4632_v33 }
 0x8bd   :  { %v2845_v8 = vsub.f32 1.5, %v2844_v23 }
 0x8be   :  { %v2891_v27 = vadd.f32 %v2883_v20, %v4636_v15 }
 0x8bf   :  { %v2846_v0 = vmul.f32 %v3348_v3, %v2845_v8 }
 0x8c0   :  { %2899 = vst.msk [vmem:[#allocation9 + $0x20] sm:$0xff] %vm101_vm0, %v2891_v27 }
 0x8c1   :  { %v2850_v22 = vsel %vm2849_vm3, %v3348_v3, %v2846_v0 }
 0x8c2   :  { %v2876_v5 = vmul.f32 %v2850_v22, %v4760_v50 }
 0x8c4   :  { %v2884_v41 = vmul.f32 %v2876_v5, %v4632_v33 }
 0x8c6   :  { %v2892_v45 = vadd.f32 %v2884_v41, %v4636_v15 }
 0x8c8   :  { %2900 = vst.msk [vmem:[#allocation9 + $0x28] sm:$0xff] %vm101_vm0, %v2892_v45 }
 0x8ef   :  { %v2771_v47 = vpop.xlane.xlu1 %2770 }
 0x8f0   :  { %v2781_v52 = vmul.f32 %v2771_v47, %v4565_v48 }
 0x8f2   :  { %v2789_v25 = vadd.f32 1e-12, %v2781_v52 }
 0x8f4   :  { %3349 = vrsqrt.f32 %v2789_v25  ;;  %vm2857_vm5 = vweird.f32 %v2789_v25 }
 0x8f7   :  { %v2774_v43 = vpop.xlane.xlu2 %2773 }
 0x8f8   :  { %v2782_v60 = vmul.f32 %v2774_v43, %v4565_v48 }
 0x8fa   :  { %v3350_v10 = vpop.eup %3349  ;;  %v2790_v49 = vadd.f32 1e-12, %v2782_v60 }
 0x8fb   :  { %v2852_v39 = vmul.f32 %v3350_v10, %v2789_v25  ;;  %vm2858_vm4 = vweird.f32 %v3350_v10 }
 0x8fc   :  { %3351 = vrsqrt.f32 %v2790_v49  ;;  %vm2859_vm6 = vmor %vm2857_vm5, %vm2858_vm4  ;;  %vm2867_vm8 = vweird.f32 %v2790_v49 }
 0x8fd   :  { %v2853_v6 = vmul.f32 %v3350_v10, %v2852_v39 }
 0x8ff   :  { %v2854_v50 = vmul.f32 0.5, %v2853_v6 }
 0x901   :  { %v2855_v38 = vsub.f32 1.5, %v2854_v50 }
 0x902   :  { %v3352_v13 = vpop.eup %3351 }
 0x903   :  { %v2856_v18 = vmul.f32 %v3350_v10, %v2855_v38  ;;  %v2862_v53 = vmul.f32 %v3352_v13, %v2790_v49  ;;  %vm2868_vm7 = vweird.f32 %v3352_v13 }
 0x904   :  { %vm2869_vm9 = vmor %vm2867_vm8, %vm2868_vm7 }
 0x905   :  { %v2860_v44 = vsel %vm2859_vm6, %v3350_v10, %v2856_v18  ;;  %v2863_v26 = vmul.f32 %v3352_v13, %v2862_v53 }
 0x906   :  { %v2877_v32 = vmul.f32 %v2860_v44, %v4767_v55 }
 0x907   :  { %v2864_v2 = vmul.f32 0.5, %v2863_v26 }
 0x908   :  { %v2885_v48 = vmul.f32 %v2877_v32, %v4632_v33 }
 0x909   :  { %v2865_v40 = vsub.f32 1.5, %v2864_v2 }
 0x90a   :  { %v2893_v7 = vadd.f32 %v2885_v48, %v4636_v15 }
 0x90b   :  { %v2866_v31 = vmul.f32 %v3352_v13, %v2865_v40 }
 0x90c   :  { %2901 = vst.msk [vmem:[#allocation9 + $0x30] sm:$0xff] %vm101_vm0, %v2893_v7 }
 0x90d   :  { %v2870_v17 = vsel %vm2869_vm9, %v3352_v13, %v2866_v31 }
 0x90e   :  { %v2878_v14 = vmul.f32 %v2870_v17, %v4774_v57 }
 0x910   :  { %v2886_v55 = vmul.f32 %v2878_v14, %v4632_v33 }
 0x912   :  { %v2894_v12 = vadd.f32 %v2886_v55, %v4636_v15 }
 0x914   :  { %2902 = vst.msk [vmem:[#allocation9 + $0x38] sm:$0xff] %vm101_vm0, %v2894_v12 }
 0x915   :  { %2915 = dma.vmem_to_hbm [thread:$0]  %s2908_s1, 1024, %s2910_s20, [#allocation4], %s3455_s9, %s3455_s9, %s3456_s10  }
 0x916   :  { %3452 = dma.done.wait [#allocation4], 1024  }
 0x917   :  { %3453 = vsyncadd [#allocation4], 4294966272 }
 0x918   :  { %2920 = vsyncpa [#allocation3], 1 }
 0x919   :  { %2921 = vsyncpa [#allocation7], 1 }
 0x91a   :  { %2922 = vsyncpa [#allocation4], 1 }
 0x91b   :  { %2923 = vsyncpa [#allocation5], 1 }

</bundles_post_ra>
